<compile_context>
chip_gen: v7x
topology: tpu7x:2x2x1
jax: 0.10.0
libtpu: 0.0.40
codegen_flags: <defaults>
</compile_context>

<pallas_src>
import jax
import jax.numpy as jnp
from jax import lax
from jax.experimental import pallas as pl
from jax.experimental.pallas import tpu as pltpu


# ---------------------------------------------------------------------------
# Small helpers
# ---------------------------------------------------------------------------
def _round_up(x, m):
    return ((x + m - 1) // m) * m


class _SlabPacker:
    """Packs many small 2-D arrays into one (rows, lane_width) slab.

    Each entry starts at a row offset aligned to `row_align`, is left aligned
    in the lane dimension and zero padded.  The layout (static Python ints) is
    closed over by the kernel, which takes static ref slices — so the whole
    weight set is 1 operand / 1 DMA instead of ~20.
    """

    def __init__(self, lane_width, dtype, row_align):
        self._chunks = []
        self.layout = {}
        self.lane_width = lane_width
        self.dtype = dtype
        self.row_align = row_align
        self._off = 0

    def add(self, name, arr):
        arr = jnp.asarray(arr)
        r, w = arr.shape
        rp = _round_up(r, self.row_align)
        chunk = jnp.zeros((rp, self.lane_width), self.dtype)
        chunk = chunk.at[:r, :w].set(arr.astype(self.dtype))
        self._chunks.append(chunk)
        self.layout[name] = (self._off, r, w)
        self._off += rp

    def finalize(self):
        return jnp.concatenate(self._chunks, axis=0), self.layout


# ---------------------------------------------------------------------------
# Fused kernel
# ---------------------------------------------------------------------------
def _make_fused_kernel(H, W, n_cib, vec_layout, mat_layout):
    f32 = jnp.float32

    def silu(y):
        # exp and the approximate reciprocal both ride the EUP slot.
        return y * pl.reciprocal(1.0 + jnp.exp(-y), approx=True)

    def kernel(x_ref, vec_ref, mat_ref, out_ref):
        def vec(name):                       # (rows, width) f32 static slice
            off, r, w = vec_layout[name]
            return vec_ref[off:off + r, 0:w]

        def mat(name):                       # (K, N) bf16 static slice
            off, r, w = mat_layout[name]
            return mat_ref[off:off + r, 0:w]

        def pw(v, wname, bname):
            # 1x1 conv + SiLU: lane-dense block-diagonal matmul on the MXU,
            # bf16 operands, f32 accumulation.
            y = jnp.dot(v.astype(jnp.bfloat16), mat(wname),
                        preferred_element_type=f32)
            return silu(y + vec(bname))

        def dw(v, tname, bname):
            # 3x3 depthwise conv + SiLU: 9 x (roll + border mask + tap FMA).
            # dy -> sublane roll with a per-image row mask (no cross-image
            # leakage inside the stacked (B*H, .) slab); dx -> lane roll by
            # +-C with a column mask.  Zero padding falls out of the masks.
            MB, Lc = v.shape
            C = Lc // W
            t_off, _, _ = vec_layout[tname]
            h = lax.broadcasted_iota(jnp.int32, (MB, 1), 0) % H
            lane = lax.broadcasted_iota(jnp.int32, (1, Lc), 1)
            row_mask = {-1: (h > 0).astype(f32), 0: None,
                        1: (h < H - 1).astype(f32)}
            col_mask = {-1: (lane >= C).astype(f32), 0: None,
                        1: (lane < (W - 1) * C).astype(f32)}
            acc = None
            for j, dy in enumerate((-1, 0, 1)):
                vy = v if dy == 0 else pltpu.roll(v, (-dy) % MB, axis=0)
                if row_mask[dy] is not None:
                    vy = vy * row_mask[dy]
                for i, dx in enumerate((-1, 0, 1)):
                    vx = vy if dx == 0 else pltpu.roll(vy, (-dx * C) % Lc,
                                                       axis=1)
                    if col_mask[dx] is not None:
                        vx = vx * col_mask[dx]
                    k = j * 3 + i
                    tap = vec_ref[t_off + k:t_off + k + 1, 0:Lc]   # (1, Lc)
                    term = vx * tap
                    acc = term if acc is None else acc + term
            return silu(acc + vec(bname))

        x = x_ref[...]                        # (B*H, W*Cin) f32

        # cv1 (+ its channel split) folded into two weight column blocks.
        ys = [pw(x, "cv1_w0", "cv1_b0"), pw(x, "cv1_w1", "cv1_b1")]

        # CIB blocks: dw -> pw -> dw -> pw -> dw  (shortcut=False, e=1.0).
        for b in range(n_cib):
            v = ys[-1]
            v = dw(v, f"dw1_t{b}", f"dw1_b{b}")
            v = pw(v, f"pw1_w{b}", f"pw1_b{b}")
            v = dw(v, f"dw2_t{b}", f"dw2_b{b}")
            v = pw(v, f"pw2_w{b}", f"pw2_b{b}")
            v = dw(v, f"dw3_t{b}", f"dw3_b{b}")
            ys.append(v)

        # cv2 over the (virtual) channel concat: sum of per-chunk matmuls, so
        # the interleaved-lane concatenation is never materialized.
        acc = None
        for idx, y in enumerate(ys):
            t = jnp.dot(y.astype(jnp.bfloat16), mat(f"cv2_w{idx}"),
                        preferred_element_type=f32)
            acc = t if acc is None else acc + t
        out_ref[...] = silu(acc + vec("cv2_b")).astype(out_ref.dtype)

    return kernel


# ---------------------------------------------------------------------------
# Host-side preparation: layout / split / concat are folded into two slabs.
# ---------------------------------------------------------------------------
def build_c2fcib(params, H, W, imgs_per_step=8):
    """Returns (forward_fn, vec_slab, mat_slab)."""
    f32 = jnp.float32
    c_in = params["cv1_w"].shape[0]
    c = params["cv1_w"].shape[1] // 2          # hidden width (static int)
    c_out = params["cv2_w"].shape[1]
    n_cib = len(params["cib"])

    def kron_pw(w):        # (Cin, Cout) -> (W*Cin, W*Cout) block-diagonal
        return jnp.kron(jnp.eye(W, dtype=f32), w.astype(f32))

    def tile_b(b):         # (C,) -> (1, W*C) channel-fastest lane layout
        return jnp.tile(b.astype(f32), W)[None, :]

    def tile_taps(k):      # (3, 3, C) -> (9, W*C)
        return jnp.stack([jnp.tile(k[j, i].astype(f32), W)
                          for j in range(3) for i in range(3)])

    lane_w = _round_up(max(W * c_in, W * 2 * c, W * c_out), 128)
    vec = _SlabPacker(lane_w, f32, row_align=8)            # biases + dw taps
    mat = _SlabPacker(lane_w, jnp.bfloat16, row_align=16)  # 1x1 kron weights

    mat.add("cv1_w0", kron_pw(params["cv1_w"][:, :c]))
    mat.add("cv1_w1", kron_pw(params["cv1_w"][:, c:]))
    vec.add("cv1_b0", tile_b(params["cv1_b"][:c]))
    vec.add("cv1_b1", tile_b(params["cv1_b"][c:]))
    for i, p in enumerate(params["cib"]):
        vec.add(f"dw1_t{i}", tile_taps(p["dw1_w"]))
        vec.add(f"dw1_b{i}", tile_b(p["dw1_b"]))
        mat.add(f"pw1_w{i}", kron_pw(p["pw1_w"]))
        vec.add(f"pw1_b{i}", tile_b(p["pw1_b"]))
        vec.add(f"dw2_t{i}", tile_taps(p["dw2_w"]))
        vec.add(f"dw2_b{i}", tile_b(p["dw2_b"]))
        mat.add(f"pw2_w{i}", kron_pw(p["pw2_w"]))
        vec.add(f"pw2_b{i}", tile_b(p["pw2_b"]))
        vec.add(f"dw3_t{i}", tile_taps(p["dw3_w"]))
        vec.add(f"dw3_b{i}", tile_b(p["dw3_b"]))
    for i in range(2 + n_cib):
        mat.add(f"cv2_w{i}", kron_pw(params["cv2_w"][i * c:(i + 1) * c, :]))
    vec.add("cv2_b", tile_b(params["cv2_b"]))

    vec_slab, vec_layout = vec.finalize()
    mat_slab, mat_layout = mat.finalize()
    kernel = _make_fused_kernel(H, W, n_cib, vec_layout, mat_layout)

    lin, lout = W * c_in, W * c_out

    @jax.jit
    def forward(x_nchw, vec_slab, mat_slab):
        N = x_nchw.shape[0]
        # Images per grid step: fill the sublane axis, but keep >= 2 grid
        # steps when possible so both v7x TensorCores get work.
        B = max(1, min(imgs_per_step, N // 2)) if N >= 2 else 1
        G = pl.cdiv(N, B)
        n_pad = G * B - N
        assert (B * H) % 8 == 0 or G == 1, "row block must be 8-aligned"

        xh = jnp.transpose(x_nchw, (0, 2, 3, 1)).reshape(N * H, lin)
        if n_pad:
            xh = jnp.concatenate(
                [xh, jnp.zeros((n_pad * H, lin), xh.dtype)], axis=0)

        o = pl.pallas_call(
            kernel,
            out_shape=jax.ShapeDtypeStruct((G * B * H, lout), jnp.float32),
            grid_spec=pltpu.PrefetchScalarGridSpec(
                num_scalar_prefetch=0,
                grid=(G,),                     # batch strips; parallel axis
                in_specs=[
                    pl.BlockSpec((B * H, lin), lambda g: (g, 0)),
                    # Constant index_maps: slabs are DMA'd into VMEM once.
                    pl.BlockSpec(vec_slab.shape, lambda g: (0, 0)),
                    pl.BlockSpec(mat_slab.shape, lambda g: (0, 0)),
                ],
                out_specs=pl.BlockSpec((B * H, lout), lambda g: (g, 0)),
            ),
            compiler_params=pltpu.CompilerParams(
                dimension_semantics=("parallel",)),
        )(xh, vec_slab, mat_slab)

        o = o[:N * H].reshape(N, H, W, c_out)
        return jnp.transpose(o, (0, 3, 1, 2))

    return forward, vec_slab, mat_slab


# ---------------------------------------------------------------------------
# Deterministic parameter construction (BN-folded inference form: conv+bias+SiLU)
# ---------------------------------------------------------------------------
def make_params(key, c1_in, c2_out, n=1, e=0.5):
    c = int(c2_out * e)
    ks = jax.random.split(key, 4 + n)

    def w(k, shape, scale):
        return scale * jax.random.normal(k, shape, jnp.float32)

    params = {
        "cv1_w": w(ks[0], (c1_in, 2 * c), 0.5),         # Conv(c1, 2c, 1)
        "cv1_b": w(ks[1], (2 * c,), 0.1),
        "cv2_w": w(ks[2], ((2 + n) * c, c2_out), 0.5),  # Conv((2+n)c, c2, 1)
        "cv2_b": w(ks[3], (c2_out,), 0.1),
        "cib": [],
    }
    for i in range(n):
        kk = jax.random.split(ks[4 + i], 10)
        params["cib"].append({
            "dw1_w": w(kk[0], (3, 3, c), 0.5),          # Conv(c, c, 3, g=c)
            "dw1_b": w(kk[1], (c,), 0.1),
            "pw1_w": w(kk[2], (c, 2 * c), 0.5),         # Conv(c, 2c, 1)
            "pw1_b": w(kk[3], (2 * c,), 0.1),
            "dw2_w": w(kk[4], (3, 3, 2 * c), 0.4),      # Conv(2c, 2c, 3, g=2c)
            "dw2_b": w(kk[5], (2 * c,), 0.1),
            "pw2_w": w(kk[6], (2 * c, c), 0.4),         # Conv(2c, c, 1)
            "pw2_b": w(kk[7], (c,), 0.1),
            "dw3_w": w(kk[8], (3, 3, c), 0.5),          # Conv(c, c, 3, g=c)
            "dw3_b": w(kk[9], (c,), 0.1),
        })
    return params


# ---------------------------------------------------------------------------
# Pure-JAX reference (f32, for correctness check; operates on raw weights)
# ---------------------------------------------------------------------------
def _ref_pw(x, w, b):
    y = jnp.einsum("nhwc,cd->nhwd", x, w,
                   precision=lax.Precision.HIGHEST) + b
    return y * (1.0 / (1.0 + jnp.exp(-y)))


def _ref_dw(x, w, b):
    N, H, W, C = x.shape
    xp = jnp.pad(x, ((0, 0), (1, 1), (1, 1), (0, 0)))
    acc = jnp.zeros_like(x)
    for dy in range(3):
        for dx in range(3):
            acc = acc + xp[:, dy:dy + H, dx:dx + W, :] * w[dy, dx, :]
    y = acc + b
    return y * (1.0 / (1.0 + jnp.exp(-y)))


def c2fcib_infer_reference(x_nchw, params):
    x = jnp.transpose(x_nchw, (0, 2, 3, 1))
    c = params["cv1_w"].shape[1] // 2
    t = _ref_pw(x, params["cv1_w"], params["cv1_b"])
    y = [t[..., :c], t[..., c:]]
    for p in params["cib"]:
        v = y[-1]
        v = _ref_dw(v, p["dw1_w"], p["dw1_b"])
        v = _ref_pw(v, p["pw1_w"], p["pw1_b"])
        v = _ref_dw(v, p["dw2_w"], p["dw2_b"])
        v = _ref_pw(v, p["pw2_w"], p["pw2_b"])
        v = _ref_dw(v, p["dw3_w"], p["dw3_b"])
        y.append(v)
    cat = jnp.concatenate(y, axis=-1)
    out = _ref_pw(cat, params["cv2_w"], params["cv2_b"])
    return jnp.transpose(out, (0, 3, 1, 2))


# ---------------------------------------------------------------------------
if __name__ == "__main__":
    key = jax.random.PRNGKey(0)
    kx, kp = jax.random.split(key)

    # C2fCIB_infer(c1=8, c2=16, n=1, e=0.5)  ->  hidden c = 8
    # (W*c = 128 keeps every activation width a multiple of 128 lanes.)
    N, C_in, H, W = 8, 8, 16, 16
    C_out, n_blocks, e = 16, 1, 0.5

    params = make_params(kp, C_in, C_out, n=n_blocks, e=e)
    fwd, vec_slab, mat_slab = build_c2fcib(params, H, W, imgs_per_step=8)

    x = jax.random.normal(kx, (N, C_in, H, W), jnp.float32)
    out = jax.block_until_ready(fwd(x, vec_slab, mat_slab))
    ref = jax.block_until_ready(c2fcib_infer_reference(x, params))

    assert out.shape == (N, C_out, H, W), out.shape
    # bf16 MXU operands => ~0.5-1% relative error budget; a layout / shift /
    # mask bug would be O(100%), so these bounds still discriminate.
    rel = float(jnp.linalg.norm(out - ref) / jnp.linalg.norm(ref))
    err = float(jnp.max(jnp.abs(out - ref)))
    assert rel < 3e-2, (rel, err)
    assert bool(jnp.allclose(out, ref, rtol=5e-2, atol=5e-1)), (rel, err)
    print("KERNEL_OK")
</pallas_src>

<mosaic_0001>
module attributes {stable_mosaic.version = 11 : i64} {
  func.func @kernel(%arg0: i32, %arg1: memref<64x128xf32, #tpu.memory_space<vmem>>, %arg2: memref<112x256xf32, #tpu.memory_space<vmem>>, %arg3: memref<1024x256xbf16, #tpu.memory_space<vmem>>, %arg4: memref<64x256xf32, #tpu.memory_space<vmem>>) attributes {dimension_semantics = [#tpu.dimension_semantics<parallel>], iteration_bounds = array<i64: 2>, scalar_prefetch = 0 : i64, scratch_operands = 0 : i64, tpu.core_type = #tpu.core_type<tc>, window_params = [{transform_indices = @transform_0, window_bounds = array<i64: 64, 128>}, {pipeline_mode = #tpu.pipeline_mode<synchronous>, transform_indices = @transform_1, window_bounds = array<i64: 112, 256>}, {pipeline_mode = #tpu.pipeline_mode<synchronous>, transform_indices = @transform_2, window_bounds = array<i64: 1024, 256>}, {transform_indices = @transform_3, window_bounds = array<i64: 64, 256>}]} {
    %c0 = arith.constant 0 : index
    %c0_0 = arith.constant 0 : index
    %0 = vector.load %arg1[%c0, %c0_0] : memref<64x128xf32, #tpu.memory_space<vmem>>, vector<64x128xf32>
    %1 = arith.truncf %0 : vector<64x128xf32> to vector<64x128xbf16>
    %c0_1 = arith.constant 0 : index
    %c0_2 = arith.constant 0 : index
    %2 = vector.load %arg3[%c0_1, %c0_2] : memref<1024x256xbf16, #tpu.memory_space<vmem>>, vector<128x128xbf16>
    %cst = arith.constant dense<0.000000e+00> : vector<64x128xf32>
    %3 = tpu.matmul %1, %2, %cst {dimension_numbers = #tpu.dot_dimension_numbers<[1], [0], [0], [1], [0, 0, 1, 1], [], []>} : vector<64x128xbf16>, vector<128x128xbf16>, vector<64x128xf32> -> vector<64x128xf32>
    %c0_3 = arith.constant 0 : index
    %c0_4 = arith.constant 0 : index
    %4 = vector.load %arg2[%c0_3, %c0_4] : memref<112x256xf32, #tpu.memory_space<vmem>>, vector<1x128xf32>
    %5 = vector.broadcast %4 : vector<1x128xf32> to vector<64x128xf32>
    %6 = arith.addf %3, %5 : vector<64x128xf32>
    %cst_5 = arith.constant 0.000000e+00 : f32
    %7 = vector.broadcast %cst_5 : f32 to vector<64x128xf32>
    %8 = arith.subf %7, %6 : vector<64x128xf32>
    %9 = math.exp %8 : vector<64x128xf32>
    %cst_6 = arith.constant 1.000000e+00 : f32
    %10 = vector.broadcast %cst_6 : f32 to vector<64x128xf32>
    %11 = arith.addf %10, %9 : vector<64x128xf32>
    %12 = tpu.reciprocal %11 {approx = true} : vector<64x128xf32> -> vector<64x128xf32>
    %13 = arith.mulf %6, %12 : vector<64x128xf32>
    %14 = arith.truncf %0 : vector<64x128xf32> to vector<64x128xbf16>
    %c128 = arith.constant 128 : index
    %c0_7 = arith.constant 0 : index
    %15 = vector.load %arg3[%c128, %c0_7] : memref<1024x256xbf16, #tpu.memory_space<vmem>>, vector<128x128xbf16>
    %cst_8 = arith.constant dense<0.000000e+00> : vector<64x128xf32>
    %16 = tpu.matmul %14, %15, %cst_8 {dimension_numbers = #tpu.dot_dimension_numbers<[1], [0], [0], [1], [0, 0, 1, 1], [], []>} : vector<64x128xbf16>, vector<128x128xbf16>, vector<64x128xf32> -> vector<64x128xf32>
    %c8 = arith.constant 8 : index
    %c0_9 = arith.constant 0 : index
    %17 = vector.load %arg2[%c8, %c0_9] : memref<112x256xf32, #tpu.memory_space<vmem>>, vector<1x128xf32>
    %18 = vector.broadcast %17 : vector<1x128xf32> to vector<64x128xf32>
    %19 = arith.addf %16, %18 : vector<64x128xf32>
    %cst_10 = arith.constant 0.000000e+00 : f32
    %20 = vector.broadcast %cst_10 : f32 to vector<64x128xf32>
    %21 = arith.subf %20, %19 : vector<64x128xf32>
    %22 = math.exp %21 : vector<64x128xf32>
    %cst_11 = arith.constant 1.000000e+00 : f32
    %23 = vector.broadcast %cst_11 : f32 to vector<64x128xf32>
    %24 = arith.addf %23, %22 : vector<64x128xf32>
    %25 = tpu.reciprocal %24 {approx = true} : vector<64x128xf32> -> vector<64x128xf32>
    %26 = arith.mulf %19, %25 : vector<64x128xf32>
    %27 = tpu.iota {dimensions = array<i32: 0>} : vector<64x1xi32>
    %c16_i32 = arith.constant 16 : i32
    %c0_i32 = arith.constant 0 : i32
    %28 = arith.cmpi eq, %c16_i32, %c0_i32 : i32
    %c1_i32 = arith.constant 1 : i32
    %29 = arith.select %28, %c1_i32, %c16_i32 : i32
    %30 = vector.broadcast %29 : i32 to vector<64x1xi32>
    %31 = arith.remsi %27, %30 : vector<64x1xi32>
    %c0_i32_12 = arith.constant 0 : i32
    %32 = vector.broadcast %c0_i32_12 : i32 to vector<64x1xi32>
    %33 = arith.cmpi ne, %31, %32 : vector<64x1xi32>
    %c0_i32_13 = arith.constant 0 : i32
    %34 = vector.broadcast %c0_i32_13 : i32 to vector<64x1xi32>
    %35 = arith.cmpi slt, %31, %34 : vector<64x1xi32>
    %c0_i32_14 = arith.constant 0 : i32
    %36 = arith.cmpi slt, %29, %c0_i32_14 : i32
    %37 = vector.broadcast %36 : i1 to vector<64x1xi1>
    %38 = vector.broadcast %37 : vector<64x1xi1> to vector<64x1xi1>
    %39 = arith.xori %35, %38 : vector<64x1xi1>
    %40 = arith.andi %39, %33 : vector<64x1xi1>
    %41 = vector.broadcast %29 : i32 to vector<64x1xi32>
    %42 = arith.addi %31, %41 : vector<64x1xi32>
    %43 = arith.select %40, %42, %31 : vector<64x1xi1>, vector<64x1xi32>
    %44 = tpu.iota {dimensions = array<i32: 1>} : vector<1x128xi32>
    %c0_i32_15 = arith.constant 0 : i32
    %45 = vector.broadcast %c0_i32_15 : i32 to vector<64x1xi32>
    %46 = arith.cmpi sgt, %43, %45 : vector<64x1xi32>
    %47 = arith.extui %46 : vector<64x1xi1> to vector<64x1xi32>
    %48 = arith.sitofp %47 : vector<64x1xi32> to vector<64x1xf32>
    %c15_i32 = arith.constant 15 : i32
    %49 = vector.broadcast %c15_i32 : i32 to vector<64x1xi32>
    %50 = arith.cmpi slt, %43, %49 : vector<64x1xi32>
    %51 = arith.extui %50 : vector<64x1xi1> to vector<64x1xi32>
    %52 = arith.sitofp %51 : vector<64x1xi32> to vector<64x1xf32>
    %c8_i32 = arith.constant 8 : i32
    %53 = vector.broadcast %c8_i32 : i32 to vector<1x128xi32>
    %54 = arith.cmpi sge, %44, %53 : vector<1x128xi32>
    %55 = arith.extui %54 : vector<1x128xi1> to vector<1x128xi32>
    %56 = arith.sitofp %55 : vector<1x128xi32> to vector<1x128xf32>
    %c120_i32 = arith.constant 120 : i32
    %57 = vector.broadcast %c120_i32 : i32 to vector<1x128xi32>
    %58 = arith.cmpi slt, %44, %57 : vector<1x128xi32>
    %59 = arith.extui %58 : vector<1x128xi1> to vector<1x128xi32>
    %60 = arith.sitofp %59 : vector<1x128xi32> to vector<1x128xf32>
    %c1_i32_16 = arith.constant 1 : i32
    %61 = tpu.dynamic_rotate %26 by %c1_i32_16 dim 0 : vector<64x128xf32>, i32 -> vector<64x128xf32>
    %62 = vector.broadcast %48 : vector<64x1xf32> to vector<64x128xf32>
    %63 = arith.mulf %61, %62 : vector<64x128xf32>
    %c8_i32_17 = arith.constant 8 : i32
    %64 = tpu.dynamic_rotate %63 by %c8_i32_17 dim 1 : vector<64x128xf32>, i32 -> vector<64x128xf32>
    %65 = vector.broadcast %56 : vector<1x128xf32> to vector<64x128xf32>
    %66 = arith.mulf %64, %65 : vector<64x128xf32>
    %c16 = arith.constant 16 : index
    %c0_18 = arith.constant 0 : index
    %67 = vector.load %arg2[%c16, %c0_18] : memref<112x256xf32, #tpu.memory_space<vmem>>, vector<1x128xf32>
    %68 = vector.broadcast %67 : vector<1x128xf32> to vector<64x128xf32>
    %69 = arith.mulf %66, %68 : vector<64x128xf32>
    %c17 = arith.constant 17 : index
    %c0_19 = arith.constant 0 : index
    %70 = vector.load %arg2[%c17, %c0_19] : memref<112x256xf32, #tpu.memory_space<vmem>>, vector<1x128xf32>
    %71 = vector.broadcast %70 : vector<1x128xf32> to vector<64x128xf32>
    %72 = arith.mulf %63, %71 : vector<64x128xf32>
    %73 = arith.addf %69, %72 : vector<64x128xf32>
    %c120_i32_20 = arith.constant 120 : i32
    %74 = tpu.dynamic_rotate %63 by %c120_i32_20 dim 1 : vector<64x128xf32>, i32 -> vector<64x128xf32>
    %75 = vector.broadcast %60 : vector<1x128xf32> to vector<64x128xf32>
    %76 = arith.mulf %74, %75 : vector<64x128xf32>
    %c18 = arith.constant 18 : index
    %c0_21 = arith.constant 0 : index
    %77 = vector.load %arg2[%c18, %c0_21] : memref<112x256xf32, #tpu.memory_space<vmem>>, vector<1x128xf32>
    %78 = vector.broadcast %77 : vector<1x128xf32> to vector<64x128xf32>
    %79 = arith.mulf %76, %78 : vector<64x128xf32>
    %80 = arith.addf %73, %79 : vector<64x128xf32>
    %c8_i32_22 = arith.constant 8 : i32
    %81 = tpu.dynamic_rotate %26 by %c8_i32_22 dim 1 : vector<64x128xf32>, i32 -> vector<64x128xf32>
    %82 = vector.broadcast %56 : vector<1x128xf32> to vector<64x128xf32>
    %83 = arith.mulf %81, %82 : vector<64x128xf32>
    %c19 = arith.constant 19 : index
    %c0_23 = arith.constant 0 : index
    %84 = vector.load %arg2[%c19, %c0_23] : memref<112x256xf32, #tpu.memory_space<vmem>>, vector<1x128xf32>
    %85 = vector.broadcast %84 : vector<1x128xf32> to vector<64x128xf32>
    %86 = arith.mulf %83, %85 : vector<64x128xf32>
    %87 = arith.addf %80, %86 : vector<64x128xf32>
    %c20 = arith.constant 20 : index
    %c0_24 = arith.constant 0 : index
    %88 = vector.load %arg2[%c20, %c0_24] : memref<112x256xf32, #tpu.memory_space<vmem>>, vector<1x128xf32>
    %89 = vector.broadcast %88 : vector<1x128xf32> to vector<64x128xf32>
    %90 = arith.mulf %26, %89 : vector<64x128xf32>
    %91 = arith.addf %87, %90 : vector<64x128xf32>
    %c120_i32_25 = arith.constant 120 : i32
    %92 = tpu.dynamic_rotate %26 by %c120_i32_25 dim 1 : vector<64x128xf32>, i32 -> vector<64x128xf32>
    %93 = vector.broadcast %60 : vector<1x128xf32> to vector<64x128xf32>
    %94 = arith.mulf %92, %93 : vector<64x128xf32>
    %c21 = arith.constant 21 : index
    %c0_26 = arith.constant 0 : index
    %95 = vector.load %arg2[%c21, %c0_26] : memref<112x256xf32, #tpu.memory_space<vmem>>, vector<1x128xf32>
    %96 = vector.broadcast %95 : vector<1x128xf32> to vector<64x128xf32>
    %97 = arith.mulf %94, %96 : vector<64x128xf32>
    %98 = arith.addf %91, %97 : vector<64x128xf32>
    %c63_i32 = arith.constant 63 : i32
    %99 = tpu.dynamic_rotate %26 by %c63_i32 dim 0 : vector<64x128xf32>, i32 -> vector<64x128xf32>
    %100 = vector.broadcast %52 : vector<64x1xf32> to vector<64x128xf32>
    %101 = arith.mulf %99, %100 : vector<64x128xf32>
    %c8_i32_27 = arith.constant 8 : i32
    %102 = tpu.dynamic_rotate %101 by %c8_i32_27 dim 1 : vector<64x128xf32>, i32 -> vector<64x128xf32>
    %103 = vector.broadcast %56 : vector<1x128xf32> to vector<64x128xf32>
    %104 = arith.mulf %102, %103 : vector<64x128xf32>
    %c22 = arith.constant 22 : index
    %c0_28 = arith.constant 0 : index
    %105 = vector.load %arg2[%c22, %c0_28] : memref<112x256xf32, #tpu.memory_space<vmem>>, vector<1x128xf32>
    %106 = vector.broadcast %105 : vector<1x128xf32> to vector<64x128xf32>
    %107 = arith.mulf %104, %106 : vector<64x128xf32>
    %108 = arith.addf %98, %107 : vector<64x128xf32>
    %c23 = arith.constant 23 : index
    %c0_29 = arith.constant 0 : index
    %109 = vector.load %arg2[%c23, %c0_29] : memref<112x256xf32, #tpu.memory_space<vmem>>, vector<1x128xf32>
    %110 = vector.broadcast %109 : vector<1x128xf32> to vector<64x128xf32>
    %111 = arith.mulf %101, %110 : vector<64x128xf32>
    %112 = arith.addf %108, %111 : vector<64x128xf32>
    %c120_i32_30 = arith.constant 120 : i32
    %113 = tpu.dynamic_rotate %101 by %c120_i32_30 dim 1 : vector<64x128xf32>, i32 -> vector<64x128xf32>
    %114 = vector.broadcast %60 : vector<1x128xf32> to vector<64x128xf32>
    %115 = arith.mulf %113, %114 : vector<64x128xf32>
    %c24 = arith.constant 24 : index
    %c0_31 = arith.constant 0 : index
    %116 = vector.load %arg2[%c24, %c0_31] : memref<112x256xf32, #tpu.memory_space<vmem>>, vector<1x128xf32>
    %117 = vector.broadcast %116 : vector<1x128xf32> to vector<64x128xf32>
    %118 = arith.mulf %115, %117 : vector<64x128xf32>
    %119 = arith.addf %112, %118 : vector<64x128xf32>
    %c32 = arith.constant 32 : index
    %c0_32 = arith.constant 0 : index
    %120 = vector.load %arg2[%c32, %c0_32] : memref<112x256xf32, #tpu.memory_space<vmem>>, vector<1x128xf32>
    %121 = vector.broadcast %120 : vector<1x128xf32> to vector<64x128xf32>
    %122 = arith.addf %119, %121 : vector<64x128xf32>
    %cst_33 = arith.constant 0.000000e+00 : f32
    %123 = vector.broadcast %cst_33 : f32 to vector<64x128xf32>
    %124 = arith.subf %123, %122 : vector<64x128xf32>
    %125 = math.exp %124 : vector<64x128xf32>
    %cst_34 = arith.constant 1.000000e+00 : f32
    %126 = vector.broadcast %cst_34 : f32 to vector<64x128xf32>
    %127 = arith.addf %126, %125 : vector<64x128xf32>
    %128 = tpu.reciprocal %127 {approx = true} : vector<64x128xf32> -> vector<64x128xf32>
    %129 = arith.mulf %122, %128 : vector<64x128xf32>
    %130 = arith.truncf %129 : vector<64x128xf32> to vector<64x128xbf16>
    %c256 = arith.constant 256 : index
    %c0_35 = arith.constant 0 : index
    %131 = vector.load %arg3[%c256, %c0_35] : memref<1024x256xbf16, #tpu.memory_space<vmem>>, vector<128x256xbf16>
    %cst_36 = arith.constant dense<0.000000e+00> : vector<64x256xf32>
    %132 = tpu.matmul %130, %131, %cst_36 {dimension_numbers = #tpu.dot_dimension_numbers<[1], [0], [0], [1], [0, 0, 1, 1], [], []>} : vector<64x128xbf16>, vector<128x256xbf16>, vector<64x256xf32> -> vector<64x256xf32>
    %c40 = arith.constant 40 : index
    %c0_37 = arith.constant 0 : index
    %133 = vector.load %arg2[%c40, %c0_37] : memref<112x256xf32, #tpu.memory_space<vmem>>, vector<1x256xf32>
    %134 = vector.broadcast %133 : vector<1x256xf32> to vector<64x256xf32>
    %135 = arith.addf %132, %134 : vector<64x256xf32>
    %cst_38 = arith.constant 0.000000e+00 : f32
    %136 = vector.broadcast %cst_38 : f32 to vector<64x256xf32>
    %137 = arith.subf %136, %135 : vector<64x256xf32>
    %138 = math.exp %137 : vector<64x256xf32>
    %cst_39 = arith.constant 1.000000e+00 : f32
    %139 = vector.broadcast %cst_39 : f32 to vector<64x256xf32>
    %140 = arith.addf %139, %138 : vector<64x256xf32>
    %141 = tpu.reciprocal %140 {approx = true} : vector<64x256xf32> -> vector<64x256xf32>
    %142 = arith.mulf %135, %141 : vector<64x256xf32>
    %143 = tpu.iota {dimensions = array<i32: 0>} : vector<64x1xi32>
    %c16_i32_40 = arith.constant 16 : i32
    %c0_i32_41 = arith.constant 0 : i32
    %144 = arith.cmpi eq, %c16_i32_40, %c0_i32_41 : i32
    %c1_i32_42 = arith.constant 1 : i32
    %145 = arith.select %144, %c1_i32_42, %c16_i32_40 : i32
    %146 = vector.broadcast %145 : i32 to vector<64x1xi32>
    %147 = arith.remsi %143, %146 : vector<64x1xi32>
    %c0_i32_43 = arith.constant 0 : i32
    %148 = vector.broadcast %c0_i32_43 : i32 to vector<64x1xi32>
    %149 = arith.cmpi ne, %147, %148 : vector<64x1xi32>
    %c0_i32_44 = arith.constant 0 : i32
    %150 = vector.broadcast %c0_i32_44 : i32 to vector<64x1xi32>
    %151 = arith.cmpi slt, %147, %150 : vector<64x1xi32>
    %c0_i32_45 = arith.constant 0 : i32
    %152 = arith.cmpi slt, %145, %c0_i32_45 : i32
    %153 = vector.broadcast %152 : i1 to vector<64x1xi1>
    %154 = vector.broadcast %153 : vector<64x1xi1> to vector<64x1xi1>
    %155 = arith.xori %151, %154 : vector<64x1xi1>
    %156 = arith.andi %155, %149 : vector<64x1xi1>
    %157 = vector.broadcast %145 : i32 to vector<64x1xi32>
    %158 = arith.addi %147, %157 : vector<64x1xi32>
    %159 = arith.select %156, %158, %147 : vector<64x1xi1>, vector<64x1xi32>
    %160 = tpu.iota {dimensions = array<i32: 1>} : vector<1x256xi32>
    %c0_i32_46 = arith.constant 0 : i32
    %161 = vector.broadcast %c0_i32_46 : i32 to vector<64x1xi32>
    %162 = arith.cmpi sgt, %159, %161 : vector<64x1xi32>
    %163 = arith.extui %162 : vector<64x1xi1> to vector<64x1xi32>
    %164 = arith.sitofp %163 : vector<64x1xi32> to vector<64x1xf32>
    %c15_i32_47 = arith.constant 15 : i32
    %165 = vector.broadcast %c15_i32_47 : i32 to vector<64x1xi32>
    %166 = arith.cmpi slt, %159, %165 : vector<64x1xi32>
    %167 = arith.extui %166 : vector<64x1xi1> to vector<64x1xi32>
    %168 = arith.sitofp %167 : vector<64x1xi32> to vector<64x1xf32>
    %c16_i32_48 = arith.constant 16 : i32
    %169 = vector.broadcast %c16_i32_48 : i32 to vector<1x256xi32>
    %170 = arith.cmpi sge, %160, %169 : vector<1x256xi32>
    %171 = arith.extui %170 : vector<1x256xi1> to vector<1x256xi32>
    %172 = arith.sitofp %171 : vector<1x256xi32> to vector<1x256xf32>
    %c240_i32 = arith.constant 240 : i32
    %173 = vector.broadcast %c240_i32 : i32 to vector<1x256xi32>
    %174 = arith.cmpi slt, %160, %173 : vector<1x256xi32>
    %175 = arith.extui %174 : vector<1x256xi1> to vector<1x256xi32>
    %176 = arith.sitofp %175 : vector<1x256xi32> to vector<1x256xf32>
    %c1_i32_49 = arith.constant 1 : i32
    %177 = tpu.dynamic_rotate %142 by %c1_i32_49 dim 0 : vector<64x256xf32>, i32 -> vector<64x256xf32>
    %178 = vector.broadcast %164 : vector<64x1xf32> to vector<64x256xf32>
    %179 = arith.mulf %177, %178 : vector<64x256xf32>
    %c16_i32_50 = arith.constant 16 : i32
    %180 = tpu.dynamic_rotate %179 by %c16_i32_50 dim 1 : vector<64x256xf32>, i32 -> vector<64x256xf32>
    %181 = vector.broadcast %172 : vector<1x256xf32> to vector<64x256xf32>
    %182 = arith.mulf %180, %181 : vector<64x256xf32>
    %c48 = arith.constant 48 : index
    %c0_51 = arith.constant 0 : index
    %183 = vector.load %arg2[%c48, %c0_51] : memref<112x256xf32, #tpu.memory_space<vmem>>, vector<1x256xf32>
    %184 = vector.broadcast %183 : vector<1x256xf32> to vector<64x256xf32>
    %185 = arith.mulf %182, %184 : vector<64x256xf32>
    %c49 = arith.constant 49 : index
    %c0_52 = arith.constant 0 : index
    %186 = vector.load %arg2[%c49, %c0_52] : memref<112x256xf32, #tpu.memory_space<vmem>>, vector<1x256xf32>
    %187 = vector.broadcast %186 : vector<1x256xf32> to vector<64x256xf32>
    %188 = arith.mulf %179, %187 : vector<64x256xf32>
    %189 = arith.addf %185, %188 : vector<64x256xf32>
    %c240_i32_53 = arith.constant 240 : i32
    %190 = tpu.dynamic_rotate %179 by %c240_i32_53 dim 1 : vector<64x256xf32>, i32 -> vector<64x256xf32>
    %191 = vector.broadcast %176 : vector<1x256xf32> to vector<64x256xf32>
    %192 = arith.mulf %190, %191 : vector<64x256xf32>
    %c50 = arith.constant 50 : index
    %c0_54 = arith.constant 0 : index
    %193 = vector.load %arg2[%c50, %c0_54] : memref<112x256xf32, #tpu.memory_space<vmem>>, vector<1x256xf32>
    %194 = vector.broadcast %193 : vector<1x256xf32> to vector<64x256xf32>
    %195 = arith.mulf %192, %194 : vector<64x256xf32>
    %196 = arith.addf %189, %195 : vector<64x256xf32>
    %c16_i32_55 = arith.constant 16 : i32
    %197 = tpu.dynamic_rotate %142 by %c16_i32_55 dim 1 : vector<64x256xf32>, i32 -> vector<64x256xf32>
    %198 = vector.broadcast %172 : vector<1x256xf32> to vector<64x256xf32>
    %199 = arith.mulf %197, %198 : vector<64x256xf32>
    %c51 = arith.constant 51 : index
    %c0_56 = arith.constant 0 : index
    %200 = vector.load %arg2[%c51, %c0_56] : memref<112x256xf32, #tpu.memory_space<vmem>>, vector<1x256xf32>
    %201 = vector.broadcast %200 : vector<1x256xf32> to vector<64x256xf32>
    %202 = arith.mulf %199, %201 : vector<64x256xf32>
    %203 = arith.addf %196, %202 : vector<64x256xf32>
    %c52 = arith.constant 52 : index
    %c0_57 = arith.constant 0 : index
    %204 = vector.load %arg2[%c52, %c0_57] : memref<112x256xf32, #tpu.memory_space<vmem>>, vector<1x256xf32>
    %205 = vector.broadcast %204 : vector<1x256xf32> to vector<64x256xf32>
    %206 = arith.mulf %142, %205 : vector<64x256xf32>
    %207 = arith.addf %203, %206 : vector<64x256xf32>
    %c240_i32_58 = arith.constant 240 : i32
    %208 = tpu.dynamic_rotate %142 by %c240_i32_58 dim 1 : vector<64x256xf32>, i32 -> vector<64x256xf32>
    %209 = vector.broadcast %176 : vector<1x256xf32> to vector<64x256xf32>
    %210 = arith.mulf %208, %209 : vector<64x256xf32>
    %c53 = arith.constant 53 : index
    %c0_59 = arith.constant 0 : index
    %211 = vector.load %arg2[%c53, %c0_59] : memref<112x256xf32, #tpu.memory_space<vmem>>, vector<1x256xf32>
    %212 = vector.broadcast %211 : vector<1x256xf32> to vector<64x256xf32>
    %213 = arith.mulf %210, %212 : vector<64x256xf32>
    %214 = arith.addf %207, %213 : vector<64x256xf32>
    %c63_i32_60 = arith.constant 63 : i32
    %215 = tpu.dynamic_rotate %142 by %c63_i32_60 dim 0 : vector<64x256xf32>, i32 -> vector<64x256xf32>
    %216 = vector.broadcast %168 : vector<64x1xf32> to vector<64x256xf32>
    %217 = arith.mulf %215, %216 : vector<64x256xf32>
    %c16_i32_61 = arith.constant 16 : i32
    %218 = tpu.dynamic_rotate %217 by %c16_i32_61 dim 1 : vector<64x256xf32>, i32 -> vector<64x256xf32>
    %219 = vector.broadcast %172 : vector<1x256xf32> to vector<64x256xf32>
    %220 = arith.mulf %218, %219 : vector<64x256xf32>
    %c54 = arith.constant 54 : index
    %c0_62 = arith.constant 0 : index
    %221 = vector.load %arg2[%c54, %c0_62] : memref<112x256xf32, #tpu.memory_space<vmem>>, vector<1x256xf32>
    %222 = vector.broadcast %221 : vector<1x256xf32> to vector<64x256xf32>
    %223 = arith.mulf %220, %222 : vector<64x256xf32>
    %224 = arith.addf %214, %223 : vector<64x256xf32>
    %c55 = arith.constant 55 : index
    %c0_63 = arith.constant 0 : index
    %225 = vector.load %arg2[%c55, %c0_63] : memref<112x256xf32, #tpu.memory_space<vmem>>, vector<1x256xf32>
    %226 = vector.broadcast %225 : vector<1x256xf32> to vector<64x256xf32>
    %227 = arith.mulf %217, %226 : vector<64x256xf32>
    %228 = arith.addf %224, %227 : vector<64x256xf32>
    %c240_i32_64 = arith.constant 240 : i32
    %229 = tpu.dynamic_rotate %217 by %c240_i32_64 dim 1 : vector<64x256xf32>, i32 -> vector<64x256xf32>
    %230 = vector.broadcast %176 : vector<1x256xf32> to vector<64x256xf32>
    %231 = arith.mulf %229, %230 : vector<64x256xf32>
    %c56 = arith.constant 56 : index
    %c0_65 = arith.constant 0 : index
    %232 = vector.load %arg2[%c56, %c0_65] : memref<112x256xf32, #tpu.memory_space<vmem>>, vector<1x256xf32>
    %233 = vector.broadcast %232 : vector<1x256xf32> to vector<64x256xf32>
    %234 = arith.mulf %231, %233 : vector<64x256xf32>
    %235 = arith.addf %228, %234 : vector<64x256xf32>
    %c64 = arith.constant 64 : index
    %c0_66 = arith.constant 0 : index
    %236 = vector.load %arg2[%c64, %c0_66] : memref<112x256xf32, #tpu.memory_space<vmem>>, vector<1x256xf32>
    %237 = vector.broadcast %236 : vector<1x256xf32> to vector<64x256xf32>
    %238 = arith.addf %235, %237 : vector<64x256xf32>
    %cst_67 = arith.constant 0.000000e+00 : f32
    %239 = vector.broadcast %cst_67 : f32 to vector<64x256xf32>
    %240 = arith.subf %239, %238 : vector<64x256xf32>
    %241 = math.exp %240 : vector<64x256xf32>
    %cst_68 = arith.constant 1.000000e+00 : f32
    %242 = vector.broadcast %cst_68 : f32 to vector<64x256xf32>
    %243 = arith.addf %242, %241 : vector<64x256xf32>
    %244 = tpu.reciprocal %243 {approx = true} : vector<64x256xf32> -> vector<64x256xf32>
    %245 = arith.mulf %238, %244 : vector<64x256xf32>
    %246 = arith.truncf %245 : vector<64x256xf32> to vector<64x256xbf16>
    %c384 = arith.constant 384 : index
    %c0_69 = arith.constant 0 : index
    %247 = vector.load %arg3[%c384, %c0_69] : memref<1024x256xbf16, #tpu.memory_space<vmem>>, vector<256x128xbf16>
    %cst_70 = arith.constant dense<0.000000e+00> : vector<64x128xf32>
    %248 = tpu.matmul %246, %247, %cst_70 {dimension_numbers = #tpu.dot_dimension_numbers<[1], [0], [0], [1], [0, 0, 1, 1], [], []>} : vector<64x256xbf16>, vector<256x128xbf16>, vector<64x128xf32> -> vector<64x128xf32>
    %c72 = arith.constant 72 : index
    %c0_71 = arith.constant 0 : index
    %249 = vector.load %arg2[%c72, %c0_71] : memref<112x256xf32, #tpu.memory_space<vmem>>, vector<1x128xf32>
    %250 = vector.broadcast %249 : vector<1x128xf32> to vector<64x128xf32>
    %251 = arith.addf %248, %250 : vector<64x128xf32>
    %cst_72 = arith.constant 0.000000e+00 : f32
    %252 = vector.broadcast %cst_72 : f32 to vector<64x128xf32>
    %253 = arith.subf %252, %251 : vector<64x128xf32>
    %254 = math.exp %253 : vector<64x128xf32>
    %cst_73 = arith.constant 1.000000e+00 : f32
    %255 = vector.broadcast %cst_73 : f32 to vector<64x128xf32>
    %256 = arith.addf %255, %254 : vector<64x128xf32>
    %257 = tpu.reciprocal %256 {approx = true} : vector<64x128xf32> -> vector<64x128xf32>
    %258 = arith.mulf %251, %257 : vector<64x128xf32>
    %259 = tpu.iota {dimensions = array<i32: 0>} : vector<64x1xi32>
    %c16_i32_74 = arith.constant 16 : i32
    %c0_i32_75 = arith.constant 0 : i32
    %260 = arith.cmpi eq, %c16_i32_74, %c0_i32_75 : i32
    %c1_i32_76 = arith.constant 1 : i32
    %261 = arith.select %260, %c1_i32_76, %c16_i32_74 : i32
    %262 = vector.broadcast %261 : i32 to vector<64x1xi32>
    %263 = arith.remsi %259, %262 : vector<64x1xi32>
    %c0_i32_77 = arith.constant 0 : i32
    %264 = vector.broadcast %c0_i32_77 : i32 to vector<64x1xi32>
    %265 = arith.cmpi ne, %263, %264 : vector<64x1xi32>
    %c0_i32_78 = arith.constant 0 : i32
    %266 = vector.broadcast %c0_i32_78 : i32 to vector<64x1xi32>
    %267 = arith.cmpi slt, %263, %266 : vector<64x1xi32>
    %c0_i32_79 = arith.constant 0 : i32
    %268 = arith.cmpi slt, %261, %c0_i32_79 : i32
    %269 = vector.broadcast %268 : i1 to vector<64x1xi1>
    %270 = vector.broadcast %269 : vector<64x1xi1> to vector<64x1xi1>
    %271 = arith.xori %267, %270 : vector<64x1xi1>
    %272 = arith.andi %271, %265 : vector<64x1xi1>
    %273 = vector.broadcast %261 : i32 to vector<64x1xi32>
    %274 = arith.addi %263, %273 : vector<64x1xi32>
    %275 = arith.select %272, %274, %263 : vector<64x1xi1>, vector<64x1xi32>
    %276 = tpu.iota {dimensions = array<i32: 1>} : vector<1x128xi32>
    %c0_i32_80 = arith.constant 0 : i32
    %277 = vector.broadcast %c0_i32_80 : i32 to vector<64x1xi32>
    %278 = arith.cmpi sgt, %275, %277 : vector<64x1xi32>
    %279 = arith.extui %278 : vector<64x1xi1> to vector<64x1xi32>
    %280 = arith.sitofp %279 : vector<64x1xi32> to vector<64x1xf32>
    %c15_i32_81 = arith.constant 15 : i32
    %281 = vector.broadcast %c15_i32_81 : i32 to vector<64x1xi32>
    %282 = arith.cmpi slt, %275, %281 : vector<64x1xi32>
    %283 = arith.extui %282 : vector<64x1xi1> to vector<64x1xi32>
    %284 = arith.sitofp %283 : vector<64x1xi32> to vector<64x1xf32>
    %c8_i32_82 = arith.constant 8 : i32
    %285 = vector.broadcast %c8_i32_82 : i32 to vector<1x128xi32>
    %286 = arith.cmpi sge, %276, %285 : vector<1x128xi32>
    %287 = arith.extui %286 : vector<1x128xi1> to vector<1x128xi32>
    %288 = arith.sitofp %287 : vector<1x128xi32> to vector<1x128xf32>
    %c120_i32_83 = arith.constant 120 : i32
    %289 = vector.broadcast %c120_i32_83 : i32 to vector<1x128xi32>
    %290 = arith.cmpi slt, %276, %289 : vector<1x128xi32>
    %291 = arith.extui %290 : vector<1x128xi1> to vector<1x128xi32>
    %292 = arith.sitofp %291 : vector<1x128xi32> to vector<1x128xf32>
    %c1_i32_84 = arith.constant 1 : i32
    %293 = tpu.dynamic_rotate %258 by %c1_i32_84 dim 0 : vector<64x128xf32>, i32 -> vector<64x128xf32>
    %294 = vector.broadcast %280 : vector<64x1xf32> to vector<64x128xf32>
    %295 = arith.mulf %293, %294 : vector<64x128xf32>
    %c8_i32_85 = arith.constant 8 : i32
    %296 = tpu.dynamic_rotate %295 by %c8_i32_85 dim 1 : vector<64x128xf32>, i32 -> vector<64x128xf32>
    %297 = vector.broadcast %288 : vector<1x128xf32> to vector<64x128xf32>
    %298 = arith.mulf %296, %297 : vector<64x128xf32>
    %c80 = arith.constant 80 : index
    %c0_86 = arith.constant 0 : index
    %299 = vector.load %arg2[%c80, %c0_86] : memref<112x256xf32, #tpu.memory_space<vmem>>, vector<1x128xf32>
    %300 = vector.broadcast %299 : vector<1x128xf32> to vector<64x128xf32>
    %301 = arith.mulf %298, %300 : vector<64x128xf32>
    %c81 = arith.constant 81 : index
    %c0_87 = arith.constant 0 : index
    %302 = vector.load %arg2[%c81, %c0_87] : memref<112x256xf32, #tpu.memory_space<vmem>>, vector<1x128xf32>
    %303 = vector.broadcast %302 : vector<1x128xf32> to vector<64x128xf32>
    %304 = arith.mulf %295, %303 : vector<64x128xf32>
    %305 = arith.addf %301, %304 : vector<64x128xf32>
    %c120_i32_88 = arith.constant 120 : i32
    %306 = tpu.dynamic_rotate %295 by %c120_i32_88 dim 1 : vector<64x128xf32>, i32 -> vector<64x128xf32>
    %307 = vector.broadcast %292 : vector<1x128xf32> to vector<64x128xf32>
    %308 = arith.mulf %306, %307 : vector<64x128xf32>
    %c82 = arith.constant 82 : index
    %c0_89 = arith.constant 0 : index
    %309 = vector.load %arg2[%c82, %c0_89] : memref<112x256xf32, #tpu.memory_space<vmem>>, vector<1x128xf32>
    %310 = vector.broadcast %309 : vector<1x128xf32> to vector<64x128xf32>
    %311 = arith.mulf %308, %310 : vector<64x128xf32>
    %312 = arith.addf %305, %311 : vector<64x128xf32>
    %c8_i32_90 = arith.constant 8 : i32
    %313 = tpu.dynamic_rotate %258 by %c8_i32_90 dim 1 : vector<64x128xf32>, i32 -> vector<64x128xf32>
    %314 = vector.broadcast %288 : vector<1x128xf32> to vector<64x128xf32>
    %315 = arith.mulf %313, %314 : vector<64x128xf32>
    %c83 = arith.constant 83 : index
    %c0_91 = arith.constant 0 : index
    %316 = vector.load %arg2[%c83, %c0_91] : memref<112x256xf32, #tpu.memory_space<vmem>>, vector<1x128xf32>
    %317 = vector.broadcast %316 : vector<1x128xf32> to vector<64x128xf32>
    %318 = arith.mulf %315, %317 : vector<64x128xf32>
    %319 = arith.addf %312, %318 : vector<64x128xf32>
    %c84 = arith.constant 84 : index
    %c0_92 = arith.constant 0 : index
    %320 = vector.load %arg2[%c84, %c0_92] : memref<112x256xf32, #tpu.memory_space<vmem>>, vector<1x128xf32>
    %321 = vector.broadcast %320 : vector<1x128xf32> to vector<64x128xf32>
    %322 = arith.mulf %258, %321 : vector<64x128xf32>
    %323 = arith.addf %319, %322 : vector<64x128xf32>
    %c120_i32_93 = arith.constant 120 : i32
    %324 = tpu.dynamic_rotate %258 by %c120_i32_93 dim 1 : vector<64x128xf32>, i32 -> vector<64x128xf32>
    %325 = vector.broadcast %292 : vector<1x128xf32> to vector<64x128xf32>
    %326 = arith.mulf %324, %325 : vector<64x128xf32>
    %c85 = arith.constant 85 : index
    %c0_94 = arith.constant 0 : index
    %327 = vector.load %arg2[%c85, %c0_94] : memref<112x256xf32, #tpu.memory_space<vmem>>, vector<1x128xf32>
    %328 = vector.broadcast %327 : vector<1x128xf32> to vector<64x128xf32>
    %329 = arith.mulf %326, %328 : vector<64x128xf32>
    %330 = arith.addf %323, %329 : vector<64x128xf32>
    %c63_i32_95 = arith.constant 63 : i32
    %331 = tpu.dynamic_rotate %258 by %c63_i32_95 dim 0 : vector<64x128xf32>, i32 -> vector<64x128xf32>
    %332 = vector.broadcast %284 : vector<64x1xf32> to vector<64x128xf32>
    %333 = arith.mulf %331, %332 : vector<64x128xf32>
    %c8_i32_96 = arith.constant 8 : i32
    %334 = tpu.dynamic_rotate %333 by %c8_i32_96 dim 1 : vector<64x128xf32>, i32 -> vector<64x128xf32>
    %335 = vector.broadcast %288 : vector<1x128xf32> to vector<64x128xf32>
    %336 = arith.mulf %334, %335 : vector<64x128xf32>
    %c86 = arith.constant 86 : index
    %c0_97 = arith.constant 0 : index
    %337 = vector.load %arg2[%c86, %c0_97] : memref<112x256xf32, #tpu.memory_space<vmem>>, vector<1x128xf32>
    %338 = vector.broadcast %337 : vector<1x128xf32> to vector<64x128xf32>
    %339 = arith.mulf %336, %338 : vector<64x128xf32>
    %340 = arith.addf %330, %339 : vector<64x128xf32>
    %c87 = arith.constant 87 : index
    %c0_98 = arith.constant 0 : index
    %341 = vector.load %arg2[%c87, %c0_98] : memref<112x256xf32, #tpu.memory_space<vmem>>, vector<1x128xf32>
    %342 = vector.broadcast %341 : vector<1x128xf32> to vector<64x128xf32>
    %343 = arith.mulf %333, %342 : vector<64x128xf32>
    %344 = arith.addf %340, %343 : vector<64x128xf32>
    %c120_i32_99 = arith.constant 120 : i32
    %345 = tpu.dynamic_rotate %333 by %c120_i32_99 dim 1 : vector<64x128xf32>, i32 -> vector<64x128xf32>
    %346 = vector.broadcast %292 : vector<1x128xf32> to vector<64x128xf32>
    %347 = arith.mulf %345, %346 : vector<64x128xf32>
    %c88 = arith.constant 88 : index
    %c0_100 = arith.constant 0 : index
    %348 = vector.load %arg2[%c88, %c0_100] : memref<112x256xf32, #tpu.memory_space<vmem>>, vector<1x128xf32>
    %349 = vector.broadcast %348 : vector<1x128xf32> to vector<64x128xf32>
    %350 = arith.mulf %347, %349 : vector<64x128xf32>
    %351 = arith.addf %344, %350 : vector<64x128xf32>
    %c96 = arith.constant 96 : index
    %c0_101 = arith.constant 0 : index
    %352 = vector.load %arg2[%c96, %c0_101] : memref<112x256xf32, #tpu.memory_space<vmem>>, vector<1x128xf32>
    %353 = vector.broadcast %352 : vector<1x128xf32> to vector<64x128xf32>
    %354 = arith.addf %351, %353 : vector<64x128xf32>
    %cst_102 = arith.constant 0.000000e+00 : f32
    %355 = vector.broadcast %cst_102 : f32 to vector<64x128xf32>
    %356 = arith.subf %355, %354 : vector<64x128xf32>
    %357 = math.exp %356 : vector<64x128xf32>
    %cst_103 = arith.constant 1.000000e+00 : f32
    %358 = vector.broadcast %cst_103 : f32 to vector<64x128xf32>
    %359 = arith.addf %358, %357 : vector<64x128xf32>
    %360 = tpu.reciprocal %359 {approx = true} : vector<64x128xf32> -> vector<64x128xf32>
    %361 = arith.mulf %354, %360 : vector<64x128xf32>
    %362 = arith.truncf %13 : vector<64x128xf32> to vector<64x128xbf16>
    %c640 = arith.constant 640 : index
    %c0_104 = arith.constant 0 : index
    %363 = vector.load %arg3[%c640, %c0_104] : memref<1024x256xbf16, #tpu.memory_space<vmem>>, vector<128x256xbf16>
    %cst_105 = arith.constant dense<0.000000e+00> : vector<64x256xf32>
    %364 = tpu.matmul %362, %363, %cst_105 {dimension_numbers = #tpu.dot_dimension_numbers<[1], [0], [0], [1], [0, 0, 1, 1], [], []>} : vector<64x128xbf16>, vector<128x256xbf16>, vector<64x256xf32> -> vector<64x256xf32>
    %365 = arith.truncf %26 : vector<64x128xf32> to vector<64x128xbf16>
    %c768 = arith.constant 768 : index
    %c0_106 = arith.constant 0 : index
    %366 = vector.load %arg3[%c768, %c0_106] : memref<1024x256xbf16, #tpu.memory_space<vmem>>, vector<128x256xbf16>
    %cst_107 = arith.constant dense<0.000000e+00> : vector<64x256xf32>
    %367 = tpu.matmul %365, %366, %cst_107 {dimension_numbers = #tpu.dot_dimension_numbers<[1], [0], [0], [1], [0, 0, 1, 1], [], []>} : vector<64x128xbf16>, vector<128x256xbf16>, vector<64x256xf32> -> vector<64x256xf32>
    %368 = arith.addf %364, %367 : vector<64x256xf32>
    %369 = arith.truncf %361 : vector<64x128xf32> to vector<64x128xbf16>
    %c896 = arith.constant 896 : index
    %c0_108 = arith.constant 0 : index
    %370 = vector.load %arg3[%c896, %c0_108] : memref<1024x256xbf16, #tpu.memory_space<vmem>>, vector<128x256xbf16>
    %cst_109 = arith.constant dense<0.000000e+00> : vector<64x256xf32>
    %371 = tpu.matmul %369, %370, %cst_109 {dimension_numbers = #tpu.dot_dimension_numbers<[1], [0], [0], [1], [0, 0, 1, 1], [], []>} : vector<64x128xbf16>, vector<128x256xbf16>, vector<64x256xf32> -> vector<64x256xf32>
    %372 = arith.addf %368, %371 : vector<64x256xf32>
    %c104 = arith.constant 104 : index
    %c0_110 = arith.constant 0 : index
    %373 = vector.load %arg2[%c104, %c0_110] : memref<112x256xf32, #tpu.memory_space<vmem>>, vector<1x256xf32>
    %374 = vector.broadcast %373 : vector<1x256xf32> to vector<64x256xf32>
    %375 = arith.addf %372, %374 : vector<64x256xf32>
    %cst_111 = arith.constant 0.000000e+00 : f32
    %376 = vector.broadcast %cst_111 : f32 to vector<64x256xf32>
    %377 = arith.subf %376, %375 : vector<64x256xf32>
    %378 = math.exp %377 : vector<64x256xf32>
    %cst_112 = arith.constant 1.000000e+00 : f32
    %379 = vector.broadcast %cst_112 : f32 to vector<64x256xf32>
    %380 = arith.addf %379, %378 : vector<64x256xf32>
    %381 = tpu.reciprocal %380 {approx = true} : vector<64x256xf32> -> vector<64x256xf32>
    %382 = arith.mulf %375, %381 : vector<64x256xf32>
    %c0_113 = arith.constant 0 : index
    %c0_114 = arith.constant 0 : index
    %383 = vector.load %arg4[%c0_113, %c0_114] : memref<64x256xf32, #tpu.memory_space<vmem>>, vector<64x256xf32>
    tpu.vector_store %arg4[%c0_113, %c0_114], %382 {strides = array<i32>} : memref<64x256xf32, #tpu.memory_space<vmem>>, vector<64x256xf32>,
    return
  }
  func.func @transform_0(%arg0: i32) -> (i32, i32) {
    %c0_i32 = arith.constant 0 : i32
    %c0_i32_0 = arith.constant 0 : i32
    return %arg0, %c0_i32 : i32, i32
  }
  func.func @transform_1(%arg0: i32) -> (i32, i32) {
    %c0_i32 = arith.constant 0 : i32
    %c0_i32_0 = arith.constant 0 : i32
    %c0_i32_1 = arith.constant 0 : i32
    return %c0_i32, %c0_i32_0 : i32, i32
  }
  func.func @transform_2(%arg0: i32) -> (i32, i32) {
    %c0_i32 = arith.constant 0 : i32
    %c0_i32_0 = arith.constant 0 : i32
    %c0_i32_1 = arith.constant 0 : i32
    return %c0_i32, %c0_i32_0 : i32, i32
  }
  func.func @transform_3(%arg0: i32) -> (i32, i32) {
    %c0_i32 = arith.constant 0 : i32
    %c0_i32_0 = arith.constant 0 : i32
    return %arg0, %c0_i32 : i32, i32
  }
}

</mosaic_0001>

<bundles_post_ra>
// kernel: forward.1
= control target key start
LH: loop header
LB: loop body
LE: loop exit
PB: predicated region body
PF: predicated region fallthrough
CT: control target
= control target key end

     0   :  { %s4592_s12 = smov 0   ;;  %s7670_s0 = inlined_call_operand.vmem [shape: f32[128,128], index: 0, kind: input, shape index: {}]   ;;  %s7671_s1 = inlined_call_operand.vmem [shape: f32[112,256], index: 1, kind: input, shape index: {}]   ;;  %s7672_s2 = inlined_call_operand.vmem [shape: bf16[1024,256], index: 2, kind: input, shape index: {}]   ;;  %s7673_s3 = inlined_call_operand.vmem [shape: f32[128,256], index: 3, kind: output, shape index: {}]  }
   0x1 LB: > { %s3771_s13 = sadd.s32 4294967295, %s4564_s12   ;;  %p3775_p0 = scmp.ge.s32.totalorder %s4564_s12, 1  ;;  %s4564_s12 = sphi %s4592_s12, %s13_s12  }
   0x2   : > { %p138_p1 = scmp.lt.s32.totalorder %s4564_s12, 3 }
   0x4   : > { %p139_p2 = pnand %p3775_p0, %p138_p1 }
   0x6   : > { %142 = sbr.rel (%p139_p2) target bundleno = 1872 (0x750), region = 32 }
   0xd   : > { %v4078_v0 = vld [vmem:[%s7672_s2] ss:$8 sps:$4 sm:$0xff]   ;;  %v4079_v1 = vld [vmem:[%s7672_s2 + $0x10] ss:$8 sps:$4 sm:$0xff]   ;;  %s3776_s22 = sshll.u32 %s3771_s13, 3  ;;  %v545_v28 = vlaneseq  ;;  %v4566_v30 = vmov 0.0  }
   0xe   : > { %3968 = vmatprep.subr.bf16.mxu1 %v4078_v0  ;;  %v4080_v2 = vld [vmem:[%s7672_s2 + $0x20] ss:$8 sps:$4 sm:$0xff]   ;;  %v4081_v3 = vld [vmem:[%s7672_s2 + $0x30] ss:$8 sps:$4 sm:$0xff]   ;;  %p164_p3 = scmp.lt.s32.totalorder %s3776_s22, 15  ;;  %s4567_s30 = smov 8  }
   0xf   : > { %3969 = vmatpush3.bf16.msra.mxu1 %v4078_v0  ;;  %v4082_v4 = vld [vmem:[%s7672_s2 + $0x40] ss:$8 sps:$4 sm:$0xff]   ;;  %v4083_v7 = vld [vmem:[%s7672_s2 + $0x50] ss:$8 sps:$4 sm:$0xff]   ;;  %v4655_v29 = vand.u32 127, %v545_v28  ;;  %s4568_s4 = smov 120  }
  0x10   : > { %3970 = vmatprep.subr.bf16.mxu1 %v4079_v1  ;;  %s8001_s22 = smov (!%p164_p3, %s3776_s22), 15  ;;  %v4084_v9 = vld [vmem:[%s7672_s2 + $0x60] ss:$8 sps:$4 sm:$0xff]   ;;  %v4085_v10 = vld [vmem:[%s7672_s2 + $0x70] ss:$8 sps:$4 sm:$0xff]   ;;  %s4570_s8 = smov 16  }
  0x11   : > { %s3777_s25 = sshll.u32 %s8001_s22, 3  ;;  %v4086_v13 = vld [vmem:[%s7672_s2 + $0x80] ss:$8 sps:$4 sm:$0xff]   ;;  %v4087_v17 = vld [vmem:[%s7672_s2 + $0x90] ss:$8 sps:$4 sm:$0xff]   ;;  %7786 = vst [vmem:[#allocation2_spill] sm:$0xff] %v4655_v29 }
  0x12   : > { %s167_s28 = scalar_lea.vmem %s7670_s0, %s3777_s25  ;;  %v4088_v21 = vld [vmem:[%s7672_s2 + $0xa0] ss:$8 sps:$4 sm:$0xff]   ;;  %v4089_v23 = vld [vmem:[%s7672_s2 + $0xb0] ss:$8 sps:$4 sm:$0xff]   ;;  %vm700_vm0 = vcmp.ge.s32.totalorder %v4655_v29, 8  ;;  %vm703_vm1 = vcmp.lt.s32.totalorder %v4655_v29, 120 }
  0x13   : > { %3971 = vmatpush3.bf16.msra.mxu1 %v4079_v1  ;;  %v177_v5 = vld [vmem:[%s167_s28] sm:$0xff]  ;;  %v178_v6 = vld [vmem:[%s167_s28 + $0x8] sm:$0xff]  ;;  %v179_v11 = vld [vmem:[%s167_s28 + $0x10] sm:$0xff]  ;;  %v4660_v31 = vsel %vm700_vm0, 1.0, %v4566_v30  ;;  %v4663_v32 = vsel %vm703_vm1, 1.0, %v4566_v30  ;;  %v1384_v33 = vadd.s32 128, %v4655_v29 }
  0x14   : > { %3972 = vmatprep.subr.bf16.mxu1 %v4080_v2  ;;  %v185_v8 = vpack.c.bf16 %v178_v6, %v177_v5  ;;  %v180_v12 = vld [vmem:[%s167_s28 + $0x18] sm:$0xff]  ;;  %v181_v14 = vld [vmem:[%s167_s28 + $0x20] sm:$0xff]  ;;  %v182_v15 = vld [vmem:[%s167_s28 + $0x28] sm:$0xff]  ;;  %7787 = vst [vmem:[#allocation3_spill] sm:$0xff] %v4660_v31  ;;  %vm1385_vm2 = vcmp.ge.s32.totalorder %v4655_v29, 16  ;;  %s4571_s9 = smov 112  }
  0x15   : > { %v186_v16 = vpack.c.bf16 %v180_v12, %v179_v11  ;;  %v187_v18 = vpack.c.bf16 %v182_v15, %v181_v14  ;;  %v183_v19 = vld [vmem:[%s167_s28 + $0x30] sm:$0xff]  ;;  %v184_v20 = vld [vmem:[%s167_s28 + $0x38] sm:$0xff]  ;;  %v4090_v24 = vld [vmem:[%s7672_s2 + $0xc0] ss:$8 sps:$4 sm:$0xff]   ;;  %7788 = vst [vmem:[#allocation4_spill] sm:$0xff] %v4663_v32  ;;  %v4668_v34 = vsel %vm1385_vm2, 1.0, %v4566_v30 }
  0x16   : > { %3984 = vmatprep.mubr.bf16.mxu1 %v185_v8  ;;  %v188_v22 = vpack.c.bf16 %v184_v20, %v183_v19  ;;  %v4091_v25 = vld [vmem:[%s7672_s2 + $0xd0] ss:$8 sps:$4 sm:$0xff]   ;;  %v4092_v26 = vld [vmem:[%s7672_s2 + $0xe0] ss:$8 sps:$4 sm:$0xff]   ;;  %7789 = vst [vmem:[#allocation5_spill] sm:$0xff] %v4668_v34  ;;  %vm1392_vm3 = vcmp.lt.s32.totalorder %v1384_v33, 240 }
  0x17   : > { %3973 = vmatpush3.bf16.msra.mxu1 %v4080_v2  ;;  %v4093_v27 = vld [vmem:[%s7672_s2 + $0xf0] ss:$8 sps:$4 sm:$0xff]   ;;  %v4671_v35 = vsel %vm1392_vm3, 1.0, %v4566_v30  ;;  %v205_v36 = vld [vmem:[%s7671_s1] ss:$0 sm:$0xff] }
  0x18   : > { %3974 = vmatprep.subr.bf16.mxu1 %v4081_v3  ;;  %7790 = vst [vmem:[#allocation6_spill] sm:$0xff] %v4671_v35 }
  0x1b   : > { %3975 = vmatpush3.bf16.msra.mxu1 %v4081_v3 }
  0x1c   : > { %3976 = vmatprep.subr.bf16.mxu1 %v4082_v4 }
  0x1f   : > { %3977 = vmatpush3.bf16.msra.mxu1 %v4082_v4 }
  0x20   : > { %3978 = vmatprep.subr.bf16.mxu1 %v4083_v7 }
  0x23   : > { %3979 = vmatpush3.bf16.msra.mxu1 %v4083_v7 }
  0x24   : > { %3980 = vmatprep.subr.bf16.mxu1 %v4084_v9 }
  0x27   : > { %3981 = vmatpush3.bf16.msra.mxu1 %v4084_v9 }
  0x28   : > { %3982 = vmatprep.subr.bf16.mxu1 %v4085_v10 }
  0x2b   : > { %3983 = vmatpush3.bf16.msra.mxu1 %v4085_v10 }
  0x2c   : > { %3992 = vmatprep.subr.bf16.mxu1 %v4086_v13 }
  0x2e   : > { %3985 = vmatmul.mubr.bf16.vlgmr.msra.gmra.mrb[0].mxu1 %v186_v16 }
  0x2f   : > { %3993 = vmatpush3.bf16.msra.mxu1 %v4086_v13  ;;  %3988 = vmatprep.mubr.bf16.mxu1 %v187_v18 }
  0x30   : > { %3994 = vmatprep.subr.bf16.mxu1 %v4087_v17 }
  0x33   : > { %3995 = vmatpush3.bf16.msra.mxu1 %v4087_v17 }
  0x34   : > { %3996 = vmatprep.subr.bf16.mxu1 %v4088_v21 }
  0x36   : > { %3989 = vmatmul.mubr.bf16.gmra.mrb[4].mxu1 %v188_v22 }
  0x37   : > { %3997 = vmatpush3.bf16.msra.mxu1 %v4088_v21  ;;  %4008 = vmatprep.mubr.bf16.mxu1 %v185_v8 }
  0x38   : > { %3998 = vmatprep.subr.bf16.mxu1 %v4089_v23 }
  0x3b   : > { %3999 = vmatpush3.bf16.msra.mxu1 %v4089_v23 }
  0x3c   : > { %4000 = vmatprep.subr.bf16.mxu1 %v4090_v24 }
  0x3f   : > { %4001 = vmatpush3.bf16.msra.mxu1 %v4090_v24 }
  0x40   : > { %4002 = vmatprep.subr.bf16.mxu1 %v4091_v25 }
  0x43   : > { %4003 = vmatpush3.bf16.msra.mxu1 %v4091_v25 }
  0x44   : > { %4004 = vmatprep.subr.bf16.mxu1 %v4092_v26 }
  0x47   : > { %4005 = vmatpush3.bf16.msra.mxu1 %v4092_v26 }
  0x48   : > { %4006 = vmatprep.subr.bf16.mxu1 %v4093_v27 }
  0x4b   : > { %4007 = vmatpush3.bf16.msra.mxu1 %v4093_v27 }
  0x4e   : > { %4009 = vmatmul.mubr.bf16.vlgmr.msra.gmra.mrb[8].mxu1 %v186_v16 }
  0x4f   : > { %4012 = vmatprep.mubr.bf16.mxu1 %v187_v18 }
  0x56   : > { %4013 = vmatmul.mubr.bf16.gmra.mrb[12].mxu1 %v188_v22  ;;  %v4703_v22 = vld [vmem:[%s7671_s1 + $0x10] ss:$0 sm:$0xff] }
 0x101   : > { %v3986_v37 = vpop.f32.mrb[0].mxu1 }
 0x102   : > { %v4676_v38 = vadd.f32 %v3986_v37, %v205_v36  ;;  %v288_v39 = vpop.f32.mrb[1].mxu1 }
 0x103   : > { %v4678_v40 = vadd.f32 %v288_v39, %v205_v36  ;;  %v3987_v41 = vpop.f32.mrb[2].mxu1 }
 0x104   : > { %v321_v42 = vsub.f32 0.0, %v4676_v38  ;;  %v4681_v43 = vadd.f32 %v3987_v41, %v205_v36  ;;  %v291_v44 = vpop.f32.mrb[3].mxu1 }
 0x105   : > { %v319_v45 = vsub.f32 0.0, %v4678_v40  ;;  %v4684_v46 = vadd.f32 %v291_v44, %v205_v36 }
 0x106   : > { %v331_v47 = vmul.f32 1.442695, %v321_v42  ;;  %v322_v48 = vsub.f32 0.0, %v4681_v43 }
 0x107   : > { %v327_v49 = vmul.f32 1.442695, %v319_v45  ;;  %v320_v50 = vsub.f32 0.0, %v4684_v46 }
 0x108   : > { %4206 = vpow2.f32 %v331_v47  ;;  %v333_v51 = vmul.f32 1.442695, %v322_v48  ;;  %v5110_v47 = vld [vmem:[%s7671_s1 + $0x21] ss:$0 sm:$0xff] }
 0x109   : > { %4208 = vpow2.f32 %v327_v49  ;;  %v329_v52 = vmul.f32 1.442695, %v320_v50  ;;  %v3990_v53 = vpop.f32.mrb[4].mxu1 }
 0x10a   : > { %4210 = vpow2.f32 %v333_v51  ;;  %v4688_v54 = vadd.f32 %v3990_v53, %v205_v36  ;;  %v304_v55 = vpop.f32.mrb[5].mxu1 }
 0x10b   : > { %4212 = vpow2.f32 %v329_v52  ;;  %v4690_v56 = vadd.f32 %v304_v55, %v205_v36  ;;  %v3991_v57 = vpop.f32.mrb[6].mxu1 }
 0x10c   : > { %v325_v58 = vsub.f32 0.0, %v4688_v54  ;;  %v4693_v59 = vadd.f32 %v3991_v57, %v205_v36  ;;  %v307_v60 = vpop.f32.mrb[7].mxu1 }
 0x10d   : > { %v323_v61 = vsub.f32 0.0, %v4690_v56  ;;  %v4696_v62 = vadd.f32 %v307_v60, %v205_v36 }
 0x10e   : > { %v339_v63 = vmul.f32 1.442695, %v325_v58  ;;  %v326_v0 = vsub.f32 0.0, %v4693_v59 }
 0x10f   : > { %v335_v1 = vmul.f32 1.442695, %v323_v61  ;;  %v324_v2 = vsub.f32 0.0, %v4696_v62 }
 0x110   : > { %4214 = vpow2.f32 %v339_v63  ;;  %v341_v3 = vmul.f32 1.442695, %v326_v0 }
 0x111   : > { %4216 = vpow2.f32 %v335_v1  ;;  %v337_v4 = vmul.f32 1.442695, %v324_v2 }
 0x112   : > { %v4207_v5 = vpop.eup %4206  ;;  %4218 = vpow2.f32 %v341_v3 }
 0x113   : > { %v4209_v6 = vpop.eup %4208  ;;  %v345_v7 = vadd.f32 1.0, %v4207_v5  ;;  %4220 = vpow2.f32 %v337_v4 }
 0x114   : > { %v4211_v8 = vpop.eup %4210  ;;  %v343_v9 = vadd.f32 1.0, %v4209_v6 }
 0x115   : > { %v4213_v10 = vpop.eup %4212  ;;  %4222 = vrcp.f32 %v345_v7  ;;  %v346_v11 = vadd.f32 1.0, %v4211_v8 }
 0x116   : > { %4224 = vrcp.f32 %v343_v9  ;;  %v344_v12 = vadd.f32 1.0, %v4213_v10 }
 0x117   : > { %4226 = vrcp.f32 %v346_v11 }
 0x118   : > { %4228 = vrcp.f32 %v344_v12 }
 0x11a   : > { %v4215_v13 = vpop.eup %4214 }
 0x11b   : > { %v4217_v14 = vpop.eup %4216  ;;  %v349_v15 = vadd.f32 1.0, %v4215_v13 }
 0x11c   : > { %v4219_v16 = vpop.eup %4218  ;;  %v347_v17 = vadd.f32 1.0, %v4217_v14 }
 0x11d   : > { %v4221_v18 = vpop.eup %4220  ;;  %4230 = vrcp.f32 %v349_v15  ;;  %v350_v19 = vadd.f32 1.0, %v4219_v16 }
 0x11e   : > { %4232 = vrcp.f32 %v347_v17  ;;  %v348_v20 = vadd.f32 1.0, %v4221_v18 }
 0x11f   : > { %v4223_v21 = vpop.eup %4222  ;;  %4234 = vrcp.f32 %v350_v19 }
 0x120   : > { %v4225_v23 = vpop.eup %4224  ;;  %4236 = vrcp.f32 %v348_v20  ;;  %v4706_v27 = vmul.f32 %v4223_v21, %v4676_v38 }
 0x121   : > { %v4227_v24 = vpop.eup %4226  ;;  %v4010_v25 = vpop.f32.mrb[8].mxu1  ;;  %v4715_v39 = vmul.f32 %v4225_v23, %v4678_v40 }
 0x122   : > { %v4229_v26 = vpop.eup %4228  ;;  %v4709_v33 = vmul.f32 %v4227_v24, %v4681_v43  ;;  %v4712_v36 = vadd.f32 %v4010_v25, %v4703_v22  ;;  %v466_v37 = vpop.f32.mrb[9].mxu1 }
 0x123   : > { %v4718_v41 = vmul.f32 %v4229_v26, %v4684_v46  ;;  %v4721_v42 = vadd.f32 %v466_v37, %v4703_v22  ;;  %v4011_v44 = vpop.f32.mrb[10].mxu1 }
 0x124   : > { %v499_v38 = vsub.f32 0.0, %v4712_v36  ;;  %v4725_v45 = vadd.f32 %v4011_v44, %v4703_v22  ;;  %v469_v43 = vpop.f32.mrb[11].mxu1  ;;  %v4770_v44 = vshrl.u32 %v545_v28, 7 }
 0x125   : > { %v497_v48 = vsub.f32 0.0, %v4721_v42  ;;  %v4733_v46 = vadd.f32 %v469_v43, %v4703_v22 }
 0x126   : > { %v509_v49 = vmul.f32 1.442695, %v499_v38  ;;  %v500_v50 = vsub.f32 0.0, %v4725_v45  ;;  %7795 = vst [vmem:[#allocation11_spill] sm:$0xff] %v4770_v44  ;;  %vm929_vm4 = vcmp.lt.s32.totalorder %v4770_v44, 7  ;;  %vm714_vm5 = vcmp.lt.s32.totalorder %v4770_v44, 1 }
 0x127   : > { %v4231_v51 = vpop.eup %4230  ;;  %v505_v52 = vmul.f32 1.442695, %v497_v48  ;;  %v498_v53 = vsub.f32 0.0, %v4733_v46 }
 0x128   : > { %v4233_v55 = vpop.eup %4232  ;;  %4238 = vpow2.f32 %v509_v49  ;;  %v511_v57 = vmul.f32 1.442695, %v500_v50  ;;  %v4740_v0 = vmul.f32 %v4231_v51, %v4688_v54  ;;  %v5104_v54 = vld [vmem:[%s7671_s1 + $0x20] ss:$0 sm:$0xff] }
 0x129   : > { %v4235_v58 = vpop.eup %4234  ;;  %4240 = vpow2.f32 %v505_v52  ;;  %v507_v60 = vmul.f32 1.442695, %v498_v53  ;;  %v4737_v61 = vpop.f32.mrb[12].mxu1  ;;  %v4746_v3 = vmul.f32 %v4233_v55, %v4690_v56 }
 0x12a   : > { %v4237_v63 = vpop.eup %4236  ;;  %7791 = vst [vmem:[#allocation7_spill] sm:$0xff] %v4740_v0  ;;  %v4743_v1 = vmul.f32 %v4235_v58, %v4693_v59  ;;  %4242 = vpow2.f32 %v511_v57  ;;  %v482_v2 = vpop.f32.mrb[13].mxu1  ;;  %v5117_v58 = vld [vmem:[%s7671_s1 + $0x22] ss:$0 sm:$0xff] }
 0x12b   : > { %7793 = vst [vmem:[#allocation9_spill] sm:$0xff] %v4746_v3  ;;  %v4749_v4 = vmul.f32 %v4237_v63, %v4696_v62  ;;  %4244 = vpow2.f32 %v507_v60  ;;  %v4752_v5 = vadd.f32 %v482_v2, %v4703_v22  ;;  %v4015_v6 = vpop.f32.mrb[14].mxu1 }
 0x12c   : > { %7792 = vst [vmem:[#allocation8_spill] sm:$0xff] %v4743_v1  ;;  %v485_v7 = vpop.f32.mrb[15].mxu1  ;;  %v4764_v25 = vadd.f32 %v4015_v6, %v4703_v22 }
 0x12d   : > { %7794 = vst [vmem:[#allocation10_spill] sm:$0xff] %v4749_v4  ;;  %v501_v59 = vsub.f32 0.0, %v4752_v5  ;;  %v4758_v8 = vadd.f32 %v485_v7, %v4703_v22 }
 0x12e   : > { %v504_v28 = vsub.f32 0.0, %v4764_v25 }
 0x12f   : > { %v513_v9 = vmul.f32 1.442695, %v501_v59  ;;  %v502_v62 = vsub.f32 0.0, %v4758_v8 }
 0x130   : > { %v519_v2 = vmul.f32 1.442695, %v504_v28 }
 0x131   : > { %4246 = vpow2.f32 %v513_v9  ;;  %v515_v10 = vmul.f32 1.442695, %v502_v62 }
 0x132   : > { %v4239_v11 = vpop.eup %4238 }
 0x133   : > { %v4241_v12 = vpop.eup %4240  ;;  %v523_v13 = vadd.f32 1.0, %v4239_v11  ;;  %4248 = vpow2.f32 %v515_v10 }
 0x134   : > { %v4243_v14 = vpop.eup %4242  ;;  %v521_v15 = vadd.f32 1.0, %v4241_v12 }
 0x135   : > { %v4245_v16 = vpop.eup %4244  ;;  %4250 = vrcp.f32 %v523_v13  ;;  %v524_v17 = vadd.f32 1.0, %v4243_v14 }
 0x136   : > { %4252 = vrcp.f32 %v521_v15  ;;  %v522_v18 = vadd.f32 1.0, %v4245_v16 }
 0x137   : > { %4254 = vrcp.f32 %v524_v17 }
 0x138   : > { %4256 = vrcp.f32 %v522_v18 }
 0x13b   : > { %v4247_v19 = vpop.eup %4246 }
 0x13c   : > { %v525_v20 = vadd.f32 1.0, %v4247_v19 }
 0x13d   : > { %v4249_v21 = vpop.eup %4248 }
 0x13e   : > { %4258 = vrcp.f32 %v525_v20  ;;  %v526_v23 = vadd.f32 1.0, %v4249_v21  ;;  %v547_v20 = vadd.s32 8, %v4770_v44 }
 0x13f   : > { %v4251_v24 = vpop.eup %4250 }
 0x140   : > { %v4253_v26 = vpop.eup %4252  ;;  %v4767_v37 = vmul.f32 %v4251_v24, %v4712_v36  ;;  %4260 = vrcp.f32 %v526_v23  ;;  %v565_v21 = vand.u32 15, %v547_v20 }
 0x141   : > { %v4255_v38 = vpop.eup %4254  ;;  %v4773_v43 = vmul.f32 %v4253_v26, %v4721_v42  ;;  %4262 = vpow2.f32 %v519_v2 }
 0x142   : > { %v4257_v48 = vpop.eup %4256  ;;  %v4776_v49 = vmul.f32 %v4255_v38, %v4725_v45  ;;  %826 = vrot.lane.b32.xlu0 %v4767_v37, %s4567_s30  ;;  %v923_v42 = vrot.slane %v4767_v37, 1  ;;  %v708_v50 = vrot.slane %v4767_v37, 7  ;;  %vm677_vm6 = vcmp.lt.s32.totalorder %v565_v21, 15 }
 0x143   : > { %v4783_v36 = vmul.f32 %v4257_v48, %v4733_v46  ;;  %v706_v52 = vrot.slane %v4773_v43, 7  ;;  %v921_v55 = vrot.slane %v4773_v43, 1  ;;  %v4882_v28 = vsel %vm677_vm6, 1.0, %v4566_v30 }
 0x144   : > { %828 = vrot.lane.b32.xlu1 %v4776_v49, %s4567_s30  ;;  %v924_v45 = vrot.slane %v4776_v49, 1  ;;  %v709_v51 = vrot.slane %v4776_v49, 7  ;;  %7796 = vst [vmem:[#allocation12_spill] sm:$0xff] %v4882_v28 }
 0x145   : > { %v707_v46 = vrot.slane %v4783_v36, 7  ;;  %v922_v57 = vrot.slane %v4783_v36, 1 }
 0x146   : > { %884 = vrot.lane.b32.xlu0 %v4767_v37, %s4568_s4  ;;  %v4804_v60 = vsel %vm929_vm4, %v923_v42, %v924_v45  ;;  %v4808_v63 = vsel %vm714_vm5, %v708_v50, %v709_v51 }
 0x147   : > { %v4814_v6 = vsel %vm714_vm5, %v706_v52, %v707_v46  ;;  %v4820_v7 = vsel %vm929_vm4, %v921_v55, %v922_v57  ;;  %v935_v9 = vsel %vm929_vm4, %v922_v57, %v923_v42  ;;  %v720_v10 = vsel %vm714_vm5, %v707_v46, %v708_v50 }
 0x148   : > { %v4259_v59 = vpop.eup %4258  ;;  %886 = vrot.lane.b32.xlu1 %v4776_v49, %s4568_s4  ;;  %v4892_v50 = vmul.f32 %v4882_v28, %v935_v9  ;;  %v549_v57 = vadd.s32 24, %v4770_v44  ;;  %v766_v34 = vmul.f32 %v5110_v47, %v4814_v6 }
 0x149   : > { %v4827_v62 = vmul.f32 %v4259_v59, %v4752_v5 }
 0x14a   : > { %v4261_v11 = vpop.eup %4260  ;;  %822 = vrot.lane.b32.xlu0 %v4773_v43, %s4567_s30 }
 0x14b   : > { %v4834_v12 = vmul.f32 %v4261_v11, %v4758_v8  ;;  %v710_v13 = vrot.slane %v4827_v62, 7  ;;  %v925_v14 = vrot.slane %v4827_v62, 1  ;;  %v4850_v8 = vadd.f32 %v4737_v61, %v4703_v22  ;;  %v4263_v24 = vpop.eup %4262 }
 0x14c   : > { %824 = vrot.lane.b32.xlu1 %v4783_v36, %s4567_s30  ;;  %v548_v22 = vadd.s32 16, %v4770_v44  ;;  %v528_v48 = vadd.f32 1.0, %v4263_v24 }
 0x14d   : > { %v711_v5 = vrot.slane %v4834_v12, 7  ;;  %v718_v15 = vsel %vm714_vm5, %v709_v51, %v710_v13  ;;  %v933_v16 = vsel %vm929_vm4, %v924_v45, %v925_v14  ;;  %v926_v17 = vrot.slane %v4834_v12, 1 }
 0x14e   : > { %880 = vrot.lane.b32.xlu0 %v4773_v43, %s4568_s4  ;;  %v503_v61 = vsub.f32 0.0, %v4850_v8  ;;  %v572_v26 = vand.u32 15, %v548_v22  ;;  %v550_v45 = vadd.s32 32, %v4770_v44 }
 0x14f   : > { %v4856_v18 = vsel %vm714_vm5, %v710_v13, %v711_v5  ;;  %v4862_v19 = vsel %vm929_vm4, %v925_v14, %v926_v17  ;;  %v558_v14 = vand.u32 15, %v4770_v44 }
 0x150   : > { %882 = vrot.lane.b32.xlu1 %v4783_v36, %s4568_s4  ;;  %v517_v38 = vmul.f32 1.442695, %v503_v61  ;;  %vm654_vm7 = vcmp.gt.s32.totalorder %v572_v26, 0  ;;  %v586_v46 = vand.u32 15, %v550_v45  ;;  %v551_v45 = vadd.s32 40, %v4770_v44 }
 0x151   : > { %v4887_v42 = vsel %vm654_vm7, 1.0, %v4566_v30  ;;  %vm652_vm10 = vcmp.gt.s32.totalorder %v558_v14, 0  ;;  %v553_v14 = vadd.s32 56, %v4770_v44 }
 0x152   : > { %950 = vrot.lane.b32.xlu0 %v4804_v60, %s4567_s30  ;;  %4264 = vpow2.f32 %v517_v38  ;;  %7797 = vst [vmem:[#allocation13_spill] sm:$0xff] %v4887_v42  ;;  %v4898_v51 = vmul.f32 %v4887_v42, %v720_v10  ;;  %vm656_vm8 = vcmp.gt.s32.totalorder %v586_v46, 0  ;;  %v579_v10 = vand.u32 15, %v549_v57  ;;  %v4094_v57 = vld [vmem:[%s7672_s2 + $0x104] ss:$8 sps:$4 sm:$0xff]  }
 0x153   : > { %4266 = vrcp.f32 %v528_v48  ;;  %v4913_v13 = vsel %vm656_vm8, 1.0, %v4566_v30  ;;  %v4932_v61 = vsel %vm652_vm10, 1.0, %v4566_v30  ;;  %v552_v38 = vadd.s32 48, %v4770_v44  ;;  %1215 = vmatprep.subr.bf16.mxu0 %v4094_v57 }
 0x154   : > { %737 = vrot.lane.b32.xlu1 %v4808_v63, %s4567_s30  ;;  %7798 = vst [vmem:[#allocation14_spill] sm:$0xff] %v4913_v13  ;;  %v4921_v20 = vmul.f32 %v4913_v13, %v718_v15  ;;  %vm679_vm9 = vcmp.lt.s32.totalorder %v579_v10, 15  ;;  %7800 = vst [vmem:[#allocation16_spill] sm:$0xff] %v4932_v61  ;;  %v593_v46 = vand.u32 15, %v551_v45 }
 0x156   : > { %733 = vrot.lane.b32.xlu0 %v4814_v6, %s4567_s30  ;;  %vm681_vm12 = vcmp.lt.s32.totalorder %v593_v46, 15  ;;  %v4100_v46 = vld [vmem:[%s7672_s2 + $0x124] ss:$8 sps:$4 sm:$0xff]  }
 0x158   : > { %787 = vrot.lane.b32.xlu1 %v4808_v63, %s4568_s4 }
 0x15a   : > { %946 = vrot.lane.b32.xlu0 %v4820_v7, %s4567_s30 }
 0x15c   : > { %783 = vrot.lane.b32.xlu1 %v4814_v6, %s4568_s4  ;;  %v4265_v2 = vpop.eup %4264 }
 0x15d   : > { %v4267_v59 = vpop.eup %4266  ;;  %v527_v9 = vadd.f32 1.0, %v4265_v2 }
 0x15e   : > { %1004 = vrot.lane.b32.xlu0 %v4820_v7, %s4568_s4  ;;  %v4910_v11 = vmul.f32 %v4267_v59, %v4764_v25  ;;  %v4927_v25 = vsel %vm679_vm9, 1.0, %v4566_v30 }
 0x15f   : > { %4268 = vrcp.f32 %v527_v9  ;;  %7799 = vst [vmem:[#allocation15_spill] sm:$0xff] %v4927_v25  ;;  %v4941_v21 = vmul.f32 %v4927_v25, %v933_v16  ;;  %v4096_v9 = vld [vmem:[%s7672_s2 + $0x100] ss:$8 sps:$4 sm:$0xff]  }
 0x160   : > { %948 = vrot.lane.b32.xlu1 %v4892_v50, %s4567_s30  ;;  %v713_v22 = vrot.slane %v4910_v11, 7  ;;  %1216 = vmatpush1.bf16.msra.mxu0 %v4096_v9  ;;  %v928_v45 = vrot.slane %v4910_v11, 1  ;;  %v4103_v9 = vld [vmem:[%s7672_s2 + $0x134] ss:$8 sps:$4 sm:$0xff]  }
 0x162   : > { %735 = vrot.lane.b32.xlu0 %v4898_v51, %s4567_s30  ;;  %v722_v15 = vsel %vm714_vm5, %v713_v22, %v706_v52 }
 0x163   : > { %v4946_v24 = vmul.f32 %v4932_v61, %v722_v15  ;;  %v4099_v15 = vld [vmem:[%s7672_s2 + $0x110] ss:$8 sps:$4 sm:$0xff]  }
 0x164   : > { %1006 = vrot.lane.b32.xlu1 %v4892_v50, %s4568_s4 }
 0x166   : > { %785 = vrot.lane.b32.xlu0 %v4898_v51, %s4568_s4 }
 0x168   : > { %832 = vrot.lane.b32.xlu1 %v4834_v12, %s4567_s30 }
 0x169   : > { %v4269_v26 = vpop.eup %4268 }
 0x16a   : > { %830 = vrot.lane.b32.xlu0 %v4827_v62, %s4567_s30  ;;  %v4953_v52 = vmul.f32 %v4269_v26, %v4850_v8  ;;  %v600_v8 = vand.u32 15, %v552_v38  ;;  %v5009_v26 = vsel %vm681_vm12, 1.0, %v4566_v30  ;;  %v607_v38 = vand.u32 15, %v553_v14  ;;  %v4105_v14 = vld [vmem:[%s7672_s2 + $0x130] ss:$8 sps:$4 sm:$0xff]  }
 0x16b   : > { %7802 = vst [vmem:[#allocation18_spill] sm:$0xff] %v5009_v26 }
 0x16c   : > { %741 = vrot.lane.b32.xlu1 %v4856_v18, %s4567_s30  ;;  %v712_v16 = vrot.slane %v4953_v52, 7  ;;  %vm658_vm11 = vcmp.gt.s32.totalorder %v600_v8, 0  ;;  %vm683_vm13 = vcmp.lt.s32.totalorder %v607_v38, 15  ;;  %v4112_v38 = vld [vmem:[%s7672_s2 + $0x164] ss:$8 sps:$4 sm:$0xff]  }
 0x16d   : > { %v4982_v2 = vsel %vm658_vm11, 1.0, %v4566_v30  ;;  %v5034_v57 = vsel %vm683_vm13, 1.0, %v4566_v30 }
 0x16e   : > { %739 = vrot.lane.b32.xlu0 %v4921_v20, %s4567_s30  ;;  %v4965_v48 = vsel %vm714_vm5, %v712_v16, %v713_v22  ;;  %7801 = vst [vmem:[#allocation17_spill] sm:$0xff] %v4982_v2  ;;  %v716_v59 = vsel %vm714_vm5, %v711_v5, %v712_v16  ;;  %v4097_v5 = vld [vmem:[%s7672_s2 + $0x114] ss:$8 sps:$4 sm:$0xff]   ;;  %v927_v22 = vrot.slane %v4953_v52, 1  ;;  %7803 = vst [vmem:[#allocation19_spill] sm:$0xff] %v5034_v57 }
 0x16f   : > { %v4996_v10 = vmul.f32 %v4982_v2, %v716_v59  ;;  %1217 = vmatprep.subr.bf16.mxu0 %v4097_v5  ;;  %v937_v59 = vsel %vm929_vm4, %v928_v45, %v921_v55  ;;  %v4106_v5 = vld [vmem:[%s7672_s2 + $0x144] ss:$8 sps:$4 sm:$0xff]   ;;  %v5132_v2 = vld [vmem:[%s7671_s1 + $0x23] ss:$0 sm:$0xff] }
 0x170   : > { %791 = vrot.lane.b32.xlu1 %v4856_v18, %s4568_s4  ;;  %v931_v16 = vsel %vm929_vm4, %v926_v17, %v927_v22  ;;  %1218 = vmatpush1.bf16.msra.mxu0 %v4099_v15  ;;  %v4102_v17 = vld [vmem:[%s7672_s2 + $0x120] ss:$8 sps:$4 sm:$0xff]   ;;  %v5050_v30 = vsel %vm929_vm4, %v927_v22, %v928_v45  ;;  %v5055_v55 = vmul.f32 %v5034_v57, %v937_v59  ;;  %v4109_v15 = vld [vmem:[%s7672_s2 + $0x154] ss:$8 sps:$4 sm:$0xff]   ;;  %v4120_v59 = vld [vmem:[%s7672_s2 + $0x304] ss:$8 sps:$4 sm:$0xff]  }
 0x171   : > { %v5020_v8 = vmul.f32 %v5009_v26, %v931_v16  ;;  %1219 = vmatprep.subr.bf16.mxu0 %v4100_v46  ;;  %v4108_v22 = vld [vmem:[%s7672_s2 + $0x140] ss:$8 sps:$4 sm:$0xff]   ;;  %v4111_v16 = vld [vmem:[%s7672_s2 + $0x150] ss:$8 sps:$4 sm:$0xff]   ;;  %v4115_v46 = vld [vmem:[%s7672_s2 + $0x174] ss:$8 sps:$4 sm:$0xff]   ;;  %v768_v57 = vmul.f32 %v5110_v47, %v4808_v63 }
 0x172   : > { %789 = vrot.lane.b32.xlu0 %v4921_v20, %s4568_s4  ;;  %v4114_v45 = vld [vmem:[%s7672_s2 + $0x160] ss:$8 sps:$4 sm:$0xff]  }
 0x174   : > { %952 = vrot.lane.b32.xlu1 %v4941_v21, %s4567_s30  ;;  %1220 = vmatpush1.bf16.msra.mxu0 %v4102_v17  ;;  %v4117_v17 = vld [vmem:[%s7672_s2 + $0x170] ss:$8 sps:$4 sm:$0xff]  }
 0x175   : > { %1221 = vmatprep.subr.bf16.mxu0 %v4103_v9  ;;  %v7674_v9 = vmov 0  }
 0x176   : > { %731 = vrot.lane.b32.xlu0 %v4946_v24, %s4567_s30  ;;  %1247 = vmatprep.mubr.bf16.mxu0 %v7674_v9 }
 0x178   : > { %1010 = vrot.lane.b32.xlu1 %v4941_v21, %s4568_s4  ;;  %1222 = vmatpush1.bf16.msra.mxu0 %v4105_v14 }
 0x179   : > { %1223 = vmatprep.subr.bf16.mxu0 %v4106_v5 }
 0x17a   : > { %1008 = vrot.lane.b32.xlu0 %v4804_v60, %s4568_s4 }
 0x17c   : > { %781 = vrot.lane.b32.xlu1 %v4946_v24, %s4568_s4  ;;  %1224 = vmatpush1.bf16.msra.mxu0 %v4108_v22 }
 0x17d   : > { %1225 = vmatprep.subr.bf16.mxu0 %v4109_v15 }
 0x17e   : > { %888 = vrot.lane.b32.xlu0 %v4827_v62, %s4568_s4 }
 0x180   : > { %745 = vrot.lane.b32.xlu1 %v4965_v48, %s4567_s30  ;;  %1226 = vmatpush1.bf16.msra.mxu0 %v4111_v16 }
 0x181   : > { %1227 = vmatprep.subr.bf16.mxu0 %v4112_v38 }
 0x182   : > { %954 = vrot.lane.b32.xlu0 %v4862_v19, %s4567_s30 }
 0x184   : > { %890 = vrot.lane.b32.xlu1 %v4834_v12, %s4568_s4  ;;  %1228 = vmatpush1.bf16.msra.mxu0 %v4114_v45 }
 0x185   : > { %1229 = vmatprep.subr.bf16.mxu0 %v4115_v46 }
 0x186   : > { %834 = vrot.lane.b32.xlu0 %v4953_v52, %s4567_s30 }
 0x188   : > { %795 = vrot.lane.b32.xlu1 %v4965_v48, %s4568_s4  ;;  %1230 = vmatpush1.bf16.msra.mxu0 %v4117_v17 }
 0x189   : > { %3157 = vmatprep.subr.bf16.mxu0 %v4120_v59 }
 0x18a   : > { %1012 = vrot.lane.b32.xlu0 %v4862_v19, %s4568_s4 }
 0x18c   : > { %836 = vrot.lane.b32.xlu1 %v4910_v11, %s4567_s30 }
 0x18e   : > { %743 = vrot.lane.b32.xlu0 %v4996_v10, %s4567_s30 }
 0x190   : > { %894 = vrot.lane.b32.xlu1 %v4910_v11, %s4568_s4 }
 0x192   : > { %793 = vrot.lane.b32.xlu0 %v4996_v10, %s4568_s4 }
 0x194   : > { %956 = vrot.lane.b32.xlu1 %v5020_v8, %s4567_s30 }
 0x196   : > { %892 = vrot.lane.b32.xlu0 %v4953_v52, %s4568_s4 }
 0x198   : > { %1014 = vrot.lane.b32.xlu1 %v5020_v8, %s4568_s4 }
 0x19a   : > { %958 = vrot.lane.b32.xlu0 %v5050_v30, %s4567_s30 }
 0x19c   : > { %960 = vrot.lane.b32.xlu1 %v5055_v55, %s4567_s30 }
 0x19e   : > { %1016 = vrot.lane.b32.xlu0 %v5050_v30, %s4568_s4 }
 0x1a0   : > { %1018 = vrot.lane.b32.xlu1 %v5055_v55, %s4568_s4 }
 0x1b4   : > { %v827_v14 = vpop.permute.xlu0 %826 }
 0x1b6   : > { %v829_v5 = vpop.permute.xlu1 %828 }
 0x1b8   : > { %v5091_v22 = vpop.permute.xlu0 %884 }
 0x1ba   : > { %v5093_v15 = vpop.permute.xlu1 %886 }
 0x1bc   : > { %v5095_v16 = vpop.permute.xlu0 %822 }
 0x1be   : > { %v825_v38 = vpop.permute.xlu1 %824 }
 0x1c0   : > { %v5097_v45 = vpop.permute.xlu0 %880 }
 0x1c2   : > { %v883_v46 = vpop.permute.xlu1 %882 }
 0x1c4   : > { %v5099_v17 = vpop.permute.xlu0 %950 }
 0x1c6   : > { %v738_v59 = vpop.permute.xlu1 %737 }
 0x1c7   : > { %v750_v56 = vmul.f32 %v4660_v31, %v738_v59  ;;  %v841_v59 = vmul.f32 %v4660_v31, %v829_v5 }
 0x1c8   : > { %v734_v40 = vpop.permute.xlu0 %733 }
 0x1c9   : > { %v759_v23 = vmul.f32 %v5104_v54, %v750_v56  ;;  %v748_v53 = vmul.f32 %v4660_v31, %v734_v40  ;;  %v850_v5 = vmul.f32 %v5132_v2, %v841_v59 }
 0x1ca   : > { %v788_v9 = vpop.permute.xlu1 %787 }
 0x1cb   : > { %v800_v26 = vmul.f32 %v4663_v32, %v788_v9  ;;  %v776_v35 = vadd.f32 %v768_v57, %v759_v23  ;;  %v757_v56 = vmul.f32 %v5104_v54, %v748_v53  ;;  %v839_v9 = vmul.f32 %v4660_v31, %v825_v38  ;;  %v5142_v53 = vld [vmem:[%s7671_s1 + $0x24] ss:$0 sm:$0xff] }
 0x1cc   : > { %v5123_v61 = vpop.permute.xlu0 %946  ;;  %v867_v13 = vmul.f32 %v5142_v53, %v4776_v49  ;;  %v865_v44 = vmul.f32 %v5142_v53, %v4783_v36  ;;  %v866_v1 = vmul.f32 %v5142_v53, %v4767_v37 }
 0x1cd   : > { %v809_v40 = vmul.f32 %v5117_v58, %v800_v26  ;;  %v774_v6 = vadd.f32 %v766_v34, %v757_v56  ;;  %v848_v38 = vmul.f32 %v5132_v2, %v839_v9  ;;  %v5158_v56 = vld [vmem:[%s7671_s1 + $0x25] ss:$0 sm:$0xff]  ;;  %v5167_v9 = vld [vmem:[%s7671_s1 + $0x26] ss:$0 sm:$0xff] }
 0x1ce   : > { %v784_v63 = vpop.permute.xlu1 %783 }
 0x1cf   : > { %v817_v29 = vadd.f32 %v809_v40, %v776_v35  ;;  %v798_v23 = vmul.f32 %v4663_v32, %v784_v63  ;;  %v897_v35 = vmul.f32 %v4663_v32, %v883_v46 }
 0x1d0   : > { %v5137_v57 = vpop.permute.xlu0 %1004 }
 0x1d1   : > { %v858_v26 = vadd.f32 %v850_v5, %v817_v29  ;;  %v807_v25 = vmul.f32 %v5117_v58, %v798_v23 }
 0x1d2   : > { %v949_v59 = vpop.permute.xlu1 %948 }
 0x1d3   : > { %v815_v40 = vadd.f32 %v807_v25, %v774_v6  ;;  %v5149_v63 = vadd.f32 %v867_v13, %v858_v26  ;;  %v963_v29 = vmul.f32 %v4660_v31, %v949_v59  ;;  %v906_v25 = vmul.f32 %v5158_v56, %v897_v35 }
 0x1d4   : > { %v736_v28 = vpop.permute.xlu0 %735  ;;  %v840_v6 = vmul.f32 %v4660_v31, %v827_v14 }
 0x1d5   : > { %v856_v42 = vadd.f32 %v848_v38, %v815_v40  ;;  %v749_v34 = vmul.f32 %v4660_v31, %v736_v28  ;;  %v767_v28 = vmul.f32 %v5110_v47, %v4898_v51  ;;  %v972_v59 = vmul.f32 %v5167_v9, %v963_v29 }
 0x1d6   : > { %v5160_v5 = vpop.permute.xlu1 %1006  ;;  %v849_v14 = vmul.f32 %v5132_v2, %v840_v6 }
 0x1d7   : > { %v873_v13 = vadd.f32 %v865_v44, %v856_v42  ;;  %v758_v46 = vmul.f32 %v5104_v54, %v749_v34  ;;  %v5177_v44 = vld [vmem:[%s7671_s1 + $0x27] ss:$0 sm:$0xff] }
 0x1d8   : > { %v786_v23 = vpop.permute.xlu0 %785  ;;  %v989_v35 = vmul.f32 %v5177_v44, %v4892_v50 }
 0x1d9   : > { %v914_v26 = vadd.f32 %v906_v25, %v873_v13  ;;  %v799_v38 = vmul.f32 %v4663_v32, %v786_v23  ;;  %v775_v34 = vadd.f32 %v767_v28, %v758_v46  ;;  %v898_v13 = vmul.f32 %v4663_v32, %v5091_v22 }
 0x1da   : > { %v833_v42 = vpop.permute.xlu1 %832  ;;  %v964_v46 = vmul.f32 %v4660_v31, %v5099_v17  ;;  %v899_v22 = vmul.f32 %v4663_v32, %v5093_v15  ;;  %v769_v15 = vmul.f32 %v5110_v47, %v4921_v20 }
 0x1db   : > { %v980_v40 = vadd.f32 %v972_v59, %v914_v26  ;;  %v808_v51 = vmul.f32 %v5117_v58, %v799_v38  ;;  %v907_v38 = vmul.f32 %v5158_v56, %v898_v13 }
 0x1dc   : > { %v831_v0 = vpop.permute.xlu0 %830 }
 0x1dd   : > { %v5183_v25 = vadd.f32 %v989_v35, %v980_v40  ;;  %v816_v29 = vadd.f32 %v808_v51, %v775_v34  ;;  %v843_v35 = vmul.f32 %v4660_v31, %v833_v42  ;;  %v770_v34 = vmul.f32 %v5110_v47, %v4856_v18 }
 0x1de   : > { %v742_v23 = vpop.permute.xlu1 %741  ;;  %v990_v18 = vmul.f32 %v5177_v44, %v4804_v60 }
 0x1df   : > { %v857_v3 = vadd.f32 %v849_v14, %v816_v29  ;;  %v752_v50 = vmul.f32 %v4660_v31, %v742_v23 }
 0x1e0   : > { %v740_v28 = vpop.permute.xlu0 %739 }
 0x1e1   : > { %v874_v26 = vadd.f32 %v866_v1, %v857_v3  ;;  %v761_v6 = vmul.f32 %v5104_v54, %v752_v50  ;;  %v751_v59 = vmul.f32 %v4660_v31, %v740_v28  ;;  %v973_v1 = vmul.f32 %v5167_v9, %v964_v46 }
 0x1e2   : > { %v792_v40 = vpop.permute.xlu1 %791  ;;  %v842_v3 = vmul.f32 %v4660_v31, %v831_v0  ;;  %v908_v50 = vmul.f32 %v5158_v56, %v899_v22  ;;  %v852_v28 = vmul.f32 %v5132_v2, %v843_v35 }
 0x1e3   : > { %v760_v51 = vmul.f32 %v5104_v54, %v751_v59  ;;  %v802_v17 = vmul.f32 %v4663_v32, %v792_v40  ;;  %v915_v29 = vadd.f32 %v907_v38, %v874_v26  ;;  %v778_v13 = vadd.f32 %v770_v34, %v761_v6 }
 0x1e4   : > { %v790_v14 = vpop.permute.xlu0 %789  ;;  %v851_v20 = vmul.f32 %v5132_v2, %v842_v3  ;;  %v916_v38 = vadd.f32 %v908_v50, %v5149_v63  ;;  %v5226_v63 = vld [vmem:[%s7671_s1 + $0x30] ss:$0 sm:$0xff] }
 0x1e5   : > { %v811_v42 = vmul.f32 %v5117_v58, %v802_v17  ;;  %v801_v23 = vmul.f32 %v4663_v32, %v790_v14  ;;  %v981_v59 = vadd.f32 %v973_v1, %v915_v29  ;;  %v777_v0 = vadd.f32 %v769_v15, %v760_v51 }
 0x1e6   : > { %v953_v46 = vpop.permute.xlu1 %952  ;;  %v869_v51 = vmul.f32 %v5142_v53, %v4834_v12  ;;  %v991_v1 = vmul.f32 %v5177_v44, %v4941_v21  ;;  %v1021_v15 = vmul.f32 %v4663_v32, %v5160_v5 }
 0x1e7   : > { %v819_v40 = vadd.f32 %v811_v42, %v778_v13  ;;  %v810_v26 = vmul.f32 %v5117_v58, %v801_v23  ;;  %v965_v6 = vmul.f32 %v4660_v31, %v953_v46  ;;  %v998_v17 = vadd.f32 %v990_v18, %v981_v59 }
 0x1e8   : > { %v732_v34 = vpop.permute.xlu0 %731  ;;  %v868_v18 = vmul.f32 %v5142_v53, %v4827_v62  ;;  %v838_v46 = vmul.f32 %v4660_v31, %v5095_v16  ;;  %v765_v59 = vmul.f32 %v5110_v47, %v4946_v24 }
 0x1e9   : > { %v860_v14 = vadd.f32 %v852_v28, %v819_v40  ;;  %v818_v60 = vadd.f32 %v810_v26, %v777_v0  ;;  %v974_v22 = vmul.f32 %v5167_v9, %v965_v6  ;;  %v747_v35 = vmul.f32 %v4660_v31, %v732_v34 }
 0x1ea   : > { %v1011_v4 = vpop.permute.xlu1 %1010 }
 0x1eb   : > { %v859_v29 = vadd.f32 %v851_v20, %v818_v60  ;;  %v982_v13 = vadd.f32 %v974_v22, %v916_v38  ;;  %v1023_v3 = vmul.f32 %v4663_v32, %v1011_v4  ;;  %v756_v42 = vmul.f32 %v5104_v54, %v747_v35  ;;  %v5246_v20 = vld [vmem:[%s7671_s1 + $0x40] ss:$0 sm:$0xff] }
 0x1ec   : > { %v1009_v23 = vpop.permute.xlu0 %1008  ;;  %v5233_v50 = vadd.f32 %v869_v51, %v860_v14  ;;  %v1030_v38 = vmul.f32 %v5226_v63, %v1021_v15  ;;  %v847_v35 = vmul.f32 %v5132_v2, %v838_v46 }
 0x1ed   : > { %v999_v21 = vadd.f32 %v991_v1, %v982_v13  ;;  %v1032_v28 = vmul.f32 %v5226_v63, %v1023_v3  ;;  %v1022_v4 = vmul.f32 %v4663_v32, %v1009_v23  ;;  %v876_v0 = vadd.f32 %v868_v18, %v859_v29 }
 0x1ee   : > { %v782_v5 = vpop.permute.xlu1 %781  ;;  %v773_v34 = vadd.f32 %v765_v59, %v756_v42  ;;  %v1038_v51 = vadd.f32 %v1030_v38, %v5183_v25  ;;  %v896_v29 = vmul.f32 %v4663_v32, %v5097_v45  ;;  %v962_v18 = vmul.f32 %v4660_v31, %v5123_v61 }
 0x1ef   : > { %v1040_v40 = vadd.f32 %v1032_v28, %v999_v21  ;;  %v1031_v26 = vmul.f32 %v5226_v63, %v1022_v4  ;;  %v797_v6 = vmul.f32 %v4663_v32, %v782_v5 }
 0x1f0   : > { %v889_v14 = vpop.permute.xlu0 %888  ;;  %v5269_v45 = vadd.f32 %v5246_v20, %v1038_v51  ;;  %v905_v59 = vmul.f32 %v5158_v56, %v896_v29  ;;  %v971_v61 = vmul.f32 %v5167_v9, %v962_v18 }
 0x1f1   : > { %v5250_v16 = vadd.f32 %v5246_v20, %v1040_v40  ;;  %v1039_v24 = vadd.f32 %v1031_v26, %v998_v17  ;;  %v806_v60 = vmul.f32 %v5117_v58, %v797_v6  ;;  %v900_v22 = vmul.f32 %v4663_v32, %v889_v14 }
 0x1f2   : > { %v746_v1 = vpop.permute.xlu1 %745  ;;  %v864_v17 = vmul.f32 %v5142_v53, %v4773_v43 }
 0x1f3   : > { %v1057_v13 = vsub.f32 0.0, %v5250_v16  ;;  %v5260_v3 = vadd.f32 %v5246_v20, %v1039_v24  ;;  %v814_v15 = vadd.f32 %v806_v60, %v773_v34  ;;  %v909_v42 = vmul.f32 %v5158_v56, %v900_v22 }
 0x1f4   : > { %v955_v23 = vpop.permute.xlu0 %954  ;;  %v1020_v34 = vmul.f32 %v4663_v32, %v5137_v57  ;;  %v992_v24 = vmul.f32 %v5177_v44, %v4862_v19  ;;  %v1055_v60 = vsub.f32 0.0, %v5269_v45  ;;  %v754_v29 = vmul.f32 %v4660_v31, %v746_v1 }
 0x1f5   : > { %v1068_v25 = vmul.f32 1.442695, %v1057_v13  ;;  %v1056_v21 = vsub.f32 0.0, %v5260_v3  ;;  %v855_v28 = vadd.f32 %v847_v35, %v814_v15  ;;  %v966_v4 = vmul.f32 %v4660_v31, %v955_v23 }
 0x1f6   : > { %v891_v46 = vpop.permute.xlu1 %890  ;;  %v917_v26 = vadd.f32 %v909_v42, %v876_v0  ;;  %v988_v0 = vmul.f32 %v5177_v44, %v4820_v7  ;;  %v1064_v19 = vmul.f32 1.442695, %v1055_v60  ;;  %v772_v1 = vmul.f32 %v5110_v47, %v4965_v48 }
 0x1f7   : > { %4270 = vpow2.f32 %v1068_v25  ;;  %v1066_v5 = vmul.f32 1.442695, %v1056_v21  ;;  %v872_v40 = vadd.f32 %v864_v17, %v855_v28  ;;  %v975_v6 = vmul.f32 %v5167_v9, %v966_v4 }
 0x1f8   : > { %v835_v38 = vpop.permute.xlu0 %834  ;;  %v1029_v17 = vmul.f32 %v5226_v63, %v1020_v34  ;;  %v763_v25 = vmul.f32 %v5104_v54, %v754_v29  ;;  %v901_v4 = vmul.f32 %v4663_v32, %v891_v46 }
 0x1f9   : > { %4272 = vpow2.f32 %v1066_v5  ;;  %v913_v14 = vadd.f32 %v905_v59, %v872_v40  ;;  %v983_v22 = vadd.f32 %v975_v6, %v917_v26 }
 0x1fa   : > { %v796_v35 = vpop.permute.xlu1 %795  ;;  %4274 = vpow2.f32 %v1064_v19  ;;  %v780_v60 = vadd.f32 %v772_v1, %v763_v25  ;;  %v910_v29 = vmul.f32 %v5158_v56, %v901_v4  ;;  %v871_v1 = vmul.f32 %v5142_v53, %v4910_v11 }
 0x1fb   : > { %v979_v51 = vadd.f32 %v971_v61, %v913_v14  ;;  %v1000_v13 = vadd.f32 %v992_v24, %v983_v22  ;;  %v804_v57 = vmul.f32 %v4663_v32, %v796_v35 }
 0x1fc   : > { %v1013_v15 = vpop.permute.xlu0 %1012 }
 0x1fd   : > { %v1024_v42 = vmul.f32 %v4663_v32, %v1013_v15  ;;  %v996_v23 = vadd.f32 %v988_v0, %v979_v51  ;;  %v813_v40 = vmul.f32 %v5117_v58, %v804_v57  ;;  %v771_v15 = vmul.f32 %v5110_v47, %v4996_v10 }
 0x1fe   : > { %v837_v18 = vpop.permute.xlu1 %836  ;;  %v918_v47 = vadd.f32 %v910_v29, %v5233_v50 }
 0x1ff   : > { %v1033_v21 = vmul.f32 %v5226_v63, %v1024_v42  ;;  %v845_v7 = vmul.f32 %v4660_v31, %v837_v18  ;;  %v1037_v28 = vadd.f32 %v1029_v17, %v996_v23  ;;  %v844_v17 = vmul.f32 %v4660_v31, %v835_v38 }
 0x200   : > { %v744_v59 = vpop.permute.xlu0 %743 }
 0x201   : > { %v4271_v5 = vpop.eup %4270  ;;  %v1041_v26 = vadd.f32 %v1033_v21, %v1000_v13  ;;  %v753_v6 = vmul.f32 %v4660_v31, %v744_v59  ;;  %v5295_v61 = vadd.f32 %v5246_v20, %v1037_v28  ;;  %v854_v22 = vmul.f32 %v5132_v2, %v845_v7 }
 0x202   : > { %v1081_v34 = vadd.f32 1.0, %v4271_v5  ;;  %v895_v14 = vpop.permute.xlu1 %894  ;;  %v821_v13 = vadd.f32 %v813_v40, %v780_v60  ;;  %v853_v38 = vmul.f32 %v5132_v2, %v844_v17  ;;  %v993_v40 = vmul.f32 %v5177_v44, %v5020_v8 }
 0x203   : > { %v4273_v24 = vpop.eup %4272  ;;  %v5299_v46 = vadd.f32 %v5246_v20, %v1041_v26  ;;  %v762_v35 = vmul.f32 %v5104_v54, %v753_v6  ;;  %v1054_v51 = vsub.f32 0.0, %v5295_v61  ;;  %v903_v54 = vmul.f32 %v4663_v32, %v895_v14 }
 0x204   : > { %v1080_v48 = vadd.f32 1.0, %v4273_v24  ;;  %v794_v0 = vpop.permute.xlu0 %793  ;;  %4276 = vrcp.f32 %v1081_v34  ;;  %v862_v19 = vadd.f32 %v854_v22, %v821_v13  ;;  %v4275_v60 = vpop.eup %4274 }
 0x205   : > { %v803_v57 = vmul.f32 %v4663_v32, %v794_v0  ;;  %v1062_v23 = vmul.f32 1.442695, %v1054_v51  ;;  %v1058_v25 = vsub.f32 0.0, %v5299_v46  ;;  %v779_v21 = vadd.f32 %v771_v15, %v762_v35 }
 0x206   : > { %4278 = vrcp.f32 %v1080_v48  ;;  %v957_v42 = vpop.permute.xlu1 %956  ;;  %v879_v34 = vadd.f32 %v871_v1, %v862_v19  ;;  %v912_v2 = vmul.f32 %v5158_v56, %v903_v54 }
 0x207   : > { %v967_v18 = vmul.f32 %v4660_v31, %v957_v42  ;;  %v812_v7 = vmul.f32 %v5117_v58, %v803_v57  ;;  %4280 = vpow2.f32 %v1062_v23  ;;  %v870_v58 = vmul.f32 %v5142_v53, %v4953_v52 }
 0x208   : > { %v893_v28 = vpop.permute.xlu0 %892  ;;  %v1070_v6 = vmul.f32 1.442695, %v1058_v25  ;;  %v994_v57 = vmul.f32 %v5177_v44, %v5050_v30  ;;  %v920_v42 = vadd.f32 %v912_v2, %v879_v34 }
 0x209   : > { %v976_v10 = vmul.f32 %v5167_v9, %v967_v18  ;;  %v820_v4 = vadd.f32 %v812_v7, %v779_v21  ;;  %v902_v59 = vmul.f32 %v4663_v32, %v893_v28  ;;  %v995_v7 = vmul.f32 %v5177_v44, %v5055_v55 }
 0x20a   : > { %v1015_v5 = vpop.permute.xlu1 %1014  ;;  %4282 = vpow2.f32 %v1070_v6  ;;  %v1079_v28 = vadd.f32 1.0, %v4275_v60 }
 0x20b   : > { %v984_v26 = vadd.f32 %v976_v10, %v918_v47  ;;  %v1025_v50 = vmul.f32 %v4663_v32, %v1015_v5  ;;  %v861_v14 = vadd.f32 %v853_v38, %v820_v4  ;;  %v911_v8 = vmul.f32 %v5158_v56, %v902_v59 }
 0x20c   : > { %v959_v24 = vpop.permute.xlu0 %958  ;;  %4284 = vrcp.f32 %v1079_v28  ;;  %v4132_v28 = vld [vmem:[%s7672_s2 + $0x344] ss:$8 sps:$4 sm:$0xff]  }
 0x20d   : > { %v1001_v22 = vadd.f32 %v993_v40, %v984_v26  ;;  %v1034_v48 = vmul.f32 %v5226_v63, %v1025_v50  ;;  %v968_v35 = vmul.f32 %v4660_v31, %v959_v24  ;;  %v878_v0 = vadd.f32 %v870_v58, %v861_v14 }
 0x20e   : > { %v961_v51 = vpop.permute.xlu1 %960  ;;  %v4277_v29 = vpop.eup %4276 }
 0x20f   : > { %v1042_v53 = vadd.f32 %v1034_v48, %v1001_v22  ;;  %v977_v13 = vmul.f32 %v5167_v9, %v968_v35  ;;  %v969_v15 = vmul.f32 %v4660_v31, %v961_v51  ;;  %v919_v23 = vadd.f32 %v911_v8, %v878_v0  ;;  %v7860_v31 = vld [vmem:[#allocation6_spill] sm:$0xff] }
 0x210   : > { %v4279_v17 = vpop.eup %4278  ;;  %v1017_v19 = vpop.permute.xlu0 %1016  ;;  %v1097_v10 = vmul.f32 %v4277_v29, %v5250_v16  ;;  %v4123_v29 = vld [vmem:[%s7672_s2 + $0x314] ss:$8 sps:$4 sm:$0xff]  }
 0x211   : > { %v5332_v54 = vadd.f32 %v5246_v20, %v1042_v53  ;;  %v978_v56 = vmul.f32 %v5167_v9, %v969_v15  ;;  %v1026_v18 = vmul.f32 %v4663_v32, %v1017_v19  ;;  %v1096_v25 = vmul.f32 %v4279_v17, %v5260_v3  ;;  %v4281_v21 = vpop.eup %4280  ;;  %v4126_v17 = vld [vmem:[%s7672_s2 + $0x324] ss:$8 sps:$4 sm:$0xff]   ;;  %v4129_v19 = vld [vmem:[%s7672_s2 + $0x334] ss:$8 sps:$4 sm:$0xff]  }
 0x212   : > { %v985_v47 = vadd.f32 %v977_v13, %v919_v23  ;;  %v1019_v30 = vpop.permute.xlu1 %1018  ;;  %v1078_v5 = vadd.f32 1.0, %v4281_v21  ;;  %v4121_v13 = vld [vmem:[%s7672_s2 + $0x310] ss:$8 sps:$4 sm:$0xff]   ;;  %v4124_v23 = vld [vmem:[%s7672_s2 + $0x320] ss:$8 sps:$4 sm:$0xff]  }
 0x213   : > { %v1059_v38 = vsub.f32 0.0, %v5332_v54  ;;  %v986_v1 = vadd.f32 %v978_v56, %v920_v42  ;;  %v1035_v4 = vmul.f32 %v5226_v63, %v1026_v18  ;;  %v1027_v9 = vmul.f32 %v4663_v32, %v1019_v30  ;;  %v4127_v21 = vld [vmem:[%s7672_s2 + $0x330] ss:$8 sps:$4 sm:$0xff]  }
 0x214   : > { %v1002_v59 = vadd.f32 %v994_v57, %v985_v47  ;;  %v1103_v40 = vpack.c.bf16 %v1097_v10, %v1096_v25  ;;  %v4283_v6 = vpop.eup %4282 }
 0x215   : > { %v1072_v3 = vmul.f32 1.442695, %v1059_v38  ;;  %v1003_v26 = vadd.f32 %v995_v7, %v986_v1  ;;  %v1036_v58 = vmul.f32 %v5226_v63, %v1027_v9  ;;  %v1082_v60 = vadd.f32 1.0, %v4283_v6  ;;  %v4133_v1 = vld [vmem:[%s7672_s2 + $0x350] ss:$8 sps:$4 sm:$0xff]  }
 0x216   : > { %v1043_v55 = vadd.f32 %v1035_v4, %v1002_v59  ;;  %v4285_v22 = vpop.eup %4284  ;;  %v4138_v9 = vld [vmem:[%s7672_s2 + $0x364] ss:$8 sps:$4 sm:$0xff]   ;;  %v4136_v59 = vld [vmem:[%s7672_s2 + $0x360] ss:$8 sps:$4 sm:$0xff]   ;;  %v4151_v6 = vld [vmem:[%s7672_s2 + $0x2b0] ss:$8 sps:$4 sm:$0xff]  }
 0x217   : > { %4286 = vpow2.f32 %v1072_v3  ;;  %v1044_v44 = vadd.f32 %v1036_v58, %v1003_v26  ;;  %v1095_v8 = vmul.f32 %v4285_v22, %v5269_v45  ;;  %v4144_v3 = vld [vmem:[%s7672_s2 + $0x284] ss:$8 sps:$4 sm:$0xff]   ;;  %v4142_v26 = vld [vmem:[%s7672_s2 + $0x280] ss:$8 sps:$4 sm:$0xff]   ;;  %v4147_v58 = vld [vmem:[%s7672_s2 + $0x294] ss:$8 sps:$4 sm:$0xff]  }
 0x218   : > { %v1052_v16 = vadd.f32 %v5246_v20, %v1043_v55  ;;  %4288 = vrcp.f32 %v1078_v5  ;;  %v4141_v5 = vld [vmem:[%s7672_s2 + $0x374] ss:$8 sps:$4 sm:$0xff]   ;;  %v7805_v55 = vpack.c.bf16 %v4783_v36, %v4773_v43  ;;  %v7806_v36 = vpack.c.bf16 %v4776_v49, %v4767_v37  ;;  %v4163_v22 = vld [vmem:[%s7672_s2 + $0x2f0] ss:$8 sps:$4 sm:$0xff]  }
 0x219   : > { %v1053_v50 = vadd.f32 %v5246_v20, %v1044_v44  ;;  %v4118_v20 = vld [vmem:[%s7672_s2 + $0x300] ss:$8 sps:$4 sm:$0xff]   ;;  %v4145_v44 = vld [vmem:[%s7672_s2 + $0x290] ss:$8 sps:$4 sm:$0xff]   ;;  %v4153_v43 = vld [vmem:[%s7672_s2 + $0x2b4] ss:$8 sps:$4 sm:$0xff]   ;;  %v7807_v49 = vpack.c.bf16 %v4834_v12, %v4827_v62  ;;  %v3060_v62 = vpack.c.bf16 %v4910_v11, %v4953_v52  ;;  %v7809_v11 = vpack.c.bf16 %v4709_v33, %v4706_v27 }
 0x21a   : > { %v1060_v34 = vsub.f32 0.0, %v1052_v16  ;;  %v4159_v37 = vld [vmem:[%s7672_s2 + $0x2d4] ss:$8 sps:$4 sm:$0xff]   ;;  %v7810_v52 = vld [vmem:[#allocation10_spill] sm:$0xff] }
 0x21b   : > { %v1061_v2 = vsub.f32 0.0, %v1053_v50  ;;  %v4165_v12 = vld [vmem:[%s7672_s2 + $0x2f4] ss:$8 sps:$4 sm:$0xff]   ;;  %v3807_v27 = vld [vmem:[%s7671_s1 + $0x50] ss:$8 sm:$0x3] }
 0x21c   : > { %v1074_v14 = vmul.f32 1.442695, %v1060_v34  ;;  %v4156_v34 = vld [vmem:[%s7672_s2 + $0x2c4] ss:$8 sps:$4 sm:$0xff]  }
 0x21d   : > { %v1076_v24 = vmul.f32 1.442695, %v1061_v2  ;;  %v4154_v2 = vld [vmem:[%s7672_s2 + $0x2c0] ss:$8 sps:$4 sm:$0xff]  }
 0x21e   : > { %4290 = vpow2.f32 %v1074_v14  ;;  %v4157_v14 = vld [vmem:[%s7672_s2 + $0x2d0] ss:$8 sps:$4 sm:$0xff]  }
 0x21f   : > { %4292 = vpow2.f32 %v1076_v24  ;;  %v4162_v24 = vld [vmem:[%s7672_s2 + $0x2e4] ss:$8 sps:$4 sm:$0xff]  }
 0x220   : > { %4294 = vrcp.f32 %v1082_v60  ;;  %v4160_v60 = vld [vmem:[%s7672_s2 + $0x2e0] ss:$8 sps:$4 sm:$0xff]  }
 0x221   : > { %v4287_v48 = vpop.eup %4286 }
 0x222   : > { %v4289_v63 = vpop.eup %4288  ;;  %v1083_v35 = vadd.f32 1.0, %v4287_v48  ;;  %v7808_v48 = vpack.c.bf16 %v4718_v41, %v4715_v39  ;;  %v7816_v39 = vld [vmem:[#allocation11_spill] sm:$0xff] }
 0x223   : > { %v1094_v0 = vmul.f32 %v4289_v63, %v5295_v61  ;;  %v7804_v61 = vmov 0   ;;  %v7811_v63 = vld [vmem:[#allocation9_spill] sm:$0xff]  ;;  %v5479_v41 = vsub.s32 0, %v7816_v39  ;;  %v5485_v33 = vsub.s32 1, %v7816_v39 }
 0x224   : > { %4296 = vrcp.f32 %v1083_v35  ;;  %v7812_v35 = vpack.c.bf16 %v7810_v52, %v7811_v63 }
 0x225   : > { %v1102_v51 = vpack.c.bf16 %v1095_v8, %v1094_v0  ;;  %v7813_v0 = vld [vmem:[#allocation8_spill] sm:$0xff]  ;;  %v7814_v8 = vld [vmem:[#allocation7_spill] sm:$0xff]  ;;  %7817 = vst [vmem:[#allocation10_spill] sm:$0xff] %v5479_v41  ;;  %7818 = vst [vmem:[#allocation9_spill] sm:$0xff] %v5485_v33 }
 0x227   : > { %1248 = vmatmul.mubr.bf16.vlgmr.msra.gmra.mrb[0].mxu0 %v1102_v51  ;;  %v5488_v51 = vrot.slane %v3807_v27, %v5479_v41 }
 0x228   : > { %v4291_v53 = vpop.eup %4290  ;;  %3158 = vmatpush1.bf16.msra.mxu0 %v4118_v20  ;;  %1257 = vmatprep.mubr.bf16.mxu0 %v7804_v61  ;;  %v7815_v20 = vpack.c.bf16 %v7813_v0, %v7814_v8 }
 0x229   : > { %v4293_v45 = vpop.eup %4292  ;;  %v1084_v15 = vadd.f32 1.0, %v4291_v53  ;;  %3159 = vmatprep.subr.bf16.mxu0 %v4123_v29  ;;  %v5491_v29 = vrot.slane %v3807_v27, %v5485_v33 }
 0x22a   : > { %v1085_v57 = vadd.f32 1.0, %v4293_v45  ;;  %v4295_v42 = vpop.eup %4294 }
 0x22b   : > { %4298 = vrcp.f32 %v1084_v15  ;;  %v1098_v18 = vmul.f32 %v4295_v42, %v5299_v46  ;;  %v4130_v46 = vld [vmem:[%s7672_s2 + $0x340] ss:$8 sps:$4 sm:$0xff]  }
 0x22c   : > { %4300 = vrcp.f32 %v1085_v57  ;;  %3160 = vmatpush1.bf16.msra.mxu0 %v4121_v13 }
 0x22d   : > { %3161 = vmatprep.subr.bf16.mxu0 %v4126_v17 }
 0x22e   : > { %v4297_v56 = vpop.eup %4296 }
 0x22f   : > { %1258 = vmatmul.mubr.bf16.gmra.mrb[4].mxu0 %v1103_v40  ;;  %v1099_v25 = vmul.f32 %v4297_v56, %v5332_v54  ;;  %v4135_v54 = vld [vmem:[%s7672_s2 + $0x354] ss:$8 sps:$4 sm:$0xff]   ;;  %v4139_v40 = vld [vmem:[%s7672_s2 + $0x370] ss:$8 sps:$4 sm:$0xff]  }
 0x230   : > { %3162 = vmatpush1.bf16.msra.mxu0 %v4124_v23  ;;  %1267 = vmatprep.mubr.bf16.mxu0 %v7804_v61 }
 0x231   : > { %3163 = vmatprep.subr.bf16.mxu0 %v4129_v19  ;;  %v1104_v7 = vpack.c.bf16 %v1099_v25, %v1098_v18 }
 0x234   : > { %3164 = vmatpush1.bf16.msra.mxu0 %v4127_v21 }
 0x235   : > { %v4299_v47 = vpop.eup %4298  ;;  %3165 = vmatprep.subr.bf16.mxu0 %v4132_v28 }
 0x236   : > { %v4301_v30 = vpop.eup %4300  ;;  %v1100_v10 = vmul.f32 %v4299_v47, %v1052_v16  ;;  %v4150_v16 = vld [vmem:[%s7672_s2 + $0x2a4] ss:$8 sps:$4 sm:$0xff]  }
 0x237   : > { %1268 = vmatmul.mubr.bf16.gmra.mrb[8].mxu0 %v1104_v7  ;;  %v1101_v38 = vmul.f32 %v4301_v30, %v1053_v50  ;;  %v4148_v50 = vld [vmem:[%s7672_s2 + $0x2a0] ss:$8 sps:$4 sm:$0xff]  }
 0x238   : > { %3166 = vmatpush1.bf16.msra.mxu0 %v4130_v46  ;;  %1277 = vmatprep.mubr.bf16.mxu0 %v7804_v61 }
 0x239   : > { %3167 = vmatprep.subr.bf16.mxu0 %v4135_v54  ;;  %v1105_v4 = vpack.c.bf16 %v1101_v38, %v1100_v10 }
 0x23c   : > { %3168 = vmatpush1.bf16.msra.mxu0 %v4133_v1 }
 0x23d   : > { %3169 = vmatprep.subr.bf16.mxu0 %v4138_v9 }
 0x23f   : > { %1278 = vmatmul.mubr.bf16.gmra.mrb[12].mxu0 %v1105_v4 }
 0x240   : > { %3170 = vmatpush1.bf16.msra.mxu0 %v4136_v59  ;;  %3189 = vmatprep.mubr.bf16.mxu0 %v7804_v61 }
 0x241   : > { %3171 = vmatprep.subr.bf16.mxu0 %v4141_v5 }
 0x244   : > { %3172 = vmatpush1.bf16.msra.mxu0 %v4139_v40 }
 0x245   : > { %3310 = vmatprep.subr.bf16.mxu0 %v4144_v3 }
 0x247   : > { %3190 = vmatmul.mubr.bf16.vlgmr.msra.gmra.mrb[16].mxu0 %v7805_v55 }
 0x248   : > { %3311 = vmatpush1.bf16.msra.mxu0 %v4142_v26  ;;  %3199 = vmatprep.mubr.bf16.mxu0 %v7804_v61 }
 0x249   : > { %3312 = vmatprep.subr.bf16.mxu0 %v4147_v58 }
 0x24c   : > { %3313 = vmatpush1.bf16.msra.mxu0 %v4145_v44 }
 0x24d   : > { %3314 = vmatprep.subr.bf16.mxu0 %v4150_v16 }
 0x24f   : > { %3200 = vmatmul.mubr.bf16.gmra.mrb[20].mxu0 %v7806_v36 }
 0x250   : > { %3315 = vmatpush1.bf16.msra.mxu0 %v4148_v50  ;;  %3209 = vmatprep.mubr.bf16.mxu0 %v7804_v61 }
 0x251   : > { %3316 = vmatprep.subr.bf16.mxu0 %v4153_v43 }
 0x254   : > { %3317 = vmatpush1.bf16.msra.mxu0 %v4151_v6 }
 0x255   : > { %3318 = vmatprep.subr.bf16.mxu0 %v4156_v34 }
 0x257   : > { %3210 = vmatmul.mubr.bf16.gmra.mrb[24].mxu0 %v7807_v49 }
 0x258   : > { %3319 = vmatpush1.bf16.msra.mxu0 %v4154_v2  ;;  %3219 = vmatprep.mubr.bf16.mxu0 %v7804_v61 }
 0x259   : > { %3320 = vmatprep.subr.bf16.mxu0 %v4159_v37 }
 0x25c   : > { %3321 = vmatpush1.bf16.msra.mxu0 %v4157_v14 }
 0x25d   : > { %3322 = vmatprep.subr.bf16.mxu0 %v4162_v24 }
 0x25f   : > { %3220 = vmatmul.mubr.bf16.gmra.mrb[28].mxu0 %v3060_v62 }
 0x260   : > { %3323 = vmatpush1.bf16.msra.mxu0 %v4160_v60  ;;  %3342 = vmatprep.mubr.bf16.mxu0 %v7804_v61 }
 0x261   : > { %3324 = vmatprep.subr.bf16.mxu0 %v4165_v12 }
 0x264   : > { %3325 = vmatpush1.bf16.msra.mxu0 %v4163_v22 }
 0x267   : > { %3343 = vmatmul.mubr.bf16.vlgmr.msra.gmra.mrb[16].mxu0 %v7808_v48 }
 0x268   : > { %3352 = vmatprep.mubr.bf16.mxu0 %v7804_v61 }
 0x26f   : > { %3353 = vmatmul.mubr.bf16.gmra.mrb[20].mxu0 %v7809_v11 }
 0x270   : > { %3362 = vmatprep.mubr.bf16.mxu0 %v7804_v61 }
 0x277   : > { %3363 = vmatmul.mubr.bf16.gmra.mrb[24].mxu0 %v7812_v35 }
 0x278   : > { %3372 = vmatprep.mubr.bf16.mxu0 %v7804_v61 }
 0x27f   : > { %3373 = vmatmul.mubr.bf16.gmra.mrb[28].mxu0 %v7815_v20 }
 0x280   : > { %3515 = vmatprep.mubr.bf16.mxu0 %v7804_v61 }
 0x2fa   : > { %v1249_v53 = vpop.f32.mrb[0].mxu0 }
 0x2fb   : > { %v5494_v13 = vadd.f32 %v1249_v53, %v5488_v51  ;;  %v1251_v45 = vpop.f32.mrb[1].mxu0 }
 0x2fc   : > { %v5497_v15 = vadd.f32 %v1251_v45, %v5491_v29  ;;  %v1253_v17 = vpop.f32.mrb[2].mxu0 }
 0x2fd   : > { %v1288_v57 = vsub.f32 0.0, %v5494_v13  ;;  %v5501_v42 = vadd.f32 %v1253_v17, %v5488_v51  ;;  %v1255_v23 = vpop.f32.mrb[3].mxu0 }
 0x2fe   : > { %v1289_v19 = vsub.f32 0.0, %v5497_v15  ;;  %v5505_v56 = vadd.f32 %v1255_v23, %v5491_v29 }
 0x2ff   : > { %v1304_v18 = vmul.f32 1.442695, %v1288_v57  ;;  %v1290_v25 = vsub.f32 0.0, %v5501_v42 }
 0x300   : > { %v1306_v21 = vmul.f32 1.442695, %v1289_v19  ;;  %v1291_v7 = vsub.f32 0.0, %v5505_v56 }
 0x301   : > { %4302 = vpow2.f32 %v1304_v18  ;;  %v1308_v28 = vmul.f32 1.442695, %v1290_v25 }
 0x302   : > { %4304 = vpow2.f32 %v1306_v21  ;;  %v1310_v46 = vmul.f32 1.442695, %v1291_v7  ;;  %v1259_v47 = vpop.f32.mrb[4].mxu0 }
 0x303   : > { %4306 = vpow2.f32 %v1308_v28  ;;  %v5510_v54 = vadd.f32 %v1259_v47, %v5488_v51  ;;  %v1261_v30 = vpop.f32.mrb[5].mxu0 }
 0x304   : > { %4308 = vpow2.f32 %v1310_v46  ;;  %v5513_v10 = vadd.f32 %v1261_v30, %v5491_v29  ;;  %v1263_v38 = vpop.f32.mrb[6].mxu0 }
 0x305   : > { %v1292_v1 = vsub.f32 0.0, %v5510_v54  ;;  %v5517_v4 = vadd.f32 %v1263_v38, %v5488_v51  ;;  %v1265_v9 = vpop.f32.mrb[7].mxu0 }
 0x306   : > { %v1293_v59 = vsub.f32 0.0, %v5513_v10  ;;  %v5521_v5 = vadd.f32 %v1265_v9, %v5491_v29 }
 0x307   : > { %v1312_v40 = vmul.f32 1.442695, %v1292_v1  ;;  %v1294_v3 = vsub.f32 0.0, %v5517_v4 }
 0x308   : > { %v1314_v26 = vmul.f32 1.442695, %v1293_v59  ;;  %v1295_v58 = vsub.f32 0.0, %v5521_v5 }
 0x309   : > { %4310 = vpow2.f32 %v1312_v40  ;;  %v1316_v55 = vmul.f32 1.442695, %v1294_v3 }
 0x30a   : > { %4312 = vpow2.f32 %v1314_v26  ;;  %v1318_v44 = vmul.f32 1.442695, %v1295_v58  ;;  %v1269_v16 = vpop.f32.mrb[8].mxu0 }
 0x30b   : > { %v4303_v50 = vpop.eup %4302  ;;  %4314 = vpow2.f32 %v1316_v55  ;;  %v5526_v43 = vadd.f32 %v1269_v16, %v5488_v51  ;;  %v1271_v36 = vpop.f32.mrb[9].mxu0 }
 0x30c   : > { %v4305_v6 = vpop.eup %4304  ;;  %v1336_v34 = vadd.f32 1.0, %v4303_v50  ;;  %4316 = vpow2.f32 %v1318_v44  ;;  %v5529_v2 = vadd.f32 %v1271_v36, %v5491_v29  ;;  %v1273_v37 = vpop.f32.mrb[10].mxu0 }
 0x30d   : > { %v4307_v49 = vpop.eup %4306  ;;  %v1337_v14 = vadd.f32 1.0, %v4305_v6  ;;  %v5532_v24 = vadd.f32 %v1273_v37, %v5488_v51  ;;  %v1275_v60 = vpop.f32.mrb[11].mxu0 }
 0x30e   : > { %v4309_v62 = vpop.eup %4308  ;;  %4318 = vrcp.f32 %v1336_v34  ;;  %v1338_v12 = vadd.f32 1.0, %v4307_v49  ;;  %v5535_v22 = vadd.f32 %v1275_v60, %v5491_v29 }
 0x30f   : > { %4320 = vrcp.f32 %v1337_v14  ;;  %v1339_v48 = vadd.f32 1.0, %v4309_v62 }
 0x310   : > { %4322 = vrcp.f32 %v1338_v12 }
 0x311   : > { %4324 = vrcp.f32 %v1339_v48 }
 0x312   : > { %v1279_v11 = vpop.f32.mrb[12].mxu0 }
 0x313   : > { %v4311_v52 = vpop.eup %4310  ;;  %v5538_v63 = vadd.f32 %v1279_v11, %v5488_v51  ;;  %v1281_v35 = vpop.f32.mrb[13].mxu0 }
 0x314   : > { %v4313_v0 = vpop.eup %4312  ;;  %v1340_v8 = vadd.f32 1.0, %v4311_v52  ;;  %v5541_v20 = vadd.f32 %v1281_v35, %v5491_v29  ;;  %v1283_v27 = vpop.f32.mrb[14].mxu0 }
 0x315   : > { %v4315_v53 = vpop.eup %4314  ;;  %v1341_v45 = vadd.f32 1.0, %v4313_v0  ;;  %v5544_v17 = vadd.f32 %v1283_v27, %v5488_v51  ;;  %v1285_v57 = vpop.f32.mrb[15].mxu0 }
 0x316   : > { %v4317_v23 = vpop.eup %4316  ;;  %4326 = vrcp.f32 %v1340_v8  ;;  %v1342_v19 = vadd.f32 1.0, %v4315_v53  ;;  %v5547_v18 = vadd.f32 %v1285_v57, %v5491_v29  ;;  %v1296_v53 = vsub.f32 0.0, %v5526_v43 }
 0x317   : > { %4328 = vrcp.f32 %v1341_v45  ;;  %v1343_v25 = vadd.f32 1.0, %v4317_v23  ;;  %v1298_v45 = vsub.f32 0.0, %v5532_v24 }
 0x318   : > { %v4319_v21 = vpop.eup %4318  ;;  %4330 = vrcp.f32 %v1342_v19  ;;  %v1320_v57 = vmul.f32 1.442695, %v1296_v53  ;;  %v7823_v19 = vld [vmem:[#allocation13_spill] sm:$0xff] }
 0x319   : > { %v4321_v7 = vpop.eup %4320  ;;  %v5550_v28 = vmul.f32 %v4319_v21, %v5494_v13  ;;  %4332 = vrcp.f32 %v1343_v25  ;;  %v1324_v23 = vmul.f32 1.442695, %v1298_v45 }
 0x31a   : > { %v4323_v46 = vpop.eup %4322  ;;  %v5553_v51 = vmul.f32 %v4321_v7, %v5497_v15  ;;  %4334 = vpow2.f32 %v1320_v57  ;;  %v1297_v7 = vsub.f32 0.0, %v5529_v2 }
 0x31b   : > { %7819 = vst [vmem:[#allocation8_spill] sm:$0xff] %v5550_v28  ;;  %v4325_v47 = vpop.eup %4324  ;;  %v5556_v30 = vmul.f32 %v4323_v46, %v5501_v42  ;;  %1694 = vrot.lane.b32.xlu0 %v5550_v28, %s4570_s8  ;;  %v7703_v13 = vrot.slane %v5550_v28, 1  ;;  %v7706_v15 = vrot.slane %v5550_v28, 7  ;;  %4336 = vpow2.f32 %v1324_v23 }
 0x31c   : > { %7820 = vst [vmem:[#allocation7_spill] sm:$0xff] %v5553_v51  ;;  %v5561_v29 = vmul.f32 %v4325_v47, %v5505_v56  ;;  %v7702_v40 = vrot.slane %v5553_v51, 1  ;;  %v7704_v3 = vrot.slane %v5553_v51, 7 }
 0x31d   : > { %1696 = vrot.lane.b32.xlu1 %v5556_v30, %s4570_s8  ;;  %v1959_v38 = vrot.slane %v5556_v30, 1  ;;  %v1399_v1 = vrot.slane %v5556_v30, 7 }
 0x31e   : > { %v1960_v42 = vrot.slane %v5561_v29, 1  ;;  %v1400_v9 = vrot.slane %v5561_v29, 7 }
 0x31f   : > { %1848 = vrot.lane.b32.xlu0 %v5550_v28, %s4571_s9  ;;  %v5577_v56 = vsel %vm929_vm4, %v7703_v13, %v1959_v38  ;;  %v5583_v59 = vsel %vm714_vm5, %v7706_v15, %v1399_v1 }
 0x320   : > { %7821 = vst [vmem:[#allocation20_spill] sm:$0xff] %v5577_v56  ;;  %v4327_v26 = vpop.eup %4326  ;;  %v5596_v44 = vsel %vm929_vm4, %v7702_v40, %v1960_v42  ;;  %v5602_v16 = vsel %vm714_vm5, %v7704_v3, %v1400_v9  ;;  %v7841_v40 = vld [vmem:[#allocation15_spill] sm:$0xff] }
 0x321   : > { %v4329_v58 = vpop.eup %4328  ;;  %v5588_v55 = vmul.f32 %v4327_v26, %v5510_v54  ;;  %1850 = vrot.lane.b32.xlu1 %v5556_v30, %s4571_s9  ;;  %7822 = vst [vmem:[#allocation21_spill] sm:$0xff] %v5596_v44 }
 0x322   : > { %v4331_v50 = vpop.eup %4330  ;;  %v5605_v36 = vmul.f32 %v4329_v58, %v5513_v10 }
 0x323   : > { %v4333_v54 = vpop.eup %4332  ;;  %v5608_v6 = vmul.f32 %v4331_v50, %v5517_v4  ;;  %1710 = vrot.lane.b32.xlu0 %v5553_v51, %s4570_s8  ;;  %v1401_v34 = vrot.slane %v5588_v55, 7  ;;  %v1961_v37 = vrot.slane %v5588_v55, 1  ;;  %v7830_v50 = vld [vmem:[#allocation12_spill] sm:$0xff] }
 0x324   : > { %v1402_v49 = vrot.slane %v5605_v36, 7  ;;  %v5622_v60 = vmul.f32 %v4333_v54, %v5521_v5  ;;  %v1962_v11 = vrot.slane %v5605_v36, 1 }
 0x325   : > { %1712 = vrot.lane.b32.xlu1 %v5561_v29, %s4570_s8  ;;  %v1423_v10 = vsel %vm714_vm5, %v1399_v1, %v1401_v34  ;;  %v1403_v14 = vrot.slane %v5608_v6, 7  ;;  %v1963_v4 = vrot.slane %v5608_v6, 1  ;;  %v1983_v62 = vsel %vm929_vm4, %v1959_v38, %v1961_v37 }
 0x326   : > { %v1424_v12 = vsel %vm714_vm5, %v1400_v9, %v1402_v49  ;;  %v1404_v52 = vrot.slane %v5622_v60, 7  ;;  %v1964_v35 = vrot.slane %v5622_v60, 1  ;;  %v5651_v0 = vsel %vm929_vm4, %v1960_v42, %v1962_v11 }
 0x327   : > { %1864 = vrot.lane.b32.xlu0 %v5553_v51, %s4571_s9  ;;  %v5634_v48 = vsel %vm714_vm5, %v1401_v34, %v1403_v14  ;;  %v5640_v5 = vsel %vm929_vm4, %v1961_v37, %v1963_v4  ;;  %v5698_v25 = vmul.f32 %v7823_v19, %v1423_v10  ;;  %v1299_v38 = vsub.f32 0.0, %v5535_v22  ;;  %v4335_v37 = vpop.eup %4334 }
 0x328   : > { %v5657_v8 = vsel %vm714_vm5, %v1402_v49, %v1404_v52  ;;  %v5663_v27 = vsel %vm929_vm4, %v1962_v11, %v1964_v35  ;;  %v1322_v42 = vmul.f32 1.442695, %v1297_v7  ;;  %v5725_v54 = vmul.f32 %v7830_v50, %v1983_v62  ;;  %v4337_v10 = vpop.eup %4336 }
 0x329   : > { %1866 = vrot.lane.b32.xlu1 %v5561_v29, %s4571_s9  ;;  %v1326_v9 = vmul.f32 1.442695, %v1299_v38  ;;  %v1344_v11 = vadd.f32 1.0, %v4335_v37  ;;  %v5738_v62 = vmul.f32 %v7823_v19, %v1424_v12  ;;  %v1346_v53 = vadd.f32 1.0, %v4337_v10 }
 0x32a   : > { %4338 = vpow2.f32 %v1322_v42  ;;  %v5752_v7 = vmul.f32 %v7830_v50, %v5651_v0  ;;  %v1300_v38 = vsub.f32 0.0, %v5538_v63 }
 0x32b   : > { %2005 = vrot.lane.b32.xlu0 %v5577_v56, %s4570_s8  ;;  %4340 = vpow2.f32 %v1326_v9 }
 0x32c   : > { %4342 = vrcp.f32 %v1344_v11  ;;  %v1328_v37 = vmul.f32 1.442695, %v1300_v38  ;;  %v1301_v11 = vsub.f32 0.0, %v5541_v20 }
 0x32d   : > { %1447 = vrot.lane.b32.xlu1 %v5583_v59, %s4570_s8  ;;  %4344 = vrcp.f32 %v1346_v53 }
 0x32f   : > { %2159 = vrot.lane.b32.xlu0 %v5577_v56, %s4571_s9 }
 0x331   : > { %1586 = vrot.lane.b32.xlu1 %v5583_v59, %s4571_s9 }
 0x333   : > { %2021 = vrot.lane.b32.xlu0 %v5596_v44, %s4570_s8 }
 0x334   : > { %v4339_v45 = vpop.eup %4338 }
 0x335   : > { %1463 = vrot.lane.b32.xlu1 %v5602_v16, %s4570_s8  ;;  %v4341_v57 = vpop.eup %4340  ;;  %v1345_v23 = vadd.f32 1.0, %v4339_v45  ;;  %v1330_v45 = vmul.f32 1.442695, %v1301_v11 }
 0x336   : > { %v1347_v12 = vadd.f32 1.0, %v4341_v57  ;;  %v4343_v42 = vpop.eup %4342 }
 0x337   : > { %2175 = vrot.lane.b32.xlu0 %v5596_v44, %s4571_s9  ;;  %4346 = vrcp.f32 %v1345_v23  ;;  %v4345_v9 = vpop.eup %4344  ;;  %v5760_v10 = vmul.f32 %v4343_v42, %v5526_v43 }
 0x338   : > { %4348 = vrcp.f32 %v1347_v12  ;;  %v5765_v0 = vmul.f32 %v4345_v9, %v5532_v24  ;;  %v1302_v24 = vsub.f32 0.0, %v5544_v17 }
 0x339   : > { %1602 = vrot.lane.b32.xlu1 %v5602_v16, %s4571_s9  ;;  %7833 = vst [vmem:[#allocation30_spill] sm:$0xff] %v5760_v10  ;;  %4350 = vpow2.f32 %v1328_v37  ;;  %v1405_v23 = vrot.slane %v5760_v10, 7  ;;  %v7837_v37 = vld [vmem:[#allocation14_spill] sm:$0xff] }
 0x33a   : > { %7834 = vst [vmem:[#allocation31_spill] sm:$0xff] %v5765_v0  ;;  %4352 = vpow2.f32 %v1330_v45 }
 0x33b   : > { %1698 = vrot.lane.b32.xlu0 %v5588_v55, %s4570_s8  ;;  %v1419_v42 = vsel %vm714_vm5, %v1403_v14, %v1405_v23 }
 0x33c   : > { %v5798_v11 = vmul.f32 %v7837_v37, %v1419_v42 }
 0x33d   : > { %1700 = vrot.lane.b32.xlu1 %v5608_v6, %s4570_s8 }
 0x33e   : > { %7838 = vst [vmem:[#allocation34_spill] sm:$0xff] %v5798_v11 }
 0x33f   : > { %1852 = vrot.lane.b32.xlu0 %v5588_v55, %s4571_s9 }
 0x341   : > { %1854 = vrot.lane.b32.xlu1 %v5608_v6, %s4571_s9  ;;  %v4347_v53 = vpop.eup %4346 }
 0x342   : > { %v4349_v43 = vpop.eup %4348  ;;  %v5775_v57 = vmul.f32 %v4347_v53, %v5529_v2  ;;  %v1332_v2 = vmul.f32 1.442695, %v1302_v24  ;;  %v1303_v53 = vsub.f32 0.0, %v5547_v18  ;;  %v7705_v24 = vrot.slane %v5765_v0, 1 }
 0x343   : > { %1714 = vrot.lane.b32.xlu0 %v5605_v36, %s4570_s8  ;;  %v5782_v12 = vmul.f32 %v4349_v43, %v5535_v22  ;;  %v4351_v38 = vpop.eup %4350  ;;  %v1407_v22 = vrot.slane %v5765_v0, 7  ;;  %v1965_v43 = vrot.slane %v5760_v10, 1 }
 0x344   : > { %7835 = vst [vmem:[#allocation32_spill] sm:$0xff] %v5775_v57  ;;  %v1348_v9 = vadd.f32 1.0, %v4351_v38  ;;  %4354 = vpow2.f32 %v1332_v2  ;;  %v4353_v45 = vpop.eup %4352  ;;  %v1406_v38 = vrot.slane %v5775_v57, 7  ;;  %v1334_v2 = vmul.f32 1.442695, %v1303_v53 }
 0x345   : > { %1716 = vrot.lane.b32.xlu1 %v5622_v60, %s4570_s8  ;;  %7836 = vst [vmem:[#allocation33_spill] sm:$0xff] %v5782_v12  ;;  %v5805_v14 = vsel %vm714_vm5, %v1405_v23, %v1407_v22  ;;  %v1979_v23 = vsel %vm929_vm4, %v1963_v4, %v1965_v43  ;;  %v1349_v42 = vadd.f32 1.0, %v4353_v45 }
 0x346   : > { %7839 = vst [vmem:[#allocation35_spill] sm:$0xff] %v5805_v14  ;;  %4356 = vrcp.f32 %v1348_v9  ;;  %v5824_v9 = vsel %vm929_vm4, %v1965_v43, %v7705_v24  ;;  %v1420_v53 = vsel %vm714_vm5, %v1404_v52, %v1406_v38  ;;  %v5833_v4 = vmul.f32 %v7841_v40, %v1979_v23 }
 0x347   : > { %1868 = vrot.lane.b32.xlu0 %v5605_v36, %s4571_s9  ;;  %7840 = vst [vmem:[#allocation36_spill] sm:$0xff] %v5824_v9  ;;  %4358 = vpow2.f32 %v1334_v2  ;;  %v5838_v43 = vmul.f32 %v7837_v37, %v1420_v53  ;;  %v1408_v52 = vrot.slane %v5782_v12, 7  ;;  %v7707_v2 = vrot.slane %v5782_v12, 1 }
 0x348   : > { %7842 = vst [vmem:[#allocation37_spill] sm:$0xff] %v5833_v4  ;;  %4360 = vrcp.f32 %v1349_v42  ;;  %v1966_v53 = vrot.slane %v5775_v57, 1 }
 0x349   : > { %1870 = vrot.lane.b32.xlu1 %v5622_v60, %s4571_s9  ;;  %7843 = vst [vmem:[#allocation38_spill] sm:$0xff] %v5838_v43  ;;  %v5853_v42 = vsel %vm714_vm5, %v1406_v38, %v1408_v52 }
 0x34a   : > { %v5700_v21 = vpop.f32.mrb[24].mxu0  ;;  %7845 = vst [vmem:[#allocation40_spill] sm:$0xff] %v5853_v42  ;;  %v1980_v38 = vsel %vm929_vm4, %v1964_v35, %v1966_v53 }
 0x34b   : > { %7824 = vst [vmem:[#allocation22_spill] sm:$0xff] %v5700_v21  ;;  %1449 = vrot.lane.b32.xlu0 %v5698_v25, %s4570_s8  ;;  %v5705_v46 = vpop.f32.mrb[25].mxu0  ;;  %v5890_v35 = vmul.f32 %v7841_v40, %v1980_v38  ;;  %v7855_v38 = vld [vmem:[#allocation5_spill] sm:$0xff] }
 0x34c   : > { %7825 = vst [vmem:[#allocation23_spill] sm:$0xff] %v5705_v46  ;;  %v5707_v47 = vpop.f32.mrb[26].mxu0 }
 0x34d   : > { %7826 = vst [vmem:[#allocation24_spill] sm:$0xff] %v5707_v47  ;;  %1451 = vrot.lane.b32.xlu1 %v5634_v48, %s4570_s8  ;;  %v5712_v1 = vpop.f32.mrb[27].mxu0 }
 0x34e   : > { %7827 = vst [vmem:[#allocation25_spill] sm:$0xff] %v5712_v1  ;;  %v4355_v45 = vpop.eup %4354 }
 0x34f   : > { %1588 = vrot.lane.b32.xlu0 %v5698_v25, %s4571_s9  ;;  %v1350_v3 = vadd.f32 1.0, %v4355_v45 }
 0x350   : > { %v4357_v13 = vpop.eup %4356 }
 0x351   : > { %1590 = vrot.lane.b32.xlu1 %v5634_v48, %s4571_s9  ;;  %v5846_v23 = vmul.f32 %v4357_v13, %v5538_v63  ;;  %4362 = vrcp.f32 %v1350_v3  ;;  %v4359_v24 = vpop.eup %4358  ;;  %v5864_v63 = vsel %vm929_vm4, %v1966_v53, %v7707_v2 }
 0x352   : > { %v5718_v26 = vpop.f32.mrb[28].mxu0  ;;  %7847 = vst [vmem:[#allocation42_spill] sm:$0xff] %v5864_v63  ;;  %v4361_v3 = vpop.eup %4360 }
 0x353   : > { %7828 = vst [vmem:[#allocation26_spill] sm:$0xff] %v5718_v26  ;;  %2009 = vrot.lane.b32.xlu0 %v5640_v5, %s4570_s8  ;;  %v5722_v58 = vpop.f32.mrb[29].mxu0  ;;  %7844 = vst [vmem:[#allocation39_spill] sm:$0xff] %v5846_v23  ;;  %v1409_v13 = vrot.slane %v5846_v23, 7  ;;  %v5880_v2 = vmul.f32 %v4361_v3, %v5541_v20  ;;  %v7850_v26 = vld [vmem:[#allocation2_spill] sm:$0xff]  ;;  %v7853_v20 = vld [vmem:[#allocation17_spill] sm:$0xff] }
 0x354   : > { %7829 = vst [vmem:[#allocation27_spill] sm:$0xff] %v5722_v58  ;;  %v5727_v34 = vpop.f32.mrb[30].mxu0  ;;  %vm1477_vm14 = vcmp.lt.s32.totalorder %v7850_v26, 16  ;;  %7851 = vst [vmem:[#allocation2_spill] sm:$0xff] %v5890_v35  ;;  %vm1616_vm15 = vcmp.lt.s32.totalorder %v7850_v26, 112 }
 0x355   : > { %7831 = vst [vmem:[#allocation28_spill] sm:$0xff] %v5727_v34  ;;  %2007 = vrot.lane.b32.xlu1 %v5725_v54, %s4570_s8  ;;  %v5731_v49 = vpop.f32.mrb[31].mxu0  ;;  %7849 = vst [vmem:[#allocation44_spill] sm:$0xff] %v5880_v2  ;;  %v1415_v58 = vsel %vm714_vm5, %v1407_v22, %v1409_v13 }
 0x356   : > { %7832 = vst [vmem:[#allocation29_spill] sm:$0xff] %v5731_v49  ;;  %v1351_v49 = vadd.f32 1.0, %v4359_v24  ;;  %v5897_v3 = vmul.f32 %v7853_v20, %v1415_v58 }
 0x357   : > { %2163 = vrot.lane.b32.xlu0 %v5640_v5, %s4571_s9 }
 0x358   : > { %4364 = vrcp.f32 %v1351_v49  ;;  %7854 = vst [vmem:[#allocation46_spill] sm:$0xff] %v5897_v3 }
 0x359   : > { %2161 = vrot.lane.b32.xlu1 %v5725_v54, %s4571_s9 }
 0x35b   : > { %1465 = vrot.lane.b32.xlu0 %v5738_v62, %s4570_s8  ;;  %v4363_v24 = vpop.eup %4362 }
 0x35c   : > { %v5913_v58 = vmul.f32 %v4363_v24, %v5544_v17  ;;  %v7859_v17 = vrot.slane %v5880_v2, 7 }
 0x35d   : > { %1467 = vrot.lane.b32.xlu1 %v5657_v8, %s4570_s8 }
 0x35e   : > { %7857 = vst [vmem:[#allocation47_spill] sm:$0xff] %v5913_v58  ;;  %v1416_v24 = vsel %vm714_vm5, %v1408_v52, %v7859_v17  ;;  %v1411_v50 = vrot.slane %v5913_v58, 7 }
 0x35f   : > { %1604 = vrot.lane.b32.xlu0 %v5738_v62, %s4571_s9  ;;  %v5954_v52 = vmul.f32 %v7853_v20, %v1416_v24  ;;  %v3827_v24 = vld [vmem:[%s7671_s1 + $0x61] ss:$8 sm:$0x3]  ;;  %v7867_v20 = vrot.slane %v5550_v28, 7 }
 0x360   : > { %v6002_v44 = vrot.slane %v3827_v24, %v5479_v41 }
 0x361   : > { %1606 = vrot.lane.b32.xlu1 %v5657_v8, %s4571_s9  ;;  %7863 = vst [vmem:[#allocation50_spill] sm:$0xff] %v5954_v52 }
 0x363   : > { %2025 = vrot.lane.b32.xlu0 %v5663_v27, %s4570_s8 }
 0x365   : > { %2023 = vrot.lane.b32.xlu1 %v5752_v7, %s4570_s8 }
 0x367   : > { %2179 = vrot.lane.b32.xlu0 %v5663_v27, %s4571_s9 }
 0x369   : > { %2177 = vrot.lane.b32.xlu1 %v5752_v7, %s4571_s9 }
 0x36b   : > { %1702 = vrot.lane.b32.xlu0 %v5760_v10, %s4570_s8 }
 0x36d   : > { %1704 = vrot.lane.b32.xlu1 %v5765_v0, %s4570_s8 }
 0x36f   : > { %1856 = vrot.lane.b32.xlu0 %v5760_v10, %s4571_s9 }
 0x371   : > { %1858 = vrot.lane.b32.xlu1 %v5765_v0, %s4571_s9 }
 0x373   : > { %1718 = vrot.lane.b32.xlu0 %v5775_v57, %s4570_s8 }
 0x375   : > { %1720 = vrot.lane.b32.xlu1 %v5782_v12, %s4570_s8 }
 0x377   : > { %1872 = vrot.lane.b32.xlu0 %v5775_v57, %s4571_s9 }
 0x379   : > { %1874 = vrot.lane.b32.xlu1 %v5782_v12, %s4571_s9 }
 0x37b   : > { %1453 = vrot.lane.b32.xlu0 %v5798_v11, %s4570_s8 }
 0x37d   : > { %1455 = vrot.lane.b32.xlu1 %v5805_v14, %s4570_s8 }
 0x37f   : > { %1592 = vrot.lane.b32.xlu0 %v5798_v11, %s4571_s9 }
 0x381   : > { %1594 = vrot.lane.b32.xlu1 %v5805_v14, %s4571_s9 }
 0x383   : > { %2013 = vrot.lane.b32.xlu0 %v5824_v9, %s4570_s8 }
 0x385   : > { %2011 = vrot.lane.b32.xlu1 %v5833_v4, %s4570_s8 }
 0x387   : > { %1469 = vrot.lane.b32.xlu0 %v5838_v43, %s4570_s8 }
 0x389   : > { %2165 = vrot.lane.b32.xlu1 %v5833_v4, %s4571_s9  ;;  %v7874_v4 = vld [vmem:[#allocation18_spill] sm:$0xff] }
 0x38b   : > { %1608 = vrot.lane.b32.xlu0 %v5838_v43, %s4571_s9 }
 0x38d   : > { %v5856_v45 = vpop.permute.xlu0 %1694  ;;  %1471 = vrot.lane.b32.xlu1 %v5853_v42, %s4570_s8 }
 0x38e   : > { %7846 = vst [vmem:[#allocation41_spill] sm:$0xff] %v5856_v45 }
 0x38f   : > { %v5867_v15 = vpop.permute.xlu1 %1696  ;;  %2029 = vrot.lane.b32.xlu0 %v5864_v63, %s4570_s8 }
 0x391   : > { %v5875_v34 = vpop.permute.xlu0 %1848  ;;  %1610 = vrot.lane.b32.xlu1 %v5853_v42, %s4571_s9 }
 0x392   : > { %7848 = vst [vmem:[#allocation43_spill] sm:$0xff] %v5875_v34 }
 0x393   : > { %v5885_v1 = vpop.permute.xlu1 %1850  ;;  %1706 = vrot.lane.b32.xlu0 %v5846_v23, %s4570_s8 }
 0x395   : > { %v5892_v53 = vpop.permute.xlu0 %1710  ;;  %2027 = vrot.lane.b32.xlu1 %v5890_v35, %s4570_s8 }
 0x396   : > { %7852 = vst [vmem:[#allocation45_spill] sm:$0xff] %v5892_v53  ;;  %v1734_v22 = vsel %vm1477_vm14, %v5892_v53, %v5856_v45  ;;  %v5989_v53 = vrot.slane %v3827_v24, %v5485_v33 }
 0x397   : > { %v5906_v46 = vmul.f32 %v7855_v38, %v1734_v22  ;;  %v5908_v49 = vpop.permute.xlu1 %1712  ;;  %1457 = vrot.lane.b32.xlu0 %v5897_v3, %s4570_s8 }
 0x398   : > { %v1735_v21 = vsel %vm1477_vm14, %v5908_v49, %v5867_v15 }
 0x399   : > { %7856 = vst [vmem:[#allocation5_spill] sm:$0xff] %v5906_v46  ;;  %v5920_v47 = vmul.f32 %v7855_v38, %v1735_v21  ;;  %v5922_v32 = vpop.permute.xlu0 %1864  ;;  %2181 = vrot.lane.b32.xlu1 %v5890_v35, %s4571_s9 }
 0x39a   : > { %7858 = vst [vmem:[#allocation48_spill] sm:$0xff] %v5922_v32  ;;  %v1888_v22 = vsel %vm1616_vm15, %v5922_v32, %v5875_v34 }
 0x39b   : > { %v5935_v40 = vmul.f32 %v7860_v31, %v1888_v22  ;;  %v5937_v21 = vpop.permute.xlu1 %1866  ;;  %1596 = vrot.lane.b32.xlu0 %v5897_v3, %s4571_s9  ;;  %v4365_v22 = vpop.eup %4364 }
 0x39c   : > { %v1889_v37 = vsel %vm1616_vm15, %v5937_v21, %v5885_v1  ;;  %v5968_v34 = vmul.f32 %v4365_v22, %v5547_v18  ;;  %v7868_v18 = vrot.slane %v5846_v23, 1  ;;  %v7869_v22 = vrot.slane %v5765_v0, 1 }
 0x39d   : > { %7861 = vst [vmem:[#allocation6_spill] sm:$0xff] %v5935_v40  ;;  %v5947_v19 = vmul.f32 %v7860_v31, %v1889_v37  ;;  %v5949_v61 = vpop.permute.xlu0 %2005  ;;  %1708 = vrot.lane.b32.xlu1 %v5913_v58, %s4570_s8  ;;  %v5960_v40 = vsel %vm714_vm5, %v1409_v13, %v1411_v50  ;;  %v1427_v13 = vsel %vm714_vm5, %v1411_v50, %v7867_v20  ;;  %v3826_v37 = vld [vmem:[%s7671_s1 + $0x60] ss:$8 sm:$0x3]  ;;  %v7871_v50 = vld [vmem:[#allocation16_spill] sm:$0xff] }
 0x39e   : > { %7862 = vst [vmem:[#allocation49_spill] sm:$0xff] %v5949_v61  ;;  %7864 = vst [vmem:[#allocation51_spill] sm:$0xff] %v5960_v40  ;;  %v1975_v45 = vsel %vm929_vm4, %v7869_v22, %v7868_v18  ;;  %v5996_v20 = vmul.f32 %v7871_v50, %v1427_v13  ;;  %v3828_v22 = vld [vmem:[%s7671_s1 + $0x62] ss:$8 sm:$0x3]  ;;  %v6018_v24 = vrot.slane %v3826_v37, %v5479_v41 }
 0x39f   : > { %1473 = vrot.lane.b32.xlu0 %v5954_v52, %s4570_s8  ;;  %v1448_v17 = vpop.permute.xlu1 %1447  ;;  %7866 = vst [vmem:[#allocation53_spill] sm:$0xff] %v5968_v34  ;;  %v6021_v35 = vmul.f32 %v7874_v4, %v1975_v45  ;;  %v6036_v45 = vrot.slane %v3828_v22, %v5479_v41 }
 0x3a0   : > { %7872 = vst [vmem:[#allocation55_spill] sm:$0xff] %v5996_v20 }
 0x3a1   : > { %v5963_v46 = vpop.permute.xlu0 %2159  ;;  %1459 = vrot.lane.b32.xlu1 %v5960_v40, %s4570_s8  ;;  %7875 = vst [vmem:[#allocation57_spill] sm:$0xff] %v6021_v35 }
 0x3a2   : > { %7865 = vst [vmem:[#allocation52_spill] sm:$0xff] %v5963_v46 }
 0x3a3   : > { %1612 = vrot.lane.b32.xlu0 %v5954_v52, %s4571_s9  ;;  %v1587_v32 = vpop.permute.xlu1 %1586  ;;  %v5999_v52 = vrot.slane %v3826_v37, %v5485_v33  ;;  %v1554_v37 = vmul.f32 %v6002_v44, %v5583_v59  ;;  %v3829_v59 = vld [vmem:[%s7671_s1 + $0x63] ss:$8 sm:$0x3] }
 0x3a4   : > { %v6065_v42 = vrot.slane %v3829_v59, %v5479_v41 }
 0x3a5   : > { %v5991_v3 = vpop.permute.xlu0 %2021  ;;  %1598 = vrot.lane.b32.xlu1 %v5960_v40, %s4571_s9  ;;  %v1412_v40 = vrot.slane %v5968_v34, 7 }
 0x3a6   : > { %7870 = vst [vmem:[#allocation54_spill] sm:$0xff] %v5991_v3  ;;  %v2045_v18 = vsel %vm1477_vm14, %v5991_v3, %v5949_v61 }
 0x3a7   : > { %v6013_v13 = vmul.f32 %v7855_v38, %v2045_v18  ;;  %1445 = vrot.lane.b32.xlu0 %v5996_v20, %s4570_s8  ;;  %v1464_v56 = vpop.permute.xlu1 %1463  ;;  %v1555_v18 = vmul.f32 %v5989_v53, %v5602_v16  ;;  %v6045_v16 = vrot.slane %v3828_v22, %v5485_v33 }
 0x3a8   : > { %v1479_v61 = vsel %vm1477_vm14, %v1448_v17, %v1464_v56  ;;  %v1487_v3 = vsel %vm1477_vm14, %v1464_v56, %v1448_v17 }
 0x3a9   : > { %7873 = vst [vmem:[#allocation56_spill] sm:$0xff] %v6013_v13  ;;  %v1496_v13 = vmul.f32 %v7855_v38, %v1487_v3  ;;  %v1526_v0 = vmul.f32 %v5999_v52, %v1479_v61  ;;  %v6031_v57 = vpop.permute.xlu0 %2175  ;;  %2015 = vrot.lane.b32.xlu1 %v6021_v35, %s4570_s8  ;;  %v3830_v61 = vld [vmem:[%s7671_s1 + $0x64] ss:$8 sm:$0x3]  ;;  %v7877_v3 = vrot.slane %v5553_v51, 7 }
 0x3aa   : > { %7876 = vst [vmem:[#allocation58_spill] sm:$0xff] %v6031_v57  ;;  %v2199_v56 = vsel %vm1616_vm15, %v6031_v57, %v5963_v46 }
 0x3ab   : > { %v1428_v17 = vsel %vm714_vm5, %v1412_v40, %v7877_v3  ;;  %v1525_v10 = vmul.f32 %v6018_v24, %v1496_v13  ;;  %v1571_v43 = vadd.f32 %v1555_v18, %v1526_v0  ;;  %v6059_v46 = vmul.f32 %v7860_v31, %v2199_v56  ;;  %1584 = vrot.lane.b32.xlu0 %v5996_v20, %s4571_s9  ;;  %v1603_v22 = vpop.permute.xlu1 %1602  ;;  %v3831_v18 = vld [vmem:[%s7671_s1 + $0x65] ss:$8 sm:$0x3] }
 0x3ac   : > { %v1618_v3 = vsel %vm1616_vm15, %v1587_v32, %v1603_v22  ;;  %v1626_v14 = vsel %vm1616_vm15, %v1603_v22, %v1587_v32  ;;  %v7879_v0 = vrot.slane %v5880_v2, 7  ;;  %v6087_v32 = vmul.f32 %v7871_v50, %v1428_v17 }
 0x3ad   : > { %7878 = vst [vmem:[#allocation59_spill] sm:$0xff] %v6059_v46  ;;  %v1570_v56 = vadd.f32 %v1554_v37, %v1525_v10  ;;  %v1636_v57 = vmul.f32 %v7860_v31, %v1626_v14  ;;  %v1664_v46 = vmul.f32 %v6036_v45, %v1618_v3  ;;  %v6082_v20 = vpop.permute.xlu0 %1698  ;;  %v1727_v10 = vsel %vm1477_vm14, %v5867_v15, %v5908_v49 }
 0x3ae   : > { %v6075_v13 = vsel %vm714_vm5, %v7879_v0, %v1412_v40  ;;  %7881 = vst [vmem:[#allocation61_spill] sm:$0xff] %v6087_v32  ;;  %v6090_v40 = vrot.slane %v3829_v59, %v5485_v33  ;;  %v6097_v14 = vrot.slane %v3830_v61, %v5479_v41  ;;  %v1773_v37 = vmul.f32 %v6065_v42, %v5920_v47 }
 0x3af   : > { %7880 = vst [vmem:[#allocation60_spill] sm:$0xff] %v6075_v13  ;;  %1475 = vrot.lane.b32.xlu1 %v6075_v13, %s4570_s8  ;;  %v1665_v22 = vmul.f32 %v6045_v16, %v1636_v57  ;;  %v1680_v3 = vadd.f32 %v1664_v46, %v1570_v56  ;;  %1461 = vrot.lane.b32.xlu0 %v6087_v32, %s4570_s8  ;;  %v6104_v17 = vpop.permute.xlu1 %1700  ;;  %v7883_v59 = vrot.slane %v5880_v2, 1  ;;  %v7884_v0 = vrot.slane %v5782_v12, 1 }
 0x3b0   : > { %7882 = vst [vmem:[#allocation62_spill] sm:$0xff] %v6090_v40  ;;  %v6113_v49 = vrot.slane %v3831_v18, %v5479_v41  ;;  %v1881_v46 = vsel %vm1616_vm15, %v5885_v1, %v5937_v21  ;;  %v6120_v47 = vrot.slane %v3830_v61, %v5485_v33  ;;  %v1774_v57 = vmul.f32 %v6090_v40, %v1727_v10 }
 0x3b1   : > { %v1976_v15 = vsel %vm929_vm4, %v7884_v0, %v7883_v59  ;;  %v1818_v56 = vmul.f32 %v6097_v14, %v5556_v30  ;;  %v1681_v50 = vadd.f32 %v1665_v22, %v1571_v43  ;;  %v1789_v12 = vadd.f32 %v1773_v37, %v1680_v3  ;;  %v6125_v11 = vpop.permute.xlu0 %1852 }
 0x3b2   : > { %7885 = vst [vmem:[#allocation63_spill] sm:$0xff] %v6113_v49  ;;  %v6130_v59 = vrot.slane %v3831_v18, %v5485_v33  ;;  %v6133_v1 = vmul.f32 %v7874_v4, %v1976_v15  ;;  %v1927_v21 = vmul.f32 %v6113_v49, %v1881_v46  ;;  %v1819_v43 = vmul.f32 %v6120_v47, %v5561_v29  ;;  %v3832_v4 = vld [vmem:[%s7671_s1 + $0x66] ss:$8 sm:$0x3] }
 0x3b3   : > { %1614 = vrot.lane.b32.xlu1 %v6075_v13, %s4571_s9  ;;  %v1790_v61 = vadd.f32 %v1774_v57, %v1681_v50  ;;  %v1834_v10 = vadd.f32 %v1818_v56, %v1789_v12  ;;  %1600 = vrot.lane.b32.xlu0 %v6087_v32, %s4571_s9  ;;  %v6138_v30 = vpop.permute.xlu1 %1854 }
 0x3b4   : > { %7886 = vst [vmem:[#allocation64_spill] sm:$0xff] %v6130_v59  ;;  %7887 = vst [vmem:[#allocation65_spill] sm:$0xff] %v6133_v1  ;;  %v1928_v37 = vmul.f32 %v6130_v59, %v5947_v19 }
 0x3b5   : > { %v1715_v18 = vpop.permute.xlu0 %1714  ;;  %v1835_v22 = vadd.f32 %v1819_v43, %v1790_v61  ;;  %v6146_v3 = vadd.f32 %v1927_v21, %v1834_v10 }
 0x3b6   : > { %v1736_v12 = vsel %vm1477_vm14, %v1715_v18, %v6082_v20 }
 0x3b7   : > { %2031 = vrot.lane.b32.xlu1 %v6133_v1, %s4570_s8  ;;  %7888 = vst [vmem:[#allocation66_spill] sm:$0xff] %v6146_v3  ;;  %v6152_v50 = vmul.f32 %v7855_v38, %v1736_v12  ;;  %1722 = vrot.lane.b32.xlu0 %v5880_v2, %s4570_s8  ;;  %v1717_v29 = vpop.permute.xlu1 %1716  ;;  %v6156_v0 = vadd.f32 %v1928_v37, %v1835_v22  ;;  %v7895_v3 = vrot.slane %v5550_v28, 1 }
 0x3b8   : > { %v1737_v19 = vsel %vm1477_vm14, %v1717_v29, %v6104_v17 }
 0x3b9   : > { %7889 = vst [vmem:[#allocation67_spill] sm:$0xff] %v6156_v0  ;;  %v6162_v15 = vmul.f32 %v7855_v38, %v1737_v19  ;;  %v6164_v46 = vpop.permute.xlu0 %1868  ;;  %v3833_v19 = vld [vmem:[%s7671_s1 + $0x67] ss:$8 sm:$0x3] }
 0x3ba   : > { %v1890_v57 = vsel %vm1616_vm15, %v6164_v46, %v6125_v11  ;;  %v6218_v13 = vrot.slane %v3833_v19, %v5485_v33 }
 0x3bb   : > { %1724 = vrot.lane.b32.xlu1 %v5968_v34, %s4570_s8  ;;  %v6173_v56 = vmul.f32 %v7860_v31, %v1890_v57  ;;  %2167 = vrot.lane.b32.xlu0 %v5824_v9, %s4571_s9  ;;  %v6177_v21 = vpop.permute.xlu1 %1870  ;;  %v1971_v57 = vrot.slane %v5913_v58, 1  ;;  %v3834_v9 = vld [vmem:[%s7671_s1 + $0x70] ss:$8 sm:$0x3] }
 0x3bc   : > { %v1891_v61 = vsel %vm1616_vm15, %v6177_v21, %v6138_v30  ;;  %7893 = vst [vmem:[#allocation71_spill] sm:$0xff] %v6218_v13 }
 0x3bd   : > { %v6184_v10 = vmul.f32 %v7860_v31, %v1891_v61  ;;  %v1450_v43 = vpop.permute.xlu0 %1449 }
 0x3bf   : > { %7890 = vst [vmem:[#allocation68_spill] sm:$0xff] %v6184_v10  ;;  %2169 = vrot.lane.b32.xlu1 %v6021_v35, %s4571_s9  ;;  %2183 = vrot.lane.b32.xlu0 %v5864_v63, %s4571_s9  ;;  %v1452_v37 = vpop.permute.xlu1 %1451  ;;  %v1972_v35 = vrot.slane %v5968_v34, 1  ;;  %v6225_v63 = vrot.slane %v3832_v4, %v5479_v41  ;;  %v1987_v10 = vsel %vm929_vm4, %v1971_v57, %v7895_v3 }
 0x3c0   : > { %v6257_v3 = vmul.f32 %v6218_v13, %v5663_v27  ;;  %v1728_v27 = vsel %vm1477_vm14, %v6082_v20, %v1715_v18  ;;  %v6297_v20 = vmul.f32 %v6097_v14, %v5608_v6  ;;  %v1729_v18 = vsel %vm1477_vm14, %v6104_v17, %v1717_v29  ;;  %v4166_v17 = vld [vmem:[%s7672_s2 + $0x200] ss:$8 sps:$4 sm:$0xff]  }
 0x3c1   : > { %v6190_v22 = vpop.permute.xlu0 %1588  ;;  %7894 = vst [vmem:[#allocation72_spill] sm:$0xff] %v6225_v63  ;;  %v6247_v63 = vrot.slane %v3832_v4, %v5485_v33  ;;  %v7898_v4 = vrot.slane %v5553_v51, 1  ;;  %v6293_v51 = vmul.f32 %v6097_v14, %v5588_v55  ;;  %v6312_v55 = vmul.f32 %v6120_v47, %v5605_v36  ;;  %v4167_v29 = vld [vmem:[%s7672_s2 + $0x180] ss:$8 sps:$4 sm:$0xff]   ;;  %3928 = vmatprep.subr.bf16.mxu1 %v4166_v17 }
 0x3c2   : > { %3929 = vmatpush3.bf16.msra.mxu1 %v4167_v29 }
 0x3c3   : > { %2185 = vrot.lane.b32.xlu1 %v6133_v1, %s4571_s9  ;;  %1860 = vrot.lane.b32.xlu0 %v5846_v23, %s4571_s9  ;;  %v6196_v12 = vpop.permute.xlu1 %1590  ;;  %v6211_v1 = vrot.slane %v3833_v19, %v5479_v41  ;;  %v6236_v19 = vmul.f32 %v6002_v44, %v5634_v48  ;;  %v1559_v48 = vmul.f32 %v5989_v53, %v5657_v8 }
 0x3c4   : > { %v1988_v28 = vsel %vm929_vm4, %v1972_v35, %v7898_v4  ;;  %v6274_v8 = vrot.slane %v3834_v9, %v5479_v41  ;;  %v6287_v4 = vrot.slane %v3834_v9, %v5485_v33  ;;  %v7901_v9 = vrot.slane %v5880_v2, 1 }
 0x3c5   : > { %v6202_v61 = vpop.permute.xlu0 %2009  ;;  %7891 = vst [vmem:[#allocation69_spill] sm:$0xff] %v6211_v1  ;;  %v6244_v0 = vmul.f32 %v6211_v1, %v5725_v54 }
 0x3c7   : > { %1862 = vrot.lane.b32.xlu1 %v5913_v58, %s4571_s9  ;;  %1876 = vrot.lane.b32.xlu0 %v5880_v2, %s4571_s9  ;;  %v6215_v32 = vpop.permute.xlu1 %2007  ;;  %v6222_v58 = vmul.f32 %v6002_v44, %v5698_v25  ;;  %v6240_v25 = vmul.f32 %v6211_v1, %v5640_v5  ;;  %v7896_v5 = vrot.slane %v5846_v23, 1  ;;  %v6324_v2 = vmul.f32 %v6090_v40, %v1728_v27 }
 0x3c8   : > { %7892 = vst [vmem:[#allocation70_spill] sm:$0xff] %v6215_v32 }
 0x3c9   : > { %v6249_v32 = vpop.permute.xlu0 %2163  ;;  %v6263_v54 = vsel %vm929_vm4, %v7896_v5, %v1971_v57  ;;  %v7899_v5 = vld [vmem:[#allocation19_spill] sm:$0xff] }
 0x3ca   : > { %7897 = vst [vmem:[#allocation73_spill] sm:$0xff] %v6263_v54  ;;  %v6284_v23 = vmul.f32 %v7899_v5, %v1987_v10  ;;  %v6315_v6 = vmul.f32 %v7899_v5, %v1988_v28  ;;  %v6332_v28 = vmul.f32 %v6120_v47, %v5622_v60  ;;  %v1775_v5 = vmul.f32 %v6065_v42, %v6152_v50 }
 0x3cb   : > { %1878 = vrot.lane.b32.xlu1 %v5968_v34, %s4571_s9  ;;  %v6271_v34 = vmul.f32 %v6218_v13, %v5752_v7  ;;  %2017 = vrot.lane.b32.xlu0 %v6263_v54, %s4570_s8  ;;  %v6281_v57 = vpop.permute.xlu1 %2161  ;;  %v1557_v7 = vmul.f32 %v5989_v53, %v5738_v62  ;;  %v6308_v62 = vsel %vm929_vm4, %v7901_v9, %v1972_v35  ;;  %v4168_v9 = vld [vmem:[%s7672_s2 + $0x210] ss:$8 sps:$4 sm:$0xff]  }
 0x3cc   : > { %7900 = vst [vmem:[#allocation74_spill] sm:$0xff] %v6284_v23  ;;  %7902 = vst [vmem:[#allocation75_spill] sm:$0xff] %v6308_v62  ;;  %v1882_v60 = vsel %vm1616_vm15, %v6125_v11, %v6164_v46  ;;  %v1777_v11 = vmul.f32 %v6065_v42, %v6162_v15  ;;  %3930 = vmatprep.subr.bf16.mxu1 %v4168_v9 }
 0x3cd   : > { %v1466_v10 = vpop.permute.xlu0 %1465  ;;  %7903 = vst [vmem:[#allocation76_spill] sm:$0xff] %v6315_v6 }
 0x3ce   : > { %v1480_v35 = vsel %vm1477_vm14, %v1450_v43, %v1466_v10  ;;  %v1488_v36 = vsel %vm1477_vm14, %v1466_v10, %v1450_v43  ;;  %v6344_v43 = vmul.f32 %v6090_v40, %v1729_v18 }
 0x3cf   : > { %2019 = vrot.lane.b32.xlu1 %v6284_v23, %s4570_s8  ;;  %v1498_v27 = vmul.f32 %v7855_v38, %v1488_v36  ;;  %v1528_v39 = vmul.f32 %v5999_v52, %v1480_v35  ;;  %2033 = vrot.lane.b32.xlu0 %v6308_v62, %s4570_s8  ;;  %v1468_v1 = vpop.permute.xlu1 %1467  ;;  %v4169_v35 = vld [vmem:[%s7672_s2 + $0x190] ss:$8 sps:$4 sm:$0xff]  }
 0x3d0   : > { %v1481_v50 = vsel %vm1477_vm14, %v1452_v37, %v1468_v1  ;;  %v1489_v10 = vsel %vm1477_vm14, %v1468_v1, %v1452_v37  ;;  %v1883_v1 = vsel %vm1616_vm15, %v6138_v30, %v6177_v21  ;;  %v4170_v37 = vld [vmem:[%s7672_s2 + $0x220] ss:$8 sps:$4 sm:$0xff]   ;;  %3931 = vmatpush3.bf16.msra.mxu1 %v4169_v35 }
 0x3d1   : > { %v1527_v17 = vmul.f32 %v6018_v24, %v1498_v27  ;;  %v1573_v18 = vadd.f32 %v1557_v7, %v1528_v39  ;;  %v1500_v36 = vmul.f32 %v7855_v38, %v1489_v10  ;;  %v1530_v13 = vmul.f32 %v5999_v52, %v1481_v50  ;;  %v1605_v40 = vpop.permute.xlu0 %1604  ;;  %3932 = vmatprep.subr.bf16.mxu1 %v4170_v37  ;;  %v7904_v37 = vld [vmem:[#allocation70_spill] sm:$0xff] }
 0x3d2   : > { %v1619_v39 = vsel %vm1616_vm15, %v6190_v22, %v1605_v40  ;;  %v1627_v46 = vsel %vm1616_vm15, %v1605_v40, %v6190_v22  ;;  %v1929_v27 = vmul.f32 %v6113_v49, %v1882_v60  ;;  %v1931_v35 = vmul.f32 %v6113_v49, %v1883_v1 }
 0x3d3   : > { %2173 = vrot.lane.b32.xlu1 %v6284_v23, %s4571_s9  ;;  %v1529_v15 = vmul.f32 %v6018_v24, %v1500_v36  ;;  %v1575_v7 = vadd.f32 %v1559_v48, %v1530_v13  ;;  %v1572_v29 = vadd.f32 %v6222_v58, %v1527_v17  ;;  %v1638_v30 = vmul.f32 %v7860_v31, %v1627_v46  ;;  %v1607_v21 = vpop.permute.xlu1 %1606  ;;  %v4171_v58 = vld [vmem:[%s7672_s2 + $0x1a0] ss:$8 sps:$4 sm:$0xff]  }
 0x3d4   : > { %2171 = vrot.lane.b32.xlu0 %v6263_v54, %s4571_s9  ;;  %v1666_v40 = vmul.f32 %v6036_v45, %v1619_v39  ;;  %v1620_v22 = vsel %vm1616_vm15, %v6196_v12, %v1607_v21  ;;  %v1628_v13 = vsel %vm1616_vm15, %v1607_v21, %v6196_v12  ;;  %v1930_v12 = vmul.f32 %v6130_v59, %v6173_v56 }
 0x3d5   : > { %v1667_v48 = vmul.f32 %v6045_v16, %v1638_v30  ;;  %v1574_v9 = vadd.f32 %v6236_v19, %v1529_v15  ;;  %v1640_v60 = vmul.f32 %v7860_v31, %v1628_v13  ;;  %v1668_v50 = vmul.f32 %v6036_v45, %v1620_v22  ;;  %v2026_v10 = vpop.permute.xlu0 %2025  ;;  %v4172_v19 = vld [vmem:[%s7672_s2 + $0x230] ss:$8 sps:$4 sm:$0xff]   ;;  %3933 = vmatpush3.bf16.msra.mxu1 %v4171_v58 }
 0x3d6   : > { %v1682_v17 = vadd.f32 %v1666_v40, %v1572_v29  ;;  %v2047_v36 = vsel %vm1477_vm14, %v2026_v10, %v6202_v61  ;;  %v2039_v29 = vsel %vm1477_vm14, %v6202_v61, %v2026_v10  ;;  %v4173_v40 = vld [vmem:[%s7672_s2 + $0x1b0] ss:$8 sps:$4 sm:$0xff]   ;;  %3934 = vmatprep.subr.bf16.mxu1 %v4172_v19 }
 0x3d7   : > { %2035 = vrot.lane.b32.xlu1 %v6315_v6, %s4570_s8  ;;  %v1683_v39 = vadd.f32 %v1667_v48, %v1573_v18  ;;  %v1669_v46 = vmul.f32 %v6045_v16, %v1640_v60  ;;  %v1684_v15 = vadd.f32 %v1668_v50, %v1574_v9  ;;  %v2057_v30 = vmul.f32 %v7855_v38, %v2047_v36  ;;  %v2024_v56 = vpop.permute.xlu1 %2023  ;;  %v7905_v48 = vld [vmem:[#allocation72_spill] sm:$0xff] }
 0x3d8   : > { %2187 = vrot.lane.b32.xlu0 %v6308_v62, %s4571_s9  ;;  %v1791_v1 = vadd.f32 %v1775_v5, %v1682_v17  ;;  %v2038_v21 = vsel %vm1477_vm14, %v7904_v37, %v2024_v56  ;;  %v2046_v18 = vsel %vm1477_vm14, %v2024_v56, %v7904_v37  ;;  %v7908_v37 = vld [vmem:[#allocation66_spill] sm:$0xff] }
 0x3d9   : > { %v1792_v22 = vadd.f32 %v6324_v2, %v1683_v39  ;;  %v1685_v5 = vadd.f32 %v1669_v46, %v1575_v7  ;;  %v1793_v13 = vadd.f32 %v1777_v11, %v1684_v15  ;;  %v2086_v9 = vmul.f32 %v7905_v48, %v2057_v30  ;;  %v2180_v61 = vpop.permute.xlu0 %2179  ;;  %v7906_v46 = vld [vmem:[#allocation67_spill] sm:$0xff]  ;;  %3935 = vmatpush3.bf16.msra.mxu1 %v4173_v40 }
 0x3da   : > { %v1836_v60 = vadd.f32 %v6293_v51, %v1791_v1  ;;  %v2055_v50 = vmul.f32 %v7855_v38, %v2046_v18  ;;  %v2085_v58 = vmul.f32 %v6247_v63, %v2038_v21  ;;  %v2193_v10 = vsel %vm1616_vm15, %v6249_v32, %v2180_v61 }
 0x3db   : > { %2189 = vrot.lane.b32.xlu1 %v6315_v6, %s4571_s9  ;;  %v1794_v2 = vadd.f32 %v6344_v43, %v1685_v5  ;;  %v1838_v11 = vadd.f32 %v6297_v20, %v1793_v13  ;;  %v1837_v7 = vadd.f32 %v6312_v55, %v1792_v22  ;;  %v2201_v17 = vsel %vm1616_vm15, %v2180_v61, %v6249_v32  ;;  %v2178_v51 = vpop.permute.xlu1 %2177 }
 0x3dc   : > { %v1945_v36 = vadd.f32 %v1929_v27, %v1836_v60  ;;  %v2084_v39 = vmul.f32 %v7905_v48, %v2055_v50  ;;  %v2101_v15 = vadd.f32 %v2085_v58, %v7906_v46  ;;  %v2212_v30 = vmul.f32 %v7860_v31, %v2201_v17  ;;  %v7907_v27 = vld [vmem:[#allocation68_spill] sm:$0xff] }
 0x3dd   : > { %v1946_v19 = vadd.f32 %v1930_v12, %v1837_v7  ;;  %v2087_v43 = vmul.f32 %v6247_v63, %v2039_v29  ;;  %v2192_v20 = vsel %vm1616_vm15, %v6281_v57, %v2178_v51  ;;  %v2200_v32 = vsel %vm1616_vm15, %v2178_v51, %v6281_v57  ;;  %v6450_v55 = vpop.permute.xlu0 %1702 }
 0x3de   : > { %v1932_v56 = vmul.f32 %v6130_v59, %v7907_v27  ;;  %v2102_v1 = vadd.f32 %v2086_v9, %v1945_v36  ;;  %v2100_v21 = vadd.f32 %v2084_v39, %v7908_v37  ;;  %v2146_v12 = vadd.f32 %v6271_v34, %v2101_v15  ;;  %v4176_v39 = vld [vmem:[%s7672_s2 + $0x250] ss:$8 sps:$4 sm:$0xff]  }
 0x3df   : > { %v2103_v18 = vadd.f32 %v2087_v43, %v1946_v19  ;;  %v2240_v29 = vmul.f32 %v6274_v8, %v2193_v10  ;;  %v2210_v40 = vmul.f32 %v7860_v31, %v2200_v32  ;;  %v6458_v22 = vpop.permute.xlu1 %1704  ;;  %v1839_v5 = vadd.f32 %v6332_v28, %v1794_v2  ;;  %v4177_v19 = vld [vmem:[%s7672_s2 + $0x1d0] ss:$8 sps:$4 sm:$0xff]   ;;  %v4178_v32 = vld [vmem:[%s7672_s2 + $0x260] ss:$8 sps:$4 sm:$0xff]  }
 0x3e0   : > { %v2147_v57 = vadd.f32 %v6240_v25, %v2102_v1  ;;  %v2145_v13 = vadd.f32 %v6244_v0, %v2100_v21  ;;  %v2238_v61 = vmul.f32 %v6274_v8, %v2192_v20  ;;  %v6464_v9 = vadd.f32 %v1931_v35, %v1838_v11  ;;  %v4175_v11 = vld [vmem:[%s7672_s2 + $0x1c0] ss:$8 sps:$4 sm:$0xff]  }
 0x3e1   : > { %v2148_v60 = vadd.f32 %v6257_v3, %v2103_v18  ;;  %v2241_v34 = vmul.f32 %v6287_v4, %v2212_v30  ;;  %v2239_v50 = vmul.f32 %v6287_v4, %v2210_v40  ;;  %v1857_v58 = vpop.permute.xlu0 %1856  ;;  %v6469_v10 = vadd.f32 %v1932_v56, %v1839_v5  ;;  %v4174_v3 = vld [vmem:[%s7672_s2 + $0x240] ss:$8 sps:$4 sm:$0xff]  }
 0x3e2   : > { %v2256_v7 = vadd.f32 %v2240_v29, %v2147_v57  ;;  %v6471_v17 = vadd.f32 %v2238_v61, %v2145_v13  ;;  %3936 = vmatprep.subr.bf16.mxu1 %v4174_v3  ;;  %v4179_v18 = vld [vmem:[%s7672_s2 + $0x1e0] ss:$8 sps:$4 sm:$0xff]   ;;  %v4180_v29 = vld [vmem:[%s7672_s2 + $0x270] ss:$8 sps:$4 sm:$0xff]  }
 0x3e3   : > { %v2257_v28 = vadd.f32 %v2241_v34, %v2148_v60  ;;  %v6473_v25 = vadd.f32 %v2239_v50, %v2146_v12  ;;  %v1859_v0 = vpop.permute.xlu1 %1858  ;;  %3937 = vmatpush3.bf16.msra.mxu1 %v4175_v11  ;;  %v4181_v57 = vld [vmem:[%s7672_s2 + $0x1f0] ss:$8 sps:$4 sm:$0xff]   ;;  %v3835_v13 = vld [vmem:[%s7671_s1 + $0x80] ss:$8 sm:$0x3] }
 0x3e4   : > { %3938 = vmatprep.subr.bf16.mxu1 %v4176_v39  ;;  %v6533_v34 = vrot.slane %v3835_v13, %v5479_v41  ;;  %v6536_v50 = vrot.slane %v3835_v13, %v5485_v33 }
 0x3e5   : > { %v1719_v2 = vpop.permute.xlu0 %1718 }
 0x3e6   : > { %v1738_v35 = vsel %vm1477_vm14, %v1719_v2, %v6450_v55  ;;  %7909 = vst [vmem:[#allocation70_spill] sm:$0xff] %v6533_v34  ;;  %7910 = vst [vmem:[#allocation72_spill] sm:$0xff] %v6536_v50  ;;  %v6548_v39 = vadd.f32 %v6533_v34, %v2256_v7 }
 0x3e7   : > { %v6485_v51 = vmul.f32 %v7855_v38, %v1738_v35  ;;  %v1721_v36 = vpop.permute.xlu1 %1720  ;;  %3939 = vmatpush3.bf16.msra.mxu1 %v4177_v19  ;;  %v7913_v19 = vld [vmem:[#allocation35_spill] sm:$0xff] }
 0x3e8   : > { %v1739_v46 = vsel %vm1477_vm14, %v1721_v36, %v6458_v22  ;;  %3940 = vmatprep.subr.bf16.mxu1 %v4178_v32  ;;  %7911 = vst [vmem:[#allocation67_spill] sm:$0xff] %v6548_v39 }
 0x3e9   : > { %v6494_v15 = vmul.f32 %v7855_v38, %v1739_v46  ;;  %v1873_v30 = vpop.permute.xlu0 %1872  ;;  %v7912_v46 = vld [vmem:[#allocation34_spill] sm:$0xff] }
 0x3ea   : > { %v6501_v43 = vsel %vm1616_vm15, %v1857_v58, %v1873_v30  ;;  %v1892_v20 = vsel %vm1616_vm15, %v1873_v30, %v1857_v58  ;;  %v1560_v30 = vmul.f32 %v6002_v44, %v7912_v46 }
 0x3eb   : > { %v6509_v27 = vmul.f32 %v7860_v31, %v1892_v20  ;;  %v1875_v56 = vpop.permute.xlu1 %1874  ;;  %3941 = vmatpush3.bf16.msra.mxu1 %v4179_v18  ;;  %v1562_v20 = vmul.f32 %v6002_v44, %v7913_v19  ;;  %v7915_v18 = vld [vmem:[#allocation38_spill] sm:$0xff]  ;;  %v7918_v19 = vld [vmem:[#allocation31_spill] sm:$0xff] }
 0x3ec   : > { %v6513_v1 = vsel %vm1616_vm15, %v1859_v0, %v1875_v56  ;;  %v1893_v37 = vsel %vm1616_vm15, %v1875_v56, %v1859_v0  ;;  %3942 = vmatprep.subr.bf16.mxu1 %v4180_v29  ;;  %v6541_v0 = vadd.f32 %v6536_v50, %v2257_v28  ;;  %v1730_v28 = vsel %vm1477_vm14, %v6450_v55, %v1719_v2  ;;  %v7916_v29 = vld [vmem:[#allocation30_spill] sm:$0xff]  ;;  %v7917_v2 = vld [vmem:[#allocation32_spill] sm:$0xff] }
 0x3ed   : > { %v6518_v21 = vmul.f32 %v7860_v31, %v1893_v37  ;;  %v1454_v12 = vpop.permute.xlu0 %1453  ;;  %v7914_v37 = vld [vmem:[#allocation40_spill] sm:$0xff]  ;;  %v1561_v7 = vmul.f32 %v5989_v53, %v7915_v18  ;;  %v6573_v33 = vmul.f32 %v6097_v14, %v7918_v19 }
 0x3ee   : > { %v2302_v13 = vsub.f32 0.0, %v6541_v0 }
 0x3ef   : > { %v1456_v40 = vpop.permute.xlu1 %1455  ;;  %3943 = vmatpush3.bf16.msra.mxu1 %v4181_v57  ;;  %v1824_v57 = vmul.f32 %v6097_v14, %v7916_v29 }
 0x3f1   : > { %v1593_v5 = vpop.permute.xlu0 %1592 }
 0x3f3   : > { %v1595_v61 = vpop.permute.xlu1 %1594 }
 0x3f5   : > { %v2014_v60 = vpop.permute.xlu0 %2013 }
 0x3f7   : > { %v6538_v58 = vpop.permute.xlu1 %2011 }
 0x3f9   : > { %v1470_v35 = vpop.permute.xlu0 %1469 }
 0x3fa   : > { %v1482_v3 = vsel %vm1477_vm14, %v1454_v12, %v1470_v35  ;;  %v1490_v11 = vsel %vm1477_vm14, %v1470_v35, %v1454_v12  ;;  %v1563_v12 = vmul.f32 %v5989_v53, %v7914_v37  ;;  %v7919_v37 = vld [vmem:[#allocation62_spill] sm:$0xff] }
 0x3fb   : > { %v1502_v32 = vmul.f32 %v7855_v38, %v1490_v11  ;;  %v6558_v56 = vpop.permute.xlu1 %2165  ;;  %v1532_v46 = vmul.f32 %v5999_v52, %v1482_v3  ;;  %v1825_v11 = vmul.f32 %v6120_v47, %v7917_v2  ;;  %v1780_v41 = vmul.f32 %v7919_v37, %v1730_v28 }
 0x3fc   : > { %v1731_v3 = vsel %vm1477_vm14, %v6458_v22, %v1721_v36  ;;  %v1779_v28 = vmul.f32 %v6065_v42, %v6485_v51 }
 0x3fd   : > { %v1531_v35 = vmul.f32 %v6018_v24, %v1502_v32  ;;  %v1609_v55 = vpop.permute.xlu0 %1608  ;;  %v2301_v32 = vsub.f32 0.0, %v6548_v39  ;;  %v1577_v54 = vadd.f32 %v1561_v7, %v1532_v46 }
 0x3fe   : > { %v1621_v18 = vsel %vm1616_vm15, %v1593_v5, %v1609_v55  ;;  %v1629_v29 = vsel %vm1616_vm15, %v1609_v55, %v1593_v5  ;;  %v2323_v55 = vmul.f32 1.442695, %v2302_v13 }
 0x3ff   : > { %v1576_v23 = vadd.f32 %v1560_v30, %v1531_v35  ;;  %v1642_v2 = vmul.f32 %v7860_v31, %v1629_v29  ;;  %v1670_v19 = vmul.f32 %v6036_v45, %v1621_v18  ;;  %v1472_v6 = vpop.permute.xlu1 %1471  ;;  %v1782_v35 = vmul.f32 %v7919_v37, %v1731_v3 }
 0x400   : > { %v1483_v62 = vsel %vm1477_vm14, %v1456_v40, %v1472_v6  ;;  %v1491_v5 = vsel %vm1477_vm14, %v1472_v6, %v1456_v40  ;;  %v1933_v6 = vmul.f32 %v6113_v49, %v6501_v43  ;;  %4366 = vpow2.f32 %v2323_v55 }
 0x401   : > { %v1671_v39 = vmul.f32 %v6045_v16, %v1642_v2  ;;  %v1686_v22 = vadd.f32 %v1670_v19, %v1576_v23  ;;  %v1504_v36 = vmul.f32 %v7855_v38, %v1491_v5  ;;  %v2030_v30 = vpop.permute.xlu0 %2029  ;;  %v1534_v18 = vmul.f32 %v5999_v52, %v1483_v62 }
 0x402   : > { %v2041_v51 = vsel %vm1477_vm14, %v2014_v60, %v2030_v30  ;;  %v2049_v29 = vsel %vm1477_vm14, %v2030_v30, %v2014_v60 }
 0x403   : > { %v1687_v40 = vadd.f32 %v1671_v39, %v1577_v54  ;;  %v1795_v7 = vadd.f32 %v1779_v28, %v1686_v22  ;;  %v1533_v23 = vmul.f32 %v6018_v24, %v1504_v36  ;;  %v1611_v13 = vpop.permute.xlu1 %1610  ;;  %v2061_v46 = vmul.f32 %v7855_v38, %v2049_v29 }
 0x404   : > { %v1622_v3 = vsel %vm1616_vm15, %v1595_v61, %v1611_v13  ;;  %v1630_v62 = vsel %vm1616_vm15, %v1611_v13, %v1595_v61  ;;  %v1781_v54 = vmul.f32 %v6065_v42, %v6494_v15  ;;  %v1934_v39 = vmul.f32 %v6130_v59, %v6509_v27 }
 0x405   : > { %v1796_v2 = vadd.f32 %v1780_v41, %v1687_v40  ;;  %v1840_v19 = vadd.f32 %v1824_v57, %v1795_v7  ;;  %v1578_v60 = vadd.f32 %v1562_v20, %v1533_v23  ;;  %v1644_v5 = vmul.f32 %v7860_v31, %v1630_v62  ;;  %v6609_v43 = vpop.permute.xlu0 %1706 }
 0x406   : > { %v1579_v28 = vadd.f32 %v1563_v12, %v1534_v18  ;;  %v1672_v22 = vmul.f32 %v6036_v45, %v1622_v3  ;;  %v2090_v61 = vmul.f32 %v7905_v48, %v2061_v46  ;;  %v2091_v57 = vmul.f32 %v6247_v63, %v2041_v51  ;;  %v7920_v51 = vld [vmem:[#allocation33_spill] sm:$0xff] }
 0x407   : > { %v1841_v36 = vadd.f32 %v1825_v11, %v1796_v2  ;;  %v1949_v30 = vadd.f32 %v1933_v6, %v1840_v19  ;;  %v1673_v41 = vmul.f32 %v6045_v16, %v1644_v5  ;;  %v2028_v20 = vpop.permute.xlu1 %2027  ;;  %v1827_v23 = vmul.f32 %v6120_v47, %v7920_v51 }
 0x408   : > { %v1688_v55 = vadd.f32 %v1672_v22, %v1578_v60  ;;  %v2040_v15 = vsel %vm1477_vm14, %v6538_v58, %v2028_v20  ;;  %v2048_v27 = vsel %vm1477_vm14, %v2028_v20, %v6538_v58  ;;  %v2321_v13 = vmul.f32 1.442695, %v2301_v32  ;;  %v7924_v22 = vld [vmem:[#allocation69_spill] sm:$0xff] }
 0x409   : > { %v1950_v12 = vadd.f32 %v1934_v39, %v1841_v36  ;;  %v6625_v18 = vadd.f32 %v2090_v61, %v1949_v30  ;;  %v1689_v11 = vadd.f32 %v1673_v41, %v1579_v28  ;;  %v2059_v29 = vmul.f32 %v7855_v38, %v2048_v27  ;;  %v1458_v6 = vpop.permute.xlu0 %1457  ;;  %v7923_v28 = vld [vmem:[#allocation37_spill] sm:$0xff] }
 0x40a   : > { %v1797_v40 = vadd.f32 %v1781_v54, %v1688_v55  ;;  %v2089_v7 = vmul.f32 %v6247_v63, %v2040_v15  ;;  %v1935_v46 = vmul.f32 %v6113_v49, %v6513_v1  ;;  %v7921_v54 = vld [vmem:[#allocation2_spill] sm:$0xff]  ;;  %v7922_v1 = vld [vmem:[#allocation71_spill] sm:$0xff]  ;;  %v2133_v36 = vmul.f32 %v7924_v22, %v7923_v28 }
 0x40b   : > { %v6633_v3 = vadd.f32 %v2091_v57, %v1950_v12  ;;  %v1798_v58 = vadd.f32 %v1782_v35, %v1689_v11  ;;  %v2088_v62 = vmul.f32 %v7905_v48, %v2059_v29  ;;  %v2182_v2 = vpop.permute.xlu1 %2181  ;;  %v2134_v39 = vmul.f32 %v7922_v1, %v7921_v54  ;;  %v7925_v12 = vld [vmem:[#allocation20_spill] sm:$0xff]  ;;  %v7926_v29 = vld [vmem:[#allocation21_spill] sm:$0xff]  ;;  %v7933_v28 = vld [vmem:[#allocation50_spill] sm:$0xff] }
 0x40c   : > { %v1842_v19 = vadd.f32 %v6573_v33, %v1797_v40  ;;  %v2105_v60 = vadd.f32 %v2089_v7, %v6469_v10  ;;  %v2194_v5 = vsel %vm1616_vm15, %v6558_v56, %v2182_v2  ;;  %v2202_v32 = vsel %vm1616_vm15, %v2182_v2, %v6558_v56  ;;  %v4367_v10 = vpop.eup %4366  ;;  %v7929_v2 = vld [vmem:[#allocation42_spill] sm:$0xff] }
 0x40d   : > { %v2104_v35 = vadd.f32 %v2088_v62, %v6464_v9  ;;  %v2214_v33 = vmul.f32 %v7860_v31, %v2202_v32  ;;  %v1597_v30 = vpop.permute.xlu0 %1596  ;;  %v1936_v61 = vmul.f32 %v6130_v59, %v6518_v21  ;;  %v1843_v41 = vadd.f32 %v1827_v23, %v1798_v58  ;;  %v7928_v23 = vld [vmem:[#allocation36_spill] sm:$0xff] }
 0x40e   : > { %v6652_v20 = vadd.f32 %v1935_v46, %v1842_v19  ;;  %4368 = vpow2.f32 %v2321_v13  ;;  %v2150_v56 = vadd.f32 %v2134_v39, %v2105_v60  ;;  %v2242_v55 = vmul.f32 %v6274_v8, %v2194_v5  ;;  %v7931_v39 = vld [vmem:[#allocation51_spill] sm:$0xff] }
 0x40f   : > { %v2149_v57 = vadd.f32 %v2133_v36, %v2104_v35  ;;  %v2243_v9 = vmul.f32 %v6287_v4, %v2214_v33  ;;  %v6656_v15 = vpop.permute.xlu1 %1708  ;;  %v6658_v27 = vadd.f32 %v1936_v61, %v1843_v41  ;;  %v6662_v11 = vmul.f32 %v7924_v22, %v7925_v12  ;;  %v7934_v33 = vld [vmem:[#allocation46_spill] sm:$0xff] }
 0x410   : > { %v6666_v21 = vmul.f32 %v7922_v1, %v7926_v29  ;;  %v6670_v13 = vmul.f32 %v7924_v22, %v7928_v23  ;;  %v2350_v62 = vadd.f32 1.0, %v4367_v10  ;;  %v6678_v19 = vmul.f32 %v7922_v1, %v7929_v2 }
 0x411   : > { %v2258_v40 = vadd.f32 %v2242_v55, %v2149_v57  ;;  %v2259_v7 = vadd.f32 %v2243_v9, %v2150_v56  ;;  %v1474_v51 = vpop.permute.xlu0 %1473  ;;  %v6689_v35 = vmul.f32 %v6002_v44, %v7931_v39  ;;  %v1565_v36 = vmul.f32 %v5989_v53, %v7933_v28  ;;  %v7937_v39 = vld [vmem:[#allocation61_spill] sm:$0xff] }
 0x412   : > { %7927 = vst [vmem:[#allocation68_spill] sm:$0xff] %v6666_v21  ;;  %v1484_v46 = vsel %vm1477_vm14, %v1458_v6, %v1474_v51  ;;  %v1492_v58 = vsel %vm1477_vm14, %v1474_v51, %v1458_v6  ;;  %v6693_v6 = vadd.f32 %v6533_v34, %v6471_v17  ;;  %v1564_v10 = vmul.f32 %v6002_v44, %v7934_v33 }
 0x413   : > { %v6681_v60 = vadd.f32 %v6533_v34, %v2258_v40  ;;  %v1506_v5 = vmul.f32 %v7855_v38, %v1492_v58  ;;  %v1460_v32 = vpop.permute.xlu1 %1459  ;;  %v6685_v54 = vadd.f32 %v6536_v50, %v2259_v7  ;;  %v1536_v56 = vmul.f32 %v5999_v52, %v1484_v46  ;;  %v7936_v58 = vld [vmem:[#allocation60_spill] sm:$0xff]  ;;  %v7956_v34 = vld [vmem:[#allocation5_spill] sm:$0xff] }
 0x414   : > { %7932 = vst [vmem:[#allocation34_spill] sm:$0xff] %v6693_v6  ;;  %v6709_v12 = vadd.f32 %v6536_v50, %v6473_v25  ;;  %4370 = vrcp.f32 %v2350_v62  ;;  %v1567_v2 = vmul.f32 %v5989_v53, %v7936_v58 }
 0x415   : > { %7930 = vst [vmem:[#allocation66_spill] sm:$0xff] %v6685_v54  ;;  %v2303_v61 = vsub.f32 0.0, %v6681_v60  ;;  %v1535_v41 = vmul.f32 %v6018_v24, %v1506_v5  ;;  %v1613_v57 = vpop.permute.xlu0 %1612  ;;  %v2304_v55 = vsub.f32 0.0, %v6685_v54  ;;  %v2299_v5 = vsub.f32 0.0, %v6693_v6 }
 0x416   : > { %v1623_v9 = vsel %vm1616_vm15, %v1597_v30, %v1613_v57  ;;  %v1631_v17 = vsel %vm1616_vm15, %v1613_v57, %v1597_v30  ;;  %7935 = vst [vmem:[#allocation35_spill] sm:$0xff] %v6709_v12  ;;  %v1553_v30 = vmul.f32 %v5989_v53, %v7937_v39  ;;  %v1581_v25 = vadd.f32 %v1565_v36, %v1536_v56  ;;  %v7939_v57 = vld [vmem:[#allocation7_spill] sm:$0xff]  ;;  %v7942_v36 = vld [vmem:[#allocation41_spill] sm:$0xff]  ;;  %v7944_v39 = vld [vmem:[#allocation48_spill] sm:$0xff] }
 0x417   : > { %v2325_v29 = vmul.f32 1.442695, %v2303_v61  ;;  %v1580_v40 = vadd.f32 %v1564_v10, %v1535_v41  ;;  %v1646_v7 = vmul.f32 %v7860_v31, %v1631_v17  ;;  %v1674_v51 = vmul.f32 %v6036_v45, %v1623_v9  ;;  %v1599_v23 = vpop.permute.xlu1 %1598  ;;  %v7938_v61 = vld [vmem:[#allocation8_spill] sm:$0xff]  ;;  %v7940_v17 = vld [vmem:[#allocation55_spill] sm:$0xff] }
 0x418   : > { %v4369_v46 = vpop.eup %4368  ;;  %v2327_v28 = vmul.f32 1.442695, %v2304_v55  ;;  %v6723_v41 = vmul.f32 %v6097_v14, %v7938_v61  ;;  %v6727_v9 = vmul.f32 %v6120_v47, %v7939_v57  ;;  %v1552_v58 = vmul.f32 %v6002_v44, %v7940_v17  ;;  %v7941_v55 = vld [vmem:[#allocation45_spill] sm:$0xff]  ;;  %v7945_v61 = vld [vmem:[#allocation43_spill] sm:$0xff]  ;;  %v7946_v57 = vld [vmem:[#allocation54_spill] sm:$0xff] }
 0x419   : > { %4372 = vpow2.f32 %v2325_v29  ;;  %v1675_v62 = vmul.f32 %v6045_v16, %v1646_v7  ;;  %v6719_v33 = vadd.f32 %v1674_v51, %v1580_v40  ;;  %v1446_v10 = vpop.permute.xlu0 %1445  ;;  %v2300_v53 = vsub.f32 0.0, %v6709_v12  ;;  %v7943_v40 = vld [vmem:[#allocation65_spill] sm:$0xff] }
 0x41a   : > { %v1726_v56 = vsel %vm1477_vm14, %v7942_v36, %v7941_v55  ;;  %v6740_v7 = vmul.f32 %v7922_v1, %v7943_v40  ;;  %4374 = vpow2.f32 %v2327_v28  ;;  %v1880_v44 = vsel %vm1616_vm15, %v7945_v61, %v7944_v39  ;;  %v7947_v17 = vld [vmem:[#allocation49_spill] sm:$0xff]  ;;  %v7948_v55 = vld [vmem:[#allocation44_spill] sm:$0xff]  ;;  %v7951_v39 = vld [vmem:[#allocation39_spill] sm:$0xff] }
 0x41b   : > { %v6736_v29 = vpop.permute.xlu1 %2015  ;;  %v6742_v51 = vadd.f32 %v1675_v62, %v1581_v25  ;;  %v2037_v6 = vsel %vm1477_vm14, %v7947_v17, %v7946_v57  ;;  %v6754_v36 = vmul.f32 %v6120_v47, %v7948_v55  ;;  %v2349_v12 = vadd.f32 1.0, %v4369_v46  ;;  %v7949_v25 = vld [vmem:[#allocation53_spill] sm:$0xff]  ;;  %v7952_v17 = vld [vmem:[#allocation58_spill] sm:$0xff]  ;;  %v7953_v55 = vld [vmem:[#allocation52_spill] sm:$0xff] }
 0x41c   : > { %v2317_v40 = vmul.f32 1.442695, %v2299_v5  ;;  %v6758_v28 = vmul.f32 %v6120_v47, %v7949_v25  ;;  %v7950_v62 = vld [vmem:[#allocation57_spill] sm:$0xff]  ;;  %v6766_v61 = vmul.f32 %v6097_v14, %v7951_v39  ;;  %v6769_v57 = vmul.f32 %v7919_v37, %v1726_v56  ;;  %v7954_v5 = vld [vmem:[#allocation47_spill] sm:$0xff]  ;;  %v7957_v39 = vld [vmem:[#allocation6_spill] sm:$0xff] }
 0x41d   : > { %v1585_v1 = vpop.permute.xlu0 %1584  ;;  %v6762_v50 = vmul.f32 %v7924_v22, %v7950_v62  ;;  %v2191_v46 = vsel %vm1616_vm15, %v7953_v55, %v7952_v17  ;;  %v6777_v47 = vmul.f32 %v6097_v14, %v7954_v5  ;;  %v2319_v25 = vmul.f32 1.442695, %v2300_v53  ;;  %v7958_v55 = vld [vmem:[#allocation56_spill] sm:$0xff] }
 0x41e   : > { %v1771_v62 = vmul.f32 %v6065_v42, %v7956_v34  ;;  %v6782_v22 = vmul.f32 %v6113_v49, %v1880_v44  ;;  %v6786_v56 = vmul.f32 %v6130_v59, %v7957_v39  ;;  %v6789_v54 = vmul.f32 %v6247_v63, %v2037_v6  ;;  %v4371_v17 = vpop.eup %4370  ;;  %v7959_v59 = vld [vmem:[#allocation59_spill] sm:$0xff] }
 0x41f   : > { %7955 = vst [vmem:[#allocation40_spill] sm:$0xff] %v6777_v47  ;;  %v6793_v14 = vmul.f32 %v7905_v48, %v7958_v55  ;;  %4376 = vrcp.f32 %v2349_v12  ;;  %v6800_v44 = vmul.f32 %v6274_v8, %v2191_v46  ;;  %v6806_v55 = vmul.f32 %v6287_v4, %v7959_v59 }
 0x420   : > { %4378 = vpow2.f32 %v2317_v40 }
 0x421   : > { %v1476_v21 = vpop.permute.xlu1 %1475  ;;  %v1462_v39 = vpop.permute.xlu0 %1461  ;;  %7960 = vst [vmem:[#allocation38_spill] sm:$0xff] %v6806_v55  ;;  %4380 = vpow2.f32 %v2319_v25 }
 0x422   : > { %v1485_v53 = vsel %vm1477_vm14, %v1460_v32, %v1476_v21  ;;  %v1493_v34 = vsel %vm1477_vm14, %v1476_v21, %v1460_v32  ;;  %v1478_v49 = vsel %vm1477_vm14, %v1446_v10, %v1462_v39  ;;  %v1486_v21 = vsel %vm1477_vm14, %v1462_v39, %v1446_v10 }
 0x423   : > { %v1508_v6 = vmul.f32 %v7855_v38, %v1493_v34  ;;  %v1538_v5 = vmul.f32 %v5999_v52, %v1485_v53  ;;  %v4373_v32 = vpop.eup %4372  ;;  %v1494_v40 = vmul.f32 %v7855_v38, %v1486_v21  ;;  %v1524_v46 = vmul.f32 %v5999_v52, %v1478_v49 }
 0x424   : > { %v6816_v34 = vmul.f32 %v4371_v17, %v6541_v0  ;;  %v2351_v59 = vadd.f32 1.0, %v4373_v32  ;;  %v4375_v25 = vpop.eup %4374 }
 0x425   : > { %v1537_v12 = vmul.f32 %v6018_v24, %v1508_v6  ;;  %v1615_v53 = vpop.permute.xlu1 %1614  ;;  %v1583_v55 = vadd.f32 %v1567_v2, %v1538_v5  ;;  %v1523_v39 = vmul.f32 %v6018_v24, %v1494_v40  ;;  %v1569_v6 = vadd.f32 %v1553_v30, %v1524_v46  ;;  %v1601_v49 = vpop.permute.xlu0 %1600 }
 0x426   : > { %v1624_v47 = vsel %vm1616_vm15, %v1599_v23, %v1615_v53  ;;  %v1632_v10 = vsel %vm1616_vm15, %v1615_v53, %v1599_v23  ;;  %4382 = vrcp.f32 %v2351_v59  ;;  %v1617_v2 = vsel %vm1616_vm15, %v1585_v1, %v1601_v49 }
 0x427   : > { %v1582_v21 = vadd.f32 %v6689_v35, %v1537_v12  ;;  %v1648_v52 = vmul.f32 %v7860_v31, %v1632_v10  ;;  %v1676_v0 = vmul.f32 %v6036_v45, %v1624_v47  ;;  %v1625_v17 = vsel %vm1616_vm15, %v1601_v49, %v1585_v1 }
 0x428   : > { %v1568_v5 = vadd.f32 %v1552_v58, %v1523_v39  ;;  %v1634_v24 = vmul.f32 %v7860_v31, %v1625_v17  ;;  %v1662_v30 = vmul.f32 %v6036_v45, %v1617_v2  ;;  %v2352_v40 = vadd.f32 1.0, %v4375_v25 }
 0x429   : > { %v1677_v23 = vmul.f32 %v6045_v16, %v1648_v52  ;;  %v2032_v35 = vpop.permute.xlu1 %2031  ;;  %v1692_v32 = vadd.f32 %v1676_v0, %v1582_v21  ;;  %v1723_v59 = vpop.permute.xlu0 %1722 }
 0x42a   : > { %v2042_v12 = vsel %vm1477_vm14, %v6736_v29, %v2032_v35  ;;  %v2050_v47 = vsel %vm1477_vm14, %v2032_v35, %v6736_v29  ;;  %v1663_v1 = vmul.f32 %v6045_v16, %v1634_v24  ;;  %v1678_v46 = vadd.f32 %v1662_v30, %v1568_v5  ;;  %v4377_v45 = vpop.eup %4376  ;;  %v7961_v24 = vld [vmem:[#allocation67_spill] sm:$0xff] }
 0x42b   : > { %v2063_v58 = vmul.f32 %v7855_v38, %v2050_v47  ;;  %v2093_v53 = vmul.f32 %v6247_v63, %v2042_v12  ;;  %v1732_v10 = vsel %vm1477_vm14, %v6609_v43, %v1723_v59  ;;  %v1740_v39 = vsel %vm1477_vm14, %v1723_v59, %v6609_v43  ;;  %v6848_v29 = vpop.eup %4378 }
 0x42c   : > { %v1693_v21 = vadd.f32 %v1677_v23, %v1583_v55  ;;  %4384 = vrcp.f32 %v2352_v40  ;;  %v1679_v16 = vadd.f32 %v1663_v1, %v1569_v6  ;;  %v1787_v25 = vadd.f32 %v1771_v62, %v1678_v46  ;;  %v6852_v2 = vpop.eup %4380 }
 0x42d   : > { %v2092_v52 = vmul.f32 %v7905_v48, %v2063_v58  ;;  %v2109_v49 = vadd.f32 %v2093_v53, %v6658_v27  ;;  %v1725_v0 = vpop.permute.xlu1 %1724  ;;  %v1754_v17 = vmul.f32 %v7855_v38, %v1740_v39  ;;  %v1784_v5 = vmul.f32 %v7919_v37, %v1732_v10  ;;  %v2168_v23 = vpop.permute.xlu0 %2167 }
 0x42e   : > { %v1733_v43 = vsel %vm1477_vm14, %v6656_v15, %v1725_v0  ;;  %v1741_v55 = vsel %vm1477_vm14, %v1725_v0, %v6656_v15  ;;  %v1788_v62 = vadd.f32 %v6769_v57, %v1679_v16  ;;  %v1832_v6 = vadd.f32 %v6723_v41, %v1787_v25 }
 0x42f   : > { %v2108_v27 = vadd.f32 %v2092_v52, %v6652_v20  ;;  %v6866_v30 = vmul.f32 %v4377_v45, %v7961_v24  ;;  %v1783_v35 = vmul.f32 %v6065_v42, %v1754_v17  ;;  %v1800_v12 = vadd.f32 %v1784_v5, %v6742_v51  ;;  %v7963_v17 = vld [vmem:[#allocation66_spill] sm:$0xff] }
 0x430   : > { %v1756_v47 = vmul.f32 %v7855_v38, %v1741_v55  ;;  %v1786_v40 = vmul.f32 %v7919_v37, %v1733_v43  ;;  %v2152_v15 = vadd.f32 %v6678_v19, %v6633_v3  ;;  %v1833_v57 = vadd.f32 %v6727_v9, %v1788_v62  ;;  %v4383_v46 = vpop.eup %4382 }
 0x431   : > { %v1941_v41 = vadd.f32 %v6782_v22, %v1832_v6  ;;  %v2170_v20 = vpop.permute.xlu1 %2169  ;;  %v2151_v1 = vadd.f32 %v6670_v13, %v6625_v18  ;;  %v2154_v58 = vadd.f32 %v6740_v7, %v2109_v49  ;;  %v1799_v51 = vadd.f32 %v1783_v35, %v6719_v33  ;;  %v2184_v22 = vpop.permute.xlu0 %2183  ;;  %v7962_v49 = vld [vmem:[#allocation68_spill] sm:$0xff]  ;;  %v7966_v35 = vld [vmem:[#allocation38_spill] sm:$0xff] }
 0x432   : > { %v1785_v53 = vmul.f32 %v6065_v42, %v1756_v47  ;;  %v1802_v59 = vadd.f32 %v1786_v40, %v1693_v21  ;;  %v1942_v37 = vadd.f32 %v6786_v56, %v1833_v57  ;;  %v6884_v19 = vadd.f32 %v6754_v36, %v1800_v12 }
 0x433   : > { %v2098_v3 = vadd.f32 %v6793_v14, %v1941_v41  ;;  %v2153_v9 = vadd.f32 %v6762_v50, %v2108_v27  ;;  %v2195_v18 = vsel %vm1616_vm15, %v2168_v23, %v2184_v22  ;;  %v2203_v13 = vsel %vm1616_vm15, %v2184_v22, %v2168_v23  ;;  %v7965_v23 = vld [vmem:[#allocation40_spill] sm:$0xff] }
 0x434   : > { %v1801_v45 = vadd.f32 %v1785_v53, %v1692_v32  ;;  %v6892_v42 = vmul.f32 %v4383_v46, %v6681_v60  ;;  %v1847_v7 = vadd.f32 %v6758_v28, %v1802_v59  ;;  %v2216_v36 = vmul.f32 %v7860_v31, %v2203_v13 }
 0x435   : > { %v2143_v33 = vadd.f32 %v6662_v11, %v2098_v3  ;;  %v2244_v56 = vmul.f32 %v6274_v8, %v2195_v18  ;;  %v2186_v14 = vpop.permute.xlu1 %2185  ;;  %v1844_v39 = vadd.f32 %v6766_v61, %v1799_v51  ;;  %v2099_v60 = vadd.f32 %v6789_v54, %v1942_v37  ;;  %v1861_v25 = vpop.permute.xlu0 %1860  ;;  %v7964_v54 = vld [vmem:[#allocation70_spill] sm:$0xff]  ;;  %v7968_v3 = vld [vmem:[#allocation63_spill] sm:$0xff] }
 0x436   : > { %v4385_v50 = vpop.eup %4384  ;;  %v2196_v32 = vsel %vm1616_vm15, %v2170_v20, %v2186_v14  ;;  %v2204_v10 = vsel %vm1616_vm15, %v2186_v14, %v2170_v20  ;;  %v2245_v28 = vmul.f32 %v6287_v4, %v2216_v36  ;;  %v2395_v61 = vpack.c.bf16 %v6892_v42, %v6866_v30  ;;  %v7967_v20 = vld [vmem:[#allocation72_spill] sm:$0xff] }
 0x437   : > { %v2252_v11 = vadd.f32 %v6800_v44, %v2143_v33  ;;  %v2260_v21 = vadd.f32 %v2244_v56, %v2151_v1  ;;  %v2218_v16 = vmul.f32 %v7860_v31, %v2204_v10  ;;  %v2246_v52 = vmul.f32 %v6274_v8, %v2196_v32  ;;  %v7969_v56 = vld [vmem:[#allocation64_spill] sm:$0xff] }
 0x438   : > { %v2144_v0 = vadd.f32 %v7962_v49, %v2099_v60  ;;  %v6910_v5 = vmul.f32 %v4385_v50, %v7963_v17  ;;  %v2261_v43 = vadd.f32 %v2245_v28, %v2152_v15  ;;  %v1846_v24 = vadd.f32 %v7965_v23, %v1801_v45  ;;  %v2433_v42 = vld [vmem:[%s7671_s1 + $0x90] ss:$0 sm:$0xff] }
 0x439   : > { %v6915_v55 = vadd.f32 %v7964_v54, %v2260_v21  ;;  %v2247_v44 = vmul.f32 %v6287_v4, %v2218_v16  ;;  %v1863_v62 = vpop.permute.xlu1 %1862  ;;  %v6919_v6 = vadd.f32 %v7964_v54, %v2252_v11  ;;  %v2262_v27 = vadd.f32 %v2246_v52, %v2153_v9  ;;  %v1877_v57 = vpop.permute.xlu0 %1876 }
 0x43a   : > { %v2253_v12 = vadd.f32 %v7966_v35, %v2144_v0  ;;  %v2396_v47 = vpack.c.bf16 %v6910_v5, %v6816_v34  ;;  %v6928_v1 = vadd.f32 %v7967_v20, %v2261_v43  ;;  %v1886_v51 = vsel %vm1616_vm15, %v1861_v25, %v1877_v57 }
 0x43b   : > { %v2305_v40 = vsub.f32 0.0, %v6915_v55  ;;  %v2263_v15 = vadd.f32 %v2247_v44, %v2154_v58  ;;  %v2297_v41 = vsub.f32 0.0, %v6919_v6  ;;  %v6931_v46 = vadd.f32 %v7964_v54, %v2262_v27 }
 0x43c   : > { %v1894_v53 = vsel %vm1616_vm15, %v1877_v57, %v1861_v25  ;;  %v6938_v59 = vadd.f32 %v7967_v20, %v2253_v12  ;;  %v1937_v22 = vmul.f32 %v7968_v3, %v1886_v51  ;;  %v2306_v49 = vsub.f32 0.0, %v6928_v1  ;;  %v7971_v51 = vld [vmem:[#allocation69_spill] sm:$0xff] }
 0x43d   : > { %v2329_v37 = vmul.f32 1.442695, %v2305_v40  ;;  %v1909_v58 = vmul.f32 %v7860_v31, %v1894_v53  ;;  %v1879_v9 = vpop.permute.xlu1 %1878  ;;  %v2313_v45 = vmul.f32 1.442695, %v2297_v41  ;;  %v2307_v18 = vsub.f32 0.0, %v6931_v46  ;;  %v2018_v10 = vpop.permute.xlu0 %2017  ;;  %v7970_v41 = vld [vmem:[#allocation73_spill] sm:$0xff] }
 0x43e   : > { %v1887_v13 = vsel %vm1616_vm15, %v1863_v62, %v1879_v9  ;;  %v1895_v33 = vsel %vm1616_vm15, %v1879_v9, %v1863_v62  ;;  %v2298_v36 = vsub.f32 0.0, %v6938_v59  ;;  %v1953_v50 = vadd.f32 %v1937_v22, %v1844_v39 }
 0x43f   : > { %4386 = vpow2.f32 %v2329_v37  ;;  %v1938_v14 = vmul.f32 %v7969_v56, %v1909_v58  ;;  %v1911_v32 = vmul.f32 %v7860_v31, %v1895_v33  ;;  %v2333_v60 = vmul.f32 1.442695, %v2307_v18  ;;  %v7972_v58 = vld [vmem:[#allocation75_spill] sm:$0xff] }
 0x440   : > { %v1939_v11 = vmul.f32 %v7968_v3, %v1887_v13  ;;  %v2315_v28 = vmul.f32 1.442695, %v2298_v36  ;;  %4388 = vpow2.f32 %v2313_v45  ;;  %v6954_v52 = vadd.f32 %v7967_v20, %v2263_v15  ;;  %v7973_v3 = vld [vmem:[#allocation71_spill] sm:$0xff]  ;;  %v7974_v45 = vld [vmem:[#allocation76_spill] sm:$0xff] }
 0x441   : > { %v1940_v21 = vmul.f32 %v7969_v56, %v1911_v32  ;;  %v2020_v16 = vpop.permute.xlu1 %2019  ;;  %v1954_v25 = vadd.f32 %v1938_v14, %v6884_v19  ;;  %4390 = vpow2.f32 %v2333_v60  ;;  %v2034_v0 = vpop.permute.xlu0 %2033  ;;  %v2331_v44 = vmul.f32 1.442695, %v2306_v49 }
 0x442   : > { %v1955_v39 = vadd.f32 %v1939_v11, %v1846_v24  ;;  %4392 = vpow2.f32 %v2315_v28  ;;  %v2308_v43 = vsub.f32 0.0, %v6954_v52  ;;  %v2043_v62 = vsel %vm1477_vm14, %v2018_v10, %v2034_v0 }
 0x443   : > { %v1956_v17 = vadd.f32 %v1940_v21, %v1847_v7  ;;  %v2051_v27 = vsel %vm1477_vm14, %v2034_v0, %v2018_v10  ;;  %v2095_v23 = vmul.f32 %v6247_v63, %v2043_v62  ;;  %4394 = vpow2.f32 %v2331_v44 }
 0x444   : > { %v2065_v19 = vmul.f32 %v7855_v38, %v2051_v27  ;;  %v2335_v12 = vmul.f32 1.442695, %v2308_v43  ;;  %v2347_v24 = vadd.f32 1.0, %v6848_v29  ;;  %v2348_v57 = vadd.f32 1.0, %v6852_v2  ;;  %v7975_v29 = vld [vmem:[#allocation74_spill] sm:$0xff] }
 0x445   : > { %v2174_v35 = vpop.permute.xlu1 %2173  ;;  %v2111_v40 = vadd.f32 %v2095_v23, %v1954_v25  ;;  %v2139_v53 = vmul.f32 %v7971_v51, %v7970_v41  ;;  %v2140_v22 = vmul.f32 %v7973_v3, %v7972_v58  ;;  %v2142_v18 = vmul.f32 %v7973_v3, %v7974_v45 }
 0x446   : > { %v2094_v7 = vmul.f32 %v7905_v48, %v2065_v19  ;;  %v2172_v15 = vpop.permute.xlu0 %2171  ;;  %4396 = vpow2.f32 %v2335_v12  ;;  %v2141_v33 = vmul.f32 %v7971_v51, %v7975_v29 }
 0x447   : > { %4398 = vrcp.f32 %v2347_v24  ;;  %v2156_v12 = vadd.f32 %v2140_v22, %v2111_v40 }
 0x448   : > { %v2110_v9 = vadd.f32 %v2094_v7, %v1953_v50  ;;  %4400 = vrcp.f32 %v2348_v57 }
 0x449   : > { %v4387_v37 = vpop.eup %4386  ;;  %v2036_v13 = vpop.permute.xlu1 %2035 }
 0x44a   : > { %v4389_v36 = vpop.eup %4388  ;;  %v2353_v56 = vadd.f32 1.0, %v4387_v37  ;;  %v2044_v2 = vsel %vm1477_vm14, %v2020_v16, %v2036_v13  ;;  %v2052_v14 = vsel %vm1477_vm14, %v2036_v13, %v2020_v16  ;;  %v2155_v10 = vadd.f32 %v2139_v53, %v2110_v9  ;;  %v2188_v60 = vpop.permute.xlu0 %2187 }
 0x44b   : > { %v2067_v32 = vmul.f32 %v7855_v38, %v2052_v14  ;;  %v2097_v50 = vmul.f32 %v6247_v63, %v2044_v2  ;;  %v4391_v11 = vpop.eup %4390  ;;  %v2197_v28 = vsel %vm1616_vm15, %v2172_v15, %v2188_v60  ;;  %v2205_v21 = vsel %vm1616_vm15, %v2188_v60, %v2172_v15 }
 0x44c   : > { %4402 = vrcp.f32 %v2353_v56  ;;  %v2345_v25 = vadd.f32 1.0, %v4389_v36  ;;  %v4393_v49 = vpop.eup %4392  ;;  %v2355_v0 = vadd.f32 1.0, %v4391_v11  ;;  %v2220_v38 = vmul.f32 %v7860_v31, %v2205_v21  ;;  %v7976_v11 = vld [vmem:[#allocation35_spill] sm:$0xff] }
 0x44d   : > { %v2096_v16 = vmul.f32 %v7905_v48, %v2067_v32  ;;  %v2113_v43 = vadd.f32 %v2097_v50, %v1956_v17  ;;  %v2190_v63 = vpop.permute.xlu1 %2189  ;;  %v2248_v44 = vmul.f32 %v6274_v8, %v2197_v28  ;;  %v2346_v19 = vadd.f32 1.0, %v4393_v49  ;;  %v4395_v23 = vpop.eup %4394 }
 0x44e   : > { %v2198_v62 = vsel %vm1616_vm15, %v2174_v35, %v2190_v63  ;;  %v2206_v27 = vsel %vm1616_vm15, %v2190_v63, %v2174_v35  ;;  %4404 = vrcp.f32 %v2355_v0  ;;  %v2249_v7 = vmul.f32 %v6287_v4, %v2220_v38 }
 0x44f   : > { %v2112_v24 = vadd.f32 %v2096_v16, %v1955_v39  ;;  %v2264_v48 = vadd.f32 %v2248_v44, %v2155_v10  ;;  %v2222_v17 = vmul.f32 %v7860_v31, %v2206_v27  ;;  %v2250_v15 = vmul.f32 %v6274_v8, %v2198_v62 }
 0x450   : > { %4406 = vrcp.f32 %v2346_v19  ;;  %v4397_v57 = vpop.eup %4396  ;;  %v2265_v41 = vadd.f32 %v2249_v7, %v2156_v12  ;;  %v2354_v53 = vadd.f32 1.0, %v4395_v23  ;;  %v2158_v26 = vadd.f32 %v2142_v18, %v2113_v43 }
 0x451   : > { %v2157_v51 = vadd.f32 %v2141_v33, %v2112_v24  ;;  %4408 = vrcp.f32 %v2345_v25  ;;  %v6996_v35 = vadd.f32 %v7964_v54, %v2264_v48  ;;  %v2251_v40 = vmul.f32 %v6287_v4, %v2222_v17  ;;  %v4399_v31 = vpop.eup %4398 }
 0x452   : > { %v2356_v39 = vadd.f32 1.0, %v4397_v57  ;;  %4410 = vrcp.f32 %v2354_v53  ;;  %v2294_v58 = vadd.f32 %v7967_v20, %v2265_v41  ;;  %v4401_v22 = vpop.eup %4400  ;;  %v7978_v57 = vmov 0  }
 0x453   : > { %v2266_v37 = vadd.f32 %v2250_v15, %v2157_v51  ;;  %v2309_v8 = vsub.f32 0.0, %v6996_v35  ;;  %v2267_v3 = vadd.f32 %v2251_v40, %v2158_v26  ;;  %v2380_v28 = vmul.f32 %v4401_v22, %v7976_v11 }
 0x454   : > { %4412 = vrcp.f32 %v2356_v39  ;;  %v2310_v45 = vsub.f32 0.0, %v2294_v58 }
 0x455   : > { %v2295_v9 = vadd.f32 %v7964_v54, %v2266_v37  ;;  %v2337_v13 = vmul.f32 1.442695, %v2309_v8  ;;  %v2296_v29 = vadd.f32 %v7967_v20, %v2267_v3  ;;  %v7977_v20 = vld [vmem:[#allocation34_spill] sm:$0xff] }
 0x456   : > { %v4403_v18 = vpop.eup %4402  ;;  %v2339_v4 = vmul.f32 1.442695, %v2310_v45  ;;  %v2379_v21 = vmul.f32 %v4399_v31, %v7977_v20 }
 0x457   : > { %v2311_v33 = vsub.f32 0.0, %v2295_v9  ;;  %4414 = vpow2.f32 %v2337_v13  ;;  %v2312_v36 = vsub.f32 0.0, %v2296_v29  ;;  %v2385_v32 = vmul.f32 %v4403_v18, %v6915_v55 }
 0x458   : > { %v4405_v56 = vpop.eup %4404  ;;  %4416 = vpow2.f32 %v2339_v4 }
 0x459   : > { %v2341_v2 = vmul.f32 1.442695, %v2311_v33  ;;  %v2387_v50 = vmul.f32 %v4405_v56, %v6931_v46  ;;  %v2343_v10 = vmul.f32 1.442695, %v2312_v36 }
 0x45a   : > { %v4407_v14 = vpop.eup %4406 }
 0x45b   : > { %v4409_v60 = vpop.eup %4408  ;;  %4418 = vpow2.f32 %v2341_v2  ;;  %v2378_v54 = vmul.f32 %v4407_v14, %v6938_v59  ;;  %v2397_v49 = vpack.c.bf16 %v2387_v50, %v2385_v32 }
 0x45c   : > { %v2377_v25 = vmul.f32 %v4409_v60, %v6919_v6  ;;  %4420 = vpow2.f32 %v2343_v10  ;;  %v4411_v0 = vpop.eup %4410 }
 0x45d   : > { %v2394_v16 = vpack.c.bf16 %v2380_v28, %v2378_v54  ;;  %v2386_v55 = vmul.f32 %v4411_v0, %v6928_v1 }
 0x45e   : > { %v4413_v43 = vpop.eup %4412  ;;  %v2393_v38 = vpack.c.bf16 %v2379_v21, %v2377_v25 }
 0x45f   : > { %2562 = vmatprep.mubr.bf16.mxu1 %v2394_v16  ;;  %v2388_v46 = vmul.f32 %v4413_v43, %v6954_v52 }
 0x460   : > { %2563 = vmatmul.mubr.bf16.vlgmr.msra.gmra.mrb[16].mxu1 %v2393_v38 }
 0x461   : > { %2570 = vmatprep.mubr.bf16.mxu1 %v2396_v47  ;;  %v2398_v59 = vpack.c.bf16 %v2388_v46, %v2386_v55  ;;  %v4415_v63 = vpop.eup %4414 }
 0x462   : > { %v4417_v44 = vpop.eup %4416  ;;  %v2357_v6 = vadd.f32 1.0, %v4415_v63 }
 0x463   : > { %v2358_v62 = vadd.f32 1.0, %v4417_v44 }
 0x464   : > { %4422 = vrcp.f32 %v2357_v6 }
 0x465   : > { %v4419_v27 = vpop.eup %4418  ;;  %4424 = vrcp.f32 %v2358_v62 }
 0x466   : > { %v4421_v19 = vpop.eup %4420  ;;  %v2359_v23 = vadd.f32 1.0, %v4419_v27 }
 0x467   : > { %v2360_v12 = vadd.f32 1.0, %v4421_v19 }
 0x468   : > { %4426 = vrcp.f32 %v2359_v23  ;;  %2571 = vmatmul.mubr.bf16.gmra.mrb[20].mxu1 %v2395_v61 }
 0x469   : > { %2578 = vmatprep.mubr.bf16.mxu1 %v2398_v59  ;;  %4428 = vrcp.f32 %v2360_v12 }
 0x46e   : > { %v4423_v34 = vpop.eup %4422 }
 0x46f   : > { %v4425_v5 = vpop.eup %4424  ;;  %v2389_v52 = vmul.f32 %v4423_v34, %v6996_v35 }
 0x470   : > { %2579 = vmatmul.mubr.bf16.gmra.mrb[24].mxu1 %v2397_v49  ;;  %v2390_v7 = vmul.f32 %v4425_v5, %v2294_v58 }
 0x472   : > { %v4427_v47 = vpop.eup %4426 }
 0x473   : > { %v4429_v1 = vpop.eup %4428  ;;  %v2391_v24 = vmul.f32 %v4427_v47, %v2295_v9 }
 0x474   : > { %v2392_v48 = vmul.f32 %v4429_v1, %v2296_v29 }
 0x475   : > { %v2399_v17 = vpack.c.bf16 %v2391_v24, %v2389_v52 }
 0x476   : > { %v2400_v15 = vpack.c.bf16 %v2392_v48, %v2390_v7 }
 0x478   : > { %2586 = vmatprep.mubr.bf16.mxu1 %v2400_v15 }
 0x479   : > { %2587 = vmatmul.mubr.bf16.gmra.mrb[28].mxu1 %v2399_v17 }
 0x47a   : > { %3535 = vmatprep.mubr.bf16.mxu1 %v7978_v57 }
 0x533   : > { %v3944_v30 = vpop.f32.mrb[16].mxu1 }
 0x534   : > { %v3945_v61 = vpop.f32.mrb[17].mxu1 }
 0x535   : > { %v3946_v41 = vadd.f32 %v3945_v61, %v3944_v30  ;;  %v3947_v51 = vpop.f32.mrb[18].mxu1 }
 0x536   : > { %v3948_v53 = vpop.f32.mrb[19].mxu1 }
 0x537   : > { %v2565_v26 = vadd.f32 %v3946_v41, %v2433_v42  ;;  %v3949_v35 = vadd.f32 %v3948_v53, %v3947_v51 }
 0x539   : > { %v2595_v40 = vsub.f32 0.0, %v2565_v26  ;;  %v2568_v39 = vadd.f32 %v3949_v35, %v2433_v42 }
 0x53b   : > { %v2603_v37 = vmul.f32 1.442695, %v2595_v40  ;;  %v2596_v58 = vsub.f32 0.0, %v2568_v39  ;;  %v3950_v31 = vpop.f32.mrb[20].mxu1 }
 0x53c   : > { %v3951_v8 = vpop.f32.mrb[21].mxu1 }
 0x53d   : > { %4430 = vpow2.f32 %v2603_v37  ;;  %v2605_v3 = vmul.f32 1.442695, %v2596_v58  ;;  %v3952_v22 = vadd.f32 %v3951_v8, %v3950_v31  ;;  %v3953_v9 = vpop.f32.mrb[22].mxu1 }
 0x53e   : > { %v3954_v45 = vpop.f32.mrb[23].mxu1 }
 0x53f   : > { %4432 = vpow2.f32 %v2605_v3  ;;  %v7022_v18 = vadd.f32 %v3952_v22, %v2433_v42  ;;  %v3955_v13 = vadd.f32 %v3954_v45, %v3953_v9 }
 0x541   : > { %v2597_v29 = vsub.f32 0.0, %v7022_v18  ;;  %v7025_v33 = vadd.f32 %v3955_v13, %v2433_v42 }
 0x543   : > { %v2607_v4 = vmul.f32 1.442695, %v2597_v29  ;;  %v2598_v36 = vsub.f32 0.0, %v7025_v33  ;;  %v3956_v56 = vpop.f32.mrb[24].mxu1 }
 0x544   : > { %v3957_v2 = vpop.f32.mrb[25].mxu1 }
 0x545   : > { %4434 = vpow2.f32 %v2607_v4  ;;  %v2609_v14 = vmul.f32 1.442695, %v2598_v36  ;;  %v3958_v32 = vadd.f32 %v3957_v2, %v3956_v56  ;;  %v3959_v50 = vpop.f32.mrb[26].mxu1  ;;  %v7980_v56 = vld [vmem:[#allocation13_spill] sm:$0xff] }
 0x546   : > { %v3960_v10 = vpop.f32.mrb[27].mxu1 }
 0x547   : > { %v4431_v60 = vpop.eup %4430  ;;  %4436 = vpow2.f32 %v2609_v14  ;;  %v7028_v54 = vadd.f32 %v3958_v32, %v2433_v42  ;;  %v3961_v11 = vadd.f32 %v3960_v10, %v3959_v50 }
 0x548   : > { %v2619_v28 = vadd.f32 1.0, %v4431_v60 }
 0x549   : > { %v4433_v20 = vpop.eup %4432  ;;  %v2599_v21 = vsub.f32 0.0, %v7028_v54  ;;  %v7031_v25 = vadd.f32 %v3961_v11, %v2433_v42 }
 0x54a   : > { %4438 = vrcp.f32 %v2619_v28  ;;  %v2620_v49 = vadd.f32 1.0, %v4433_v20 }
 0x54b   : > { %v2611_v0 = vmul.f32 1.442695, %v2599_v21  ;;  %v2600_v16 = vsub.f32 0.0, %v7031_v25 }
 0x54c   : > { %4440 = vrcp.f32 %v2620_v49  ;;  %v3962_v43 = vpop.f32.mrb[28].mxu1 }
 0x54d   : > { %4442 = vpow2.f32 %v2611_v0  ;;  %v2613_v38 = vmul.f32 1.442695, %v2600_v16  ;;  %v3963_v55 = vpop.f32.mrb[29].mxu1 }
 0x54e   : > { %v3964_v46 = vadd.f32 %v3963_v55, %v3962_v43  ;;  %v3965_v59 = vpop.f32.mrb[30].mxu1 }
 0x54f   : > { %v4435_v63 = vpop.eup %4434  ;;  %4444 = vpow2.f32 %v2613_v38  ;;  %v3966_v44 = vpop.f32.mrb[31].mxu1 }
 0x550   : > { %v2621_v6 = vadd.f32 1.0, %v4435_v63  ;;  %v7034_v62 = vadd.f32 %v3964_v46, %v2433_v42  ;;  %v3967_v27 = vadd.f32 %v3966_v44, %v3965_v59  ;;  %v7981_v63 = vld [vmem:[#allocation12_spill] sm:$0xff] }
 0x551   : > { %v4437_v19 = vpop.eup %4436 }
 0x552   : > { %4446 = vrcp.f32 %v2621_v6  ;;  %v2601_v23 = vsub.f32 0.0, %v7034_v62  ;;  %v7037_v12 = vadd.f32 %v3967_v27, %v2433_v42  ;;  %v2622_v34 = vadd.f32 1.0, %v4437_v19 }
 0x554   : > { %v4439_v5 = vpop.eup %4438  ;;  %v2615_v47 = vmul.f32 1.442695, %v2601_v23  ;;  %v2602_v1 = vsub.f32 0.0, %v7037_v12 }
 0x555   : > { %v7040_v52 = vmul.f32 %v4439_v5, %v2565_v26  ;;  %v7983_v5 = vld [vmem:[#allocation17_spill] sm:$0xff]  ;;  %v4182_v26 = vld [vmem:[%s7672_s2 + $0x380] ss:$8 sps:$4 sm:$0xff]  }
 0x556   : > { %v4441_v24 = vpop.eup %4440  ;;  %4448 = vpow2.f32 %v2615_v47  ;;  %v2617_v7 = vmul.f32 1.442695, %v2602_v1  ;;  %v7984_v1 = vld [vmem:[#allocation16_spill] sm:$0xff] }
 0x557   : > { %v4443_v48 = vpop.eup %4442  ;;  %v7042_v17 = vmul.f32 %v4441_v24, %v2568_v39  ;;  %4450 = vrcp.f32 %v2622_v34  ;;  %2758 = vrot.lane.b32.xlu0 %v7040_v52, %s4567_s30  ;;  %v2857_v42 = vrot.slane %v7040_v52, 1  ;;  %v2643_v41 = vrot.slane %v7040_v52, 7 }
 0x558   : > { %v2623_v15 = vadd.f32 1.0, %v4443_v48  ;;  %4452 = vpow2.f32 %v2617_v7  ;;  %v7985_v7 = vld [vmem:[#allocation18_spill] sm:$0xff] }
 0x559   : > { %v4445_v30 = vpop.eup %4444  ;;  %2760 = vrot.lane.b32.xlu1 %v7042_v17, %s4567_s30  ;;  %v2858_v61 = vrot.slane %v7042_v17, 1  ;;  %v2644_v51 = vrot.slane %v7042_v17, 7 }
 0x55a   : > { %4454 = vrcp.f32 %v2623_v15  ;;  %v2624_v53 = vadd.f32 1.0, %v4445_v30 }
 0x55b   : > { %2816 = vrot.lane.b32.xlu0 %v7040_v52, %s4568_s4  ;;  %v7058_v35 = vsel %vm929_vm4, %v2857_v42, %v2858_v61  ;;  %v7062_v40 = vsel %vm714_vm5, %v2643_v41, %v2644_v51 }
 0x55c   : > { %v4447_v39 = vpop.eup %4446  ;;  %4456 = vrcp.f32 %v2624_v53 }
 0x55d   : > { %v7065_v37 = vmul.f32 %v4447_v39, %v7022_v18  ;;  %2818 = vrot.lane.b32.xlu1 %v7042_v17, %s4568_s4  ;;  %v4184_v39 = vld [vmem:[%s7672_s2 + $0x384] ss:$8 sps:$4 sm:$0xff]  }
 0x55e   : > { %4016 = vmatprep.subr.bf16.mxu1 %v4184_v39  ;;  %3483 = vmatprep.subr.bf16.mxu0 %v4184_v39 }
 0x55f   : > { %2881 = vrot.lane.b32.xlu0 %v7058_v35, %s4567_s30  ;;  %v2645_v3 = vrot.slane %v7065_v37, 7  ;;  %v2859_v28 = vrot.slane %v7065_v37, 1  ;;  %4024 = vmatpush1.bf16.msra.mxu1 %v4182_v26 }
 0x560   : > { %v4449_v58 = vpop.eup %4448  ;;  %3484 = vmatpush1.bf16.msra.mxu0 %v4182_v26 }
 0x561   : > { %v4451_v31 = vpop.eup %4450  ;;  %v2625_v8 = vadd.f32 1.0, %v4449_v58  ;;  %2669 = vrot.lane.b32.xlu1 %v7062_v40, %s4567_s30  ;;  %v2656_v29 = vsel %vm714_vm5, %v2644_v51, %v2645_v3  ;;  %v2870_v0 = vsel %vm929_vm4, %v2858_v61, %v2859_v28  ;;  %v7987_v51 = vld [vmem:[#allocation19_spill] sm:$0xff]  ;;  %v4187_v58 = vld [vmem:[%s7672_s2 + $0x394] ss:$8 sps:$4 sm:$0xff]  }
 0x562   : > { %v4453_v22 = vpop.eup %4452  ;;  %v7077_v18 = vmul.f32 %v4451_v31, %v7025_v33  ;;  %v7092_v33 = vmul.f32 %v7980_v56, %v2656_v29  ;;  %v7141_v44 = vmul.f32 %v7981_v63, %v2870_v0  ;;  %v4185_v31 = vld [vmem:[%s7672_s2 + $0x390] ss:$8 sps:$4 sm:$0xff]   ;;  %4017 = vmatprep.subr.bf16.mxu1 %v4187_v58  ;;  %3485 = vmatprep.subr.bf16.mxu0 %v4187_v58 }
 0x563   : > { %4458 = vrcp.f32 %v2625_v8  ;;  %v2626_v9 = vadd.f32 1.0, %v4453_v22  ;;  %2939 = vrot.lane.b32.xlu0 %v7058_v35, %s4568_s4  ;;  %v4190_v8 = vld [vmem:[%s7672_s2 + $0x3a4] ss:$8 sps:$4 sm:$0xff]   ;;  %4025 = vmatpush1.bf16.msra.mxu1 %v4185_v31  ;;  %v4193_v22 = vld [vmem:[%s7672_s2 + $0x3b4] ss:$8 sps:$4 sm:$0xff]  }
 0x564   : > { %v4455_v45 = vpop.eup %4454  ;;  %v2646_v2 = vrot.slane %v7077_v18, 7  ;;  %v2860_v15 = vrot.slane %v7077_v18, 1  ;;  %3486 = vmatpush1.bf16.msra.mxu0 %v4185_v31  ;;  %4018 = vmatprep.subr.bf16.mxu1 %v4190_v8  ;;  %v4203_v63 = vld [vmem:[%s7672_s2 + $0x3f0] ss:$8 sps:$4 sm:$0xff]   ;;  %v7338_v31 = vld [vmem:[%s7671_s1 + $0xa4] ss:$0 sm:$0xff] }
 0x565   : > { %v7080_v13 = vmul.f32 %v4455_v45, %v7028_v54  ;;  %4460 = vrcp.f32 %v2626_v9  ;;  %2719 = vrot.lane.b32.xlu1 %v7062_v40, %s4568_s4  ;;  %3487 = vmatprep.subr.bf16.mxu0 %v4190_v8  ;;  %v4191_v9 = vld [vmem:[%s7672_s2 + $0x3b0] ss:$8 sps:$4 sm:$0xff]   ;;  %v4196_v45 = vld [vmem:[%s7672_s2 + $0x3c4] ss:$8 sps:$4 sm:$0xff]  }
 0x566   : > { %v4457_v4 = vpop.eup %4456  ;;  %v7113_v11 = vsel %vm714_vm5, %v2645_v3, %v2646_v2  ;;  %v4188_v3 = vld [vmem:[%s7672_s2 + $0x3a0] ss:$8 sps:$4 sm:$0xff]  }
 0x567   : > { %v7087_v36 = vmul.f32 %v4457_v4, %v7031_v25  ;;  %2762 = vrot.lane.b32.xlu0 %v7065_v37, %s4567_s30  ;;  %v2647_v14 = vrot.slane %v7080_v13, 7  ;;  %v2861_v32 = vrot.slane %v7080_v13, 1  ;;  %4026 = vmatpush1.bf16.msra.mxu1 %v4188_v3  ;;  %v4194_v4 = vld [vmem:[%s7672_s2 + $0x3c0] ss:$8 sps:$4 sm:$0xff]  }
 0x568   : > { %3488 = vmatpush1.bf16.msra.mxu0 %v4188_v3  ;;  %4019 = vmatprep.subr.bf16.mxu1 %v4193_v22 }
 0x569   : > { %2764 = vrot.lane.b32.xlu1 %v7077_v18, %s4567_s30  ;;  %v2862_v50 = vrot.slane %v7087_v36, 1  ;;  %v2648_v10 = vrot.slane %v7087_v36, 7  ;;  %v2654_v23 = vsel %vm714_vm5, %v2646_v2, %v2647_v14  ;;  %v2868_v30 = vsel %vm929_vm4, %v2860_v15, %v2861_v32  ;;  %3489 = vmatprep.subr.bf16.mxu0 %v4193_v22  ;;  %v4199_v2 = vld [vmem:[%s7672_s2 + $0x3d4] ss:$8 sps:$4 sm:$0xff]  }
 0x56a   : > { %v2801_v22 = vmul.f32 %v7338_v31, %v7042_v17 }
 0x56b   : > { %2671 = vrot.lane.b32.xlu0 %v7092_v33, %s4567_s30  ;;  %v7105_v60 = vsel %vm929_vm4, %v2861_v32, %v2862_v50  ;;  %v7109_v54 = vsel %vm714_vm5, %v2647_v14, %v2648_v10  ;;  %4027 = vmatpush1.bf16.msra.mxu1 %v4191_v9  ;;  %v4197_v32 = vld [vmem:[%s7672_s2 + $0x3d0] ss:$8 sps:$4 sm:$0xff]  }
 0x56c   : > { %3490 = vmatpush1.bf16.msra.mxu0 %v4191_v9  ;;  %4020 = vmatprep.subr.bf16.mxu1 %v4196_v45  ;;  %v7346_v9 = vld [vmem:[%s7671_s1 + $0xa5] ss:$0 sm:$0xff] }
 0x56d   : > { %v4459_v20 = vpop.eup %4458  ;;  %2673 = vrot.lane.b32.xlu1 %v7113_v11, %s4567_s30  ;;  %3491 = vmatprep.subr.bf16.mxu0 %v4196_v45 }
 0x56e   : > { %v7119_v21 = vmul.f32 %v4459_v20, %v7034_v62  ;;  %v4200_v20 = vld [vmem:[%s7672_s2 + $0x3e0] ss:$8 sps:$4 sm:$0xff]  }
 0x56f   : > { %v4461_v25 = vpop.eup %4460  ;;  %2721 = vrot.lane.b32.xlu0 %v7092_v33, %s4568_s4  ;;  %4028 = vmatpush1.bf16.msra.mxu1 %v4194_v4 }
 0x570   : > { %v7124_v49 = vmul.f32 %v4461_v25, %v7037_v12  ;;  %v2649_v16 = vrot.slane %v7119_v21, 7  ;;  %v2863_v43 = vrot.slane %v7119_v21, 1  ;;  %v7982_v12 = vld [vmem:[#allocation14_spill] sm:$0xff]  ;;  %3492 = vmatpush1.bf16.msra.mxu0 %v4194_v4  ;;  %4021 = vmatprep.subr.bf16.mxu1 %v4199_v2 }
 0x571   : > { %2723 = vrot.lane.b32.xlu1 %v7113_v11, %s4568_s4  ;;  %v7166_v34 = vmul.f32 %v7982_v12, %v2654_v23  ;;  %3493 = vmatprep.subr.bf16.mxu0 %v4199_v2  ;;  %v7301_v25 = vld [vmem:[%s7671_s1 + $0xa0] ss:$0 sm:$0xff] }
 0x572   : > { %v2652_v38 = vsel %vm714_vm5, %v2648_v10, %v2649_v16  ;;  %v2650_v55 = vrot.slane %v7124_v49, 7  ;;  %v2866_v46 = vsel %vm929_vm4, %v2862_v50, %v2863_v43  ;;  %v2864_v59 = vrot.slane %v7124_v49, 1  ;;  %v4202_v10 = vld [vmem:[%s7672_s2 + $0x3e4] ss:$8 sps:$4 sm:$0xff]  }
 0x573   : > { %2766 = vrot.lane.b32.xlu0 %v7080_v13, %s4567_s30  ;;  %v7193_v47 = vmul.f32 %v7983_v5, %v2652_v38  ;;  %v7209_v48 = vmul.f32 %v7985_v7, %v2866_v46  ;;  %4029 = vmatpush1.bf16.msra.mxu1 %v4197_v32  ;;  %v7989_v5 = vld [vmem:[#allocation4_spill] sm:$0xff] }
 0x574   : > { %v7145_v6 = vsel %vm714_vm5, %v2649_v16, %v2650_v55  ;;  %v2658_v62 = vsel %vm714_vm5, %v2650_v55, %v2643_v41  ;;  %v7151_v27 = vsel %vm929_vm4, %v2863_v43, %v2864_v59  ;;  %v2872_v19 = vsel %vm929_vm4, %v2864_v59, %v2857_v42  ;;  %v7986_v42 = vld [vmem:[#allocation15_spill] sm:$0xff]  ;;  %3494 = vmatpush1.bf16.msra.mxu0 %v4197_v32  ;;  %v4205_v16 = vld [vmem:[%s7672_s2 + $0x3f4] ss:$8 sps:$4 sm:$0xff]   ;;  %v7310_v55 = vld [vmem:[%s7671_s1 + $0xa1] ss:$0 sm:$0xff] }
 0x575   : > { %2883 = vrot.lane.b32.xlu1 %v7141_v44, %s4567_s30  ;;  %v7204_v24 = vmul.f32 %v7984_v1, %v2658_v62  ;;  %v7227_v61 = vmul.f32 %v7986_v42, %v2868_v30  ;;  %v7233_v41 = vsel %vm929_vm4, %v2859_v28, %v2860_v15  ;;  %v7238_v53 = vmul.f32 %v7987_v51, %v2872_v19  ;;  %v7988_v43 = vld [vmem:[#allocation3_spill] sm:$0xff]  ;;  %v7321_v62 = vld [vmem:[%s7671_s1 + $0xa2] ss:$0 sm:$0xff]  ;;  %v7331_v42 = vld [vmem:[%s7671_s1 + $0xa3] ss:$0 sm:$0xff] }
 0x576   : > { %4022 = vmatprep.subr.bf16.mxu1 %v4202_v10  ;;  %3495 = vmatprep.subr.bf16.mxu0 %v4202_v10  ;;  %v2702_v23 = vmul.f32 %v7310_v55, %v7062_v40 }
 0x577   : > { %2824 = vrot.lane.b32.xlu0 %v7080_v13, %s4568_s4  ;;  %4030 = vmatpush1.bf16.msra.mxu1 %v4200_v20 }
 0x578   : > { %3496 = vmatpush1.bf16.msra.mxu0 %v4200_v20  ;;  %4023 = vmatprep.subr.bf16.mxu1 %v4205_v16 }
 0x579   : > { %2941 = vrot.lane.b32.xlu1 %v7141_v44, %s4568_s4  ;;  %3497 = vmatprep.subr.bf16.mxu0 %v4205_v16 }
 0x57b   : > { %2675 = vrot.lane.b32.xlu0 %v7166_v34, %s4567_s30  ;;  %4031 = vmatpush1.bf16.msra.mxu1 %v4203_v63 }
 0x57c   : > { %3498 = vmatpush1.bf16.msra.mxu0 %v4203_v63 }
 0x57d   : > { %2768 = vrot.lane.b32.xlu1 %v7087_v36, %s4567_s30 }
 0x57f   : > { %2725 = vrot.lane.b32.xlu0 %v7166_v34, %s4568_s4 }
 0x581   : > { %2826 = vrot.lane.b32.xlu1 %v7087_v36, %s4568_s4 }
 0x583   : > { %2889 = vrot.lane.b32.xlu0 %v7105_v60, %s4567_s30 }
 0x585   : > { %2677 = vrot.lane.b32.xlu1 %v7109_v54, %s4567_s30 }
 0x587   : > { %2947 = vrot.lane.b32.xlu0 %v7105_v60, %s4568_s4 }
 0x589   : > { %2727 = vrot.lane.b32.xlu1 %v7109_v54, %s4568_s4 }
 0x58b   : > { %2770 = vrot.lane.b32.xlu0 %v7119_v21, %s4567_s30 }
 0x58d   : > { %2772 = vrot.lane.b32.xlu1 %v7124_v49, %s4567_s30 }
 0x58f   : > { %2828 = vrot.lane.b32.xlu0 %v7119_v21, %s4568_s4 }
 0x591   : > { %2830 = vrot.lane.b32.xlu1 %v7124_v49, %s4568_s4 }
 0x593   : > { %2679 = vrot.lane.b32.xlu0 %v7193_v47, %s4567_s30 }
 0x595   : > { %2681 = vrot.lane.b32.xlu1 %v7145_v6, %s4567_s30 }
 0x597   : > { %2729 = vrot.lane.b32.xlu0 %v7193_v47, %s4568_s4 }
 0x599   : > { %2731 = vrot.lane.b32.xlu1 %v7145_v6, %s4568_s4 }
 0x59b   : > { %2667 = vrot.lane.b32.xlu0 %v7204_v24, %s4567_s30 }
 0x59d   : > { %2891 = vrot.lane.b32.xlu1 %v7209_v48, %s4567_s30 }
 0x59f   : > { %2717 = vrot.lane.b32.xlu0 %v7204_v24, %s4568_s4 }
 0x5a1   : > { %2949 = vrot.lane.b32.xlu1 %v7209_v48, %s4568_s4 }
 0x5a3   : > { %2820 = vrot.lane.b32.xlu0 %v7065_v37, %s4568_s4 }
 0x5a5   : > { %2822 = vrot.lane.b32.xlu1 %v7077_v18, %s4568_s4 }
 0x5a7   : > { %2893 = vrot.lane.b32.xlu0 %v7151_v27, %s4567_s30 }
 0x5a9   : > { %2887 = vrot.lane.b32.xlu1 %v7227_v61, %s4567_s30 }
 0x5ab   : > { %2885 = vrot.lane.b32.xlu0 %v7233_v41, %s4567_s30 }
 0x5ad   : > { %2895 = vrot.lane.b32.xlu1 %v7238_v53, %s4567_s30  ;;  %s3903_s30 = sshll.u32 %s8001_s22, 4 }
 0x5ae   : > { %s7633_s26 = scalar_lea.vmem %s7673_s3, %s3903_s30 }
 0x5af   : > { %2951 = vrot.lane.b32.xlu0 %v7151_v27, %s4568_s4 }
 0x5b1   : > { %2953 = vrot.lane.b32.xlu1 %v7238_v53, %s4568_s4 }
 0x5b3   : > { %2943 = vrot.lane.b32.xlu0 %v7233_v41, %s4568_s4 }
 0x5b5   : > { %2945 = vrot.lane.b32.xlu1 %v7227_v61, %s4568_s4 }
 0x5c9   : > { %v7277_v29 = vpop.permute.xlu0 %2758 }
 0x5cb   : > { %v2761_v56 = vpop.permute.xlu1 %2760 }
 0x5cc   : > { %v2775_v12 = vmul.f32 %v7988_v43, %v2761_v56 }
 0x5cd   : > { %v7285_v14 = vpop.permute.xlu0 %2816 }
 0x5ce   : > { %v2784_v26 = vmul.f32 %v7331_v42, %v2775_v12 }
 0x5cf   : > { %v2819_v50 = vpop.permute.xlu1 %2818 }
 0x5d0   : > { %v2833_v40 = vmul.f32 %v7989_v5, %v2819_v50  ;;  %v2703_v50 = vmul.f32 %v7310_v55, %v7092_v33 }
 0x5d1   : > { %v7293_v28 = vpop.permute.xlu0 %2881 }
 0x5d2   : > { %v2842_v4 = vmul.f32 %v7346_v9, %v2833_v40 }
 0x5d3   : > { %v2670_v0 = vpop.permute.xlu1 %2669 }
 0x5d4   : > { %v2684_v38 = vmul.f32 %v7988_v43, %v2670_v0 }
 0x5d5   : > { %v7312_v46 = vpop.permute.xlu0 %2939 }
 0x5d6   : > { %v2693_v59 = vmul.f32 %v7301_v25, %v2684_v38  ;;  %v2704_v38 = vmul.f32 %v7310_v55, %v7113_v11 }
 0x5d7   : > { %v2720_v19 = vpop.permute.xlu1 %2719 }
 0x5d8   : > { %v2734_v1 = vmul.f32 %v7989_v5, %v2720_v19  ;;  %v2710_v15 = vadd.f32 %v2702_v23, %v2693_v59 }
 0x5d9   : > { %v2763_v7 = vpop.permute.xlu0 %2762 }
 0x5da   : > { %v2743_v30 = vmul.f32 %v7321_v62, %v2734_v1  ;;  %v2776_v20 = vmul.f32 %v7988_v43, %v2763_v7 }
 0x5db   : > { %v2765_v51 = vpop.permute.xlu1 %2764 }
 0x5dc   : > { %v2751_v39 = vadd.f32 %v2743_v30, %v2710_v15  ;;  %v2777_v63 = vmul.f32 %v7988_v43, %v2765_v51  ;;  %v2785_v1 = vmul.f32 %v7331_v42, %v2776_v20 }
 0x5dd   : > { %v2672_v58 = vpop.permute.xlu0 %2671 }
 0x5de   : > { %v2792_v8 = vadd.f32 %v2784_v26, %v2751_v39  ;;  %v2685_v3 = vmul.f32 %v7988_v43, %v2672_v58  ;;  %v2786_v40 = vmul.f32 %v7331_v42, %v2777_v63  ;;  %v7370_v58 = vld [vmem:[%s7671_s1 + $0xa6] ss:$0 sm:$0xff] }
 0x5df   : > { %v2674_v45 = vpop.permute.xlu1 %2673 }
 0x5e0   : > { %v2694_v56 = vmul.f32 %v7301_v25, %v2685_v3  ;;  %v2686_v2 = vmul.f32 %v7988_v43, %v2674_v45  ;;  %v2809_v32 = vadd.f32 %v2801_v22, %v2792_v8  ;;  %v7378_v45 = vld [vmem:[%s7671_s1 + $0xa7] ss:$0 sm:$0xff] }
 0x5e1   : > { %v2722_v10 = vpop.permute.xlu0 %2721 }
 0x5e2   : > { %v2695_v17 = vmul.f32 %v7301_v25, %v2686_v2  ;;  %v2735_v0 = vmul.f32 %v7989_v5, %v2722_v10  ;;  %v2850_v16 = vadd.f32 %v2842_v4, %v2809_v32  ;;  %v2711_v19 = vadd.f32 %v2703_v50, %v2694_v56 }
 0x5e3   : > { %v2724_v59 = vpop.permute.xlu1 %2723  ;;  %v2924_v2 = vmul.f32 %v7378_v45, %v7141_v44 }
 0x5e4   : > { %v2744_v23 = vmul.f32 %v7321_v62, %v2735_v0  ;;  %v2736_v12 = vmul.f32 %v7989_v5, %v2724_v59  ;;  %v2712_v7 = vadd.f32 %v2704_v38, %v2695_v17  ;;  %v2705_v59 = vmul.f32 %v7310_v55, %v7166_v34 }
 0x5e5   : > { %v2767_v33 = vpop.permute.xlu0 %2766 }
 0x5e6   : > { %v2752_v15 = vadd.f32 %v2744_v23, %v2711_v19  ;;  %v2745_v30 = vmul.f32 %v7321_v62, %v2736_v12  ;;  %v2778_v38 = vmul.f32 %v7988_v43, %v2767_v33  ;;  %v2804_v33 = vmul.f32 %v7338_v31, %v7080_v13 }
 0x5e7   : > { %v2884_v26 = vpop.permute.xlu1 %2883 }
 0x5e8   : > { %v7364_v39 = vadd.f32 %v2785_v1, %v2752_v15  ;;  %v2753_v11 = vadd.f32 %v2745_v30, %v2712_v7  ;;  %v2898_v51 = vmul.f32 %v7988_v43, %v2884_v26  ;;  %v2787_v12 = vmul.f32 %v7331_v42, %v2778_v38 }
 0x5e9   : > { %v2825_v8 = vpop.permute.xlu0 %2824 }
 0x5ea   : > { %v7372_v3 = vadd.f32 %v2786_v40, %v2753_v11  ;;  %v2907_v22 = vmul.f32 %v7370_v58, %v2898_v51  ;;  %v2836_v1 = vmul.f32 %v7989_v5, %v2825_v8 }
 0x5eb   : > { %v7380_v4 = vpop.permute.xlu1 %2941 }
 0x5ec   : > { %v2915_v56 = vadd.f32 %v2907_v22, %v2850_v16  ;;  %v2845_v11 = vmul.f32 %v7346_v9, %v2836_v1  ;;  %v2805_v1 = vmul.f32 %v7338_v31, %v7087_v36 }
 0x5ed   : > { %v2676_v32 = vpop.permute.xlu0 %2675 }
 0x5ee   : > { %v7384_v50 = vadd.f32 %v2924_v2, %v2915_v56  ;;  %v2687_v10 = vmul.f32 %v7988_v43, %v2676_v32  ;;  %v2706_v56 = vmul.f32 %v7310_v55, %v7109_v54 }
 0x5ef   : > { %v2769_v20 = vpop.permute.xlu1 %2768 }
 0x5f0   : > { %v2696_v17 = vmul.f32 %v7301_v25, %v2687_v10  ;;  %v2779_v2 = vmul.f32 %v7988_v43, %v2769_v20 }
 0x5f1   : > { %v2726_v0 = vpop.permute.xlu0 %2725 }
 0x5f2   : > { %v2737_v63 = vmul.f32 %v7989_v5, %v2726_v0  ;;  %v2713_v19 = vadd.f32 %v2705_v59, %v2696_v17  ;;  %v2927_v0 = vmul.f32 %v7378_v45, %v7105_v60 }
 0x5f3   : > { %v2827_v16 = vpop.permute.xlu1 %2826 }
 0x5f4   : > { %v2746_v44 = vmul.f32 %v7321_v62, %v2737_v63 }
 0x5f5   : > { %v2890_v23 = vpop.permute.xlu0 %2889 }
 0x5f6   : > { %v2754_v7 = vadd.f32 %v2746_v44, %v2713_v19  ;;  %v2901_v26 = vmul.f32 %v7988_v43, %v2890_v23  ;;  %v2788_v44 = vmul.f32 %v7331_v42, %v2779_v2 }
 0x5f7   : > { %v2678_v15 = vpop.permute.xlu1 %2677 }
 0x5f8   : > { %v2795_v30 = vadd.f32 %v2787_v12, %v2754_v7  ;;  %v2688_v34 = vmul.f32 %v7988_v43, %v2678_v15  ;;  %v2910_v10 = vmul.f32 %v7370_v58, %v2901_v26 }
 0x5f9   : > { %v2948_v40 = vpop.permute.xlu0 %2947 }
 0x5fa   : > { %v2812_v51 = vadd.f32 %v2804_v33, %v2795_v30  ;;  %v2697_v22 = vmul.f32 %v7301_v25, %v2688_v34  ;;  %v2959_v7 = vmul.f32 %v7989_v5, %v2948_v40  ;;  %v7420_v33 = vld [vmem:[%s7671_s1 + $0xb0] ss:$0 sm:$0xff] }
 0x5fb   : > { %v2728_v8 = vpop.permute.xlu1 %2727 }
 0x5fc   : > { %v2853_v32 = vadd.f32 %v2845_v11, %v2812_v51  ;;  %v2738_v13 = vmul.f32 %v7989_v5, %v2728_v8  ;;  %v2714_v59 = vadd.f32 %v2706_v56, %v2697_v22  ;;  %v2968_v34 = vmul.f32 %v7420_v33, %v2959_v7 }
 0x5fd   : > { %v2771_v17 = vpop.permute.xlu0 %2770  ;;  %v2707_v8 = vmul.f32 %v7310_v55, %v7193_v47 }
 0x5fe   : > { %v2918_v38 = vadd.f32 %v2910_v10, %v2853_v32  ;;  %v2747_v63 = vmul.f32 %v7321_v62, %v2738_v13  ;;  %v2780_v40 = vmul.f32 %v7988_v43, %v2771_v17  ;;  %v2708_v10 = vmul.f32 %v7310_v55, %v7145_v6 }
 0x5ff   : > { %v2773_v19 = vpop.permute.xlu1 %2772  ;;  %v2956_v13 = vmul.f32 %v7989_v5, %v7380_v4 }
 0x600   : > { %v2935_v54 = vadd.f32 %v2927_v0, %v2918_v38  ;;  %v2755_v23 = vadd.f32 %v2747_v63, %v2714_v59  ;;  %v7438_v38 = vld [vmem:[%s7671_s1 + $0xc0] ss:$0 sm:$0xff]  ;;  %v2781_v17 = vmul.f32 %v7988_v43, %v2773_v19  ;;  %v2789_v4 = vmul.f32 %v7331_v42, %v2780_v40 }
 0x601   : > { %v7410_v12 = vpop.permute.xlu0 %2828  ;;  %v2965_v19 = vmul.f32 %v7420_v33, %v2956_v13 }
 0x602   : > { %v2796_v20 = vadd.f32 %v2788_v44, %v2755_v23  ;;  %v2976_v22 = vadd.f32 %v2968_v34, %v2935_v54  ;;  %v2837_v44 = vmul.f32 %v7989_v5, %v2827_v16  ;;  %v2807_v16 = vmul.f32 %v7338_v31, %v7124_v49 }
 0x603   : > { %v7415_v15 = vpop.permute.xlu1 %2830  ;;  %v2790_v34 = vmul.f32 %v7331_v42, %v2781_v17  ;;  %v2973_v13 = vadd.f32 %v2965_v19, %v7384_v50  ;;  %v2928_v50 = vmul.f32 %v7378_v45, %v7209_v48  ;;  %v2929_v48 = vmul.f32 %v7378_v45, %v7151_v27 }
 0x604   : > { %v2813_v60 = vadd.f32 %v2805_v1, %v2796_v20  ;;  %v7445_v6 = vadd.f32 %v7438_v38, %v2976_v22  ;;  %v2774_v22 = vmul.f32 %v7988_v43, %v7277_v29  ;;  %v2846_v40 = vmul.f32 %v7346_v9, %v2837_v44 }
 0x605   : > { %v2680_v30 = vpop.permute.xlu0 %2679  ;;  %v2800_v29 = vmul.f32 %v7338_v31, %v7040_v52  ;;  %v2832_v44 = vmul.f32 %v7989_v5, %v7285_v14  ;;  %v2838_v52 = vmul.f32 %v7989_v5, %v7410_v12  ;;  %v7484_v14 = vadd.f32 %v7438_v38, %v2973_v13 }
 0x606   : > { %v2689_v26 = vmul.f32 %v7988_v43, %v2680_v30  ;;  %v2802_v12 = vmul.f32 %v7338_v31, %v7065_v37 }
 0x607   : > { %v2682_v11 = vpop.permute.xlu1 %2681 }
 0x608   : > { %v2698_v51 = vmul.f32 %v7301_v25, %v2689_v26  ;;  %v2690_v36 = vmul.f32 %v7988_v43, %v2682_v11  ;;  %v2806_v26 = vmul.f32 %v7338_v31, %v7119_v21 }
 0x609   : > { %v2730_v56 = vpop.permute.xlu0 %2729 }
 0x60a   : > { %v2699_v2 = vmul.f32 %v7301_v25, %v2690_v36  ;;  %v2739_v32 = vmul.f32 %v7989_v5, %v2730_v56  ;;  %v2715_v59 = vadd.f32 %v2707_v8, %v2698_v51  ;;  %v2701_v56 = vmul.f32 %v7310_v55, %v7204_v24 }
 0x60b   : > { %v2732_v0 = vpop.permute.xlu1 %2731 }
 0x60c   : > { %v2748_v47 = vmul.f32 %v7321_v62, %v2739_v32  ;;  %v2740_v63 = vmul.f32 %v7989_v5, %v2732_v0  ;;  %v2716_v23 = vadd.f32 %v2708_v10, %v2699_v2  ;;  %v2993_v2 = vsub.f32 0.0, %v7445_v6 }
 0x60d   : > { %v2668_v54 = vpop.permute.xlu0 %2667 }
 0x60e   : > { %v2756_v20 = vadd.f32 %v2748_v47, %v2715_v59  ;;  %v2749_v1 = vmul.f32 %v7321_v62, %v2740_v63  ;;  %v2683_v7 = vmul.f32 %v7988_v43, %v2668_v54  ;;  %v2783_v63 = vmul.f32 %v7331_v42, %v2774_v22 }
 0x60f   : > { %v2892_v30 = vpop.permute.xlu1 %2891  ;;  %v3005_v54 = vmul.f32 1.442695, %v2993_v2  ;;  %v2897_v42 = vmul.f32 %v7988_v43, %v7293_v28  ;;  %v2955_v28 = vmul.f32 %v7989_v5, %v7312_v46  ;;  %v2839_v22 = vmul.f32 %v7989_v5, %v7415_v15 }
 0x610   : > { %v2797_v11 = vadd.f32 %v2789_v4, %v2756_v20  ;;  %v2757_v51 = vadd.f32 %v2749_v1, %v2716_v23  ;;  %v2692_v36 = vmul.f32 %v7301_v25, %v2683_v7  ;;  %v2902_v8 = vmul.f32 %v7988_v43, %v2892_v30 }
 0x611   : > { %v2718_v21 = vpop.permute.xlu0 %2717  ;;  %v2854_v25 = vadd.f32 %v2846_v40, %v2813_v60  ;;  %v2923_v20 = vmul.f32 %v7378_v45, %v7058_v35  ;;  %v2803_v30 = vmul.f32 %v7338_v31, %v7077_v18  ;;  %v2841_v35 = vmul.f32 %v7346_v9, %v2832_v44 }
 0x612   : > { %v2798_v49 = vadd.f32 %v2790_v34, %v2757_v51  ;;  %v2733_v32 = vmul.f32 %v7989_v5, %v2718_v21  ;;  %v2814_v10 = vadd.f32 %v2806_v26, %v2797_v11  ;;  %v2911_v0 = vmul.f32 %v7370_v58, %v2902_v8 }
 0x613   : > { %v2950_v17 = vpop.permute.xlu1 %2949  ;;  %v2709_v59 = vadd.f32 %v2701_v56, %v2692_v36  ;;  %4462 = vpow2.f32 %v3005_v54  ;;  %v2847_v11 = vmul.f32 %v7346_v9, %v2838_v52  ;;  %v2906_v37 = vmul.f32 %v7370_v58, %v2897_v42 }
 0x614   : > { %v2742_v24 = vmul.f32 %v7321_v62, %v2733_v32  ;;  %v2960_v55 = vmul.f32 %v7989_v5, %v2950_v17  ;;  %v2815_v47 = vadd.f32 %v2807_v16, %v2798_v49  ;;  %v2919_v4 = vadd.f32 %v2911_v0, %v2854_v25 }
 0x615   : > { %v2821_v60 = vpop.permute.xlu0 %2820  ;;  %v2990_v36 = vsub.f32 0.0, %v7484_v14  ;;  %v2855_v56 = vadd.f32 %v2847_v11, %v2814_v10  ;;  %v2964_v21 = vmul.f32 %v7420_v33, %v2955_v28  ;;  %v2810_v0 = vadd.f32 %v2802_v12, %v7364_v39 }
 0x616   : > { %v2750_v23 = vadd.f32 %v2742_v24, %v2709_v59  ;;  %v2969_v62 = vmul.f32 %v7420_v33, %v2960_v55  ;;  %v2936_v1 = vadd.f32 %v2928_v50, %v2919_v4  ;;  %v2834_v16 = vmul.f32 %v7989_v5, %v2821_v60 }
 0x617   : > { %v2823_v7 = vpop.permute.xlu1 %2822  ;;  %v2999_v15 = vmul.f32 1.442695, %v2990_v36  ;;  %v2811_v10 = vadd.f32 %v2803_v30, %v7372_v3 }
 0x618   : > { %v2791_v19 = vadd.f32 %v2783_v63, %v2750_v23  ;;  %v2977_v26 = vadd.f32 %v2969_v62, %v2936_v1  ;;  %v2835_v31 = vmul.f32 %v7989_v5, %v2823_v7  ;;  %v2843_v49 = vmul.f32 %v7346_v9, %v2834_v16 }
 0x619   : > { %v2894_v34 = vpop.permute.xlu0 %2893  ;;  %v2848_v63 = vmul.f32 %v7346_v9, %v2839_v22 }
 0x61a   : > { %v2808_v27 = vadd.f32 %v2800_v29, %v2791_v19  ;;  %v2903_v51 = vmul.f32 %v7988_v43, %v2894_v34  ;;  %v7501_v18 = vadd.f32 %v7438_v38, %v2977_v26  ;;  %v2844_v24 = vmul.f32 %v7346_v9, %v2835_v31 }
 0x61b   : > { %v2888_v46 = vpop.permute.xlu1 %2887  ;;  %v2851_v60 = vadd.f32 %v2843_v49, %v2810_v0  ;;  %v2856_v62 = vadd.f32 %v2848_v63, %v2815_v47  ;;  %v2930_v9 = vmul.f32 %v7378_v45, %v7238_v53  ;;  %v2925_v47 = vmul.f32 %v7378_v45, %v7233_v41 }
 0x61c   : > { %v2849_v40 = vadd.f32 %v2841_v35, %v2808_v27  ;;  %v2912_v8 = vmul.f32 %v7370_v58, %v2903_v51  ;;  %v2994_v2 = vsub.f32 0.0, %v7501_v18  ;;  %v2900_v32 = vmul.f32 %v7988_v43, %v2888_v46 }
 0x61d   : > { %v2886_v13 = vpop.permute.xlu0 %2885  ;;  %v2852_v42 = vadd.f32 %v2844_v24, %v2811_v10  ;;  %v4463_v19 = vpop.eup %4462  ;;  %v2926_v51 = vmul.f32 %v7378_v45, %v7227_v61 }
 0x61e   : > { %v2914_v25 = vadd.f32 %v2906_v37, %v2849_v40  ;;  %v2920_v29 = vadd.f32 %v2912_v8, %v2855_v56  ;;  %v2899_v17 = vmul.f32 %v7988_v43, %v2886_v13  ;;  %v3007_v59 = vmul.f32 1.442695, %v2994_v2 }
 0x61f   : > { %v2896_v55 = vpop.permute.xlu1 %2895  ;;  %v2909_v39 = vmul.f32 %v7370_v58, %v2900_v32  ;;  %v3017_v34 = vadd.f32 1.0, %v4463_v19 }
 0x620   : > { %v2931_v44 = vadd.f32 %v2923_v20, %v2914_v25  ;;  %v2908_v4 = vmul.f32 %v7370_v58, %v2899_v17  ;;  %v2904_v50 = vmul.f32 %v7988_v43, %v2896_v55  ;;  %4464 = vpow2.f32 %v3007_v59 }
 0x621   : > { %v2937_v54 = vadd.f32 %v2929_v48, %v2920_v29  ;;  %v2952_v52 = vpop.permute.xlu0 %2951  ;;  %4466 = vpow2.f32 %v2999_v15 }
 0x622   : > { %v2972_v23 = vadd.f32 %v2964_v21, %v2931_v44  ;;  %v2913_v3 = vmul.f32 %v7370_v58, %v2904_v50  ;;  %v2916_v1 = vadd.f32 %v2908_v4, %v2851_v60  ;;  %v2961_v7 = vmul.f32 %v7989_v5, %v2952_v52 }
 0x623   : > { %v2954_v20 = vpop.permute.xlu1 %2953  ;;  %v2917_v58 = vadd.f32 %v2909_v39, %v2852_v42 }
 0x624   : > { %v2921_v43 = vadd.f32 %v2913_v3, %v2856_v62  ;;  %v2962_v12 = vmul.f32 %v7989_v5, %v2954_v20  ;;  %v7525_v48 = vadd.f32 %v7438_v38, %v2972_v23  ;;  %v2970_v30 = vmul.f32 %v7420_v33, %v2961_v7 }
 0x625   : > { %v2944_v35 = vpop.permute.xlu0 %2943  ;;  %v2933_v27 = vadd.f32 %v2925_v47, %v2916_v1  ;;  %v2934_v40 = vadd.f32 %v2926_v51, %v2917_v58 }
 0x626   : > { %v2938_v28 = vadd.f32 %v2930_v9, %v2921_v43  ;;  %v2971_v26 = vmul.f32 %v7420_v33, %v2962_v12  ;;  %v2957_v53 = vmul.f32 %v7989_v5, %v2944_v35  ;;  %v2989_v16 = vsub.f32 0.0, %v7525_v48 }
 0x627   : > { %v2978_v11 = vadd.f32 %v2970_v30, %v2937_v54  ;;  %v2946_v37 = vpop.permute.xlu1 %2945 }
 0x628   : > { %v2979_v36 = vadd.f32 %v2971_v26, %v2938_v28  ;;  %v2966_v41 = vmul.f32 %v7420_v33, %v2957_v53  ;;  %v2958_v31 = vmul.f32 %v7989_v5, %v2946_v37  ;;  %v2997_v46 = vmul.f32 1.442695, %v2989_v16  ;;  %v7993_v37 = vld [vmem:[#allocation23_spill] sm:$0xff] }
 0x629   : > { %v2987_v22 = vadd.f32 %v7438_v38, %v2978_v11  ;;  %v7992_v11 = vld [vmem:[#allocation22_spill] sm:$0xff] }
 0x62a   : > { %v2988_v56 = vadd.f32 %v7438_v38, %v2979_v36  ;;  %v2974_v8 = vadd.f32 %v2966_v41, %v2933_v27  ;;  %v2967_v21 = vmul.f32 %v7420_v33, %v2958_v31  ;;  %4468 = vpow2.f32 %v2997_v46  ;;  %v4465_v2 = vpop.eup %4464  ;;  %v7994_v46 = vld [vmem:[#allocation24_spill] sm:$0xff] }
 0x62b   : > { %4470 = vrcp.f32 %v3017_v34  ;;  %v2995_v49 = vsub.f32 0.0, %v2987_v22  ;;  %v3018_v61 = vadd.f32 1.0, %v4465_v2  ;;  %v4467_v5 = vpop.eup %4466  ;;  %v7991_v34 = vld [vmem:[#allocation9_spill] sm:$0xff] }
 0x62c   : > { %v2996_v45 = vsub.f32 0.0, %v2988_v56  ;;  %v2983_v32 = vadd.f32 %v7438_v38, %v2974_v8  ;;  %v2975_v13 = vadd.f32 %v2967_v21, %v2934_v40  ;;  %v3014_v59 = vadd.f32 1.0, %v4467_v5  ;;  %v7995_v8 = vld [vmem:[#allocation25_spill] sm:$0xff] }
 0x62d   : > { %v3009_v25 = vmul.f32 1.442695, %v2995_v49  ;;  %4472 = vrcp.f32 %v3018_v61 }
 0x62e   : > { %v3011_v0 = vmul.f32 1.442695, %v2996_v45  ;;  %v2991_v29 = vsub.f32 0.0, %v2983_v32  ;;  %v2984_v17 = vadd.f32 %v7438_v38, %v2975_v13 }
 0x62f   : > { %4474 = vpow2.f32 %v3009_v25 }
 0x630   : > { %4476 = vpow2.f32 %v3011_v0  ;;  %v3001_v15 = vmul.f32 1.442695, %v2991_v29  ;;  %v2992_v33 = vsub.f32 0.0, %v2984_v17 }
 0x632   : > { %4478 = vpow2.f32 %v3001_v15  ;;  %v3003_v10 = vmul.f32 1.442695, %v2992_v33 }
 0x634   : > { %v4469_v24 = vpop.eup %4468  ;;  %4480 = vpow2.f32 %v3003_v10 }
 0x635   : > { %v4471_v55 = vpop.eup %4470  ;;  %4482 = vrcp.f32 %v3014_v59  ;;  %v3013_v63 = vadd.f32 1.0, %v4469_v24 }
 0x636   : > { %v3033_v50 = vmul.f32 %v4471_v55, %v7445_v6 }
 0x637   : > { %4484 = vrcp.f32 %v3013_v63  ;;  %v4473_v44 = vpop.eup %4472 }
 0x638   : > { %v3034_v60 = vmul.f32 %v4473_v44, %v7501_v18 }
 0x639   : > { %v4475_v4 = vpop.eup %4474 }
 0x63a   : > { %v4477_v38 = vpop.eup %4476  ;;  %v3019_v39 = vadd.f32 1.0, %v4475_v4  ;;  %v3385_v54 = vpack.c.bf16 %v3034_v60, %v3033_v50 }
 0x63b   : > { %v3020_v52 = vadd.f32 1.0, %v4477_v38 }
 0x63c   : > { %v4479_v23 = vpop.eup %4478  ;;  %4486 = vrcp.f32 %v3019_v39  ;;  %3536 = vmatmul.mubr.bf16.vlgmr.msra.gmra.mrb[32].mxu1 %v3385_v54 }
 0x63d   : > { %4488 = vrcp.f32 %v3020_v52  ;;  %v3015_v62 = vadd.f32 1.0, %v4479_v23  ;;  %3545 = vmatprep.mubr.bf16.mxu1 %v7978_v57  ;;  %v7996_v23 = vld [vmem:[#allocation26_spill] sm:$0xff] }
 0x63e   : > { %v4481_v3 = vpop.eup %4480 }
 0x63f   : > { %v4483_v42 = vpop.eup %4482  ;;  %4490 = vrcp.f32 %v3015_v62  ;;  %v3016_v1 = vadd.f32 1.0, %v4481_v3 }
 0x640   : > { %v3030_v6 = vmul.f32 %v4483_v42, %v7484_v14  ;;  %v3900_v14 = vld [vmem:[%s7671_s1 + $0xd0] ss:$8 sm:$0x3] }
 0x641   : > { %v4485_v7 = vpop.eup %4484  ;;  %4492 = vrcp.f32 %v3016_v1  ;;  %v7997_v1 = vld [vmem:[#allocation27_spill] sm:$0xff] }
 0x642   : > { %v3029_v18 = vmul.f32 %v4485_v7, %v7525_v48  ;;  %v7990_v48 = vld [vmem:[#allocation10_spill] sm:$0xff] }
 0x643   : > { %v7552_v53 = vrot.slane %v3900_v14, %v7990_v48 }
 0x644   : > { %v3383_v9 = vpack.c.bf16 %v3030_v6, %v3029_v18 }
 0x646   : > { %v4487_v20 = vpop.eup %4486  ;;  %3516 = vmatmul.mubr.bf16.vlgmr.msra.gmra.mrb[16].mxu0 %v3383_v9  ;;  %v7998_v9 = vld [vmem:[#allocation28_spill] sm:$0xff] }
 0x647   : > { %v4489_v19 = vpop.eup %4488  ;;  %3525 = vmatprep.mubr.bf16.mxu0 %v7978_v57  ;;  %v3035_v43 = vmul.f32 %v4487_v20, %v2987_v22  ;;  %v7555_v57 = vrot.slane %v3900_v14, %v7991_v34 }
 0x648   : > { %v3036_v12 = vmul.f32 %v4489_v19, %v2988_v56 }
 0x649   : > { %v4491_v47 = vpop.eup %4490 }
 0x64a   : > { %v3386_v58 = vpack.c.bf16 %v3036_v12, %v3035_v43  ;;  %v3031_v35 = vmul.f32 %v4491_v47, %v2983_v32  ;;  %v7999_v47 = vld [vmem:[#allocation29_spill] sm:$0xff] }
 0x64b   : > { %v4493_v30 = vpop.eup %4492 }
 0x64c   : > { %3546 = vmatmul.mubr.bf16.gmra.mrb[36].mxu1 %v3386_v58  ;;  %v3032_v28 = vmul.f32 %v4493_v30, %v2984_v17 }
 0x64e   : > { %v3384_v26 = vpack.c.bf16 %v3032_v28, %v3031_v35 }
 0x650   : > { %3526 = vmatmul.mubr.bf16.gmra.mrb[20].mxu0 %v3384_v26 }
 0x70f   : > { %v3537_v16 = vpop.f32.mrb[32].mxu1 }
 0x710   : > { %v4032_v27 = vadd.f32 %v3537_v16, %v7992_v11  ;;  %v3539_v51 = vpop.f32.mrb[33].mxu1 }
 0x711   : > { %v4033_v36 = vadd.f32 %v3539_v51, %v7993_v37  ;;  %v3541_v41 = vpop.f32.mrb[34].mxu1 }
 0x712   : > { %v7560_v31 = vadd.f32 %v4032_v27, %v7552_v53  ;;  %v4034_v22 = vadd.f32 %v3541_v41, %v7994_v46  ;;  %v3543_v40 = vpop.f32.mrb[35].mxu1 }
 0x713   : > { %v7564_v56 = vadd.f32 %v4033_v36, %v7555_v57  ;;  %v4035_v21 = vadd.f32 %v3543_v40, %v7995_v8 }
 0x714   : > { %v3609_v2 = vsub.f32 0.0, %v7560_v31  ;;  %v7569_v49 = vadd.f32 %v4034_v22, %v7552_v53 }
 0x715   : > { %v3610_v61 = vsub.f32 0.0, %v7564_v56  ;;  %v7573_v45 = vadd.f32 %v4035_v21, %v7555_v57 }
 0x716   : > { %v3633_v32 = vmul.f32 1.442695, %v3609_v2  ;;  %v3611_v13 = vsub.f32 0.0, %v7569_v49 }
 0x717   : > { %v3635_v25 = vmul.f32 1.442695, %v3610_v61  ;;  %v3612_v5 = vsub.f32 0.0, %v7573_v45 }
 0x718   : > { %4494 = vpow2.f32 %v3633_v32  ;;  %v3637_v0 = vmul.f32 1.442695, %v3611_v13 }
 0x719   : > { %v3517_v29 = vpop.f32.mrb[16].mxu0  ;;  %4496 = vpow2.f32 %v3635_v25  ;;  %v3639_v17 = vmul.f32 1.442695, %v3612_v5 }
 0x71a   : > { %v7578_v15 = vadd.f32 %v7552_v53, %v3517_v29  ;;  %v3519_v33 = vpop.f32.mrb[17].mxu0  ;;  %4498 = vpow2.f32 %v3637_v0 }
 0x71b   : > { %v7581_v59 = vadd.f32 %v7555_v57, %v3519_v33  ;;  %v3521_v10 = vpop.f32.mrb[18].mxu0  ;;  %4500 = vpow2.f32 %v3639_v17 }
 0x71c   : > { %v3601_v24 = vsub.f32 0.0, %v7578_v15  ;;  %v7585_v55 = vadd.f32 %v7552_v53, %v3521_v10  ;;  %v3523_v63 = vpop.f32.mrb[19].mxu0 }
 0x71d   : > { %v3602_v44 = vsub.f32 0.0, %v7581_v59  ;;  %v7589_v4 = vadd.f32 %v7555_v57, %v3523_v63 }
 0x71e   : > { %v3617_v50 = vmul.f32 1.442695, %v3601_v24  ;;  %v3603_v60 = vsub.f32 0.0, %v7585_v55 }
 0x71f   : > { %v3619_v38 = vmul.f32 1.442695, %v3602_v44  ;;  %v3604_v39 = vsub.f32 0.0, %v7589_v4  ;;  %v3547_v54 = vpop.f32.mrb[36].mxu1 }
 0x720   : > { %4502 = vpow2.f32 %v3617_v50  ;;  %v3621_v52 = vmul.f32 1.442695, %v3603_v60  ;;  %v4036_v62 = vadd.f32 %v3547_v54, %v7996_v23  ;;  %v3549_v3 = vpop.f32.mrb[37].mxu1 }
 0x721   : > { %4504 = vpow2.f32 %v3619_v38  ;;  %v3623_v42 = vmul.f32 1.442695, %v3604_v39  ;;  %v4037_v7 = vadd.f32 %v3549_v3, %v7997_v1  ;;  %v3551_v6 = vpop.f32.mrb[38].mxu1 }
 0x722   : > { %4506 = vpow2.f32 %v3621_v52  ;;  %v7596_v18 = vadd.f32 %v4036_v62, %v7552_v53  ;;  %v4038_v20 = vadd.f32 %v3551_v6, %v7998_v9  ;;  %v3553_v19 = vpop.f32.mrb[39].mxu1  ;;  %v4495_v43 = vpop.eup %4494 }
 0x723   : > { %4508 = vpow2.f32 %v3623_v42  ;;  %v7600_v12 = vadd.f32 %v4037_v7, %v7555_v57  ;;  %v4039_v58 = vadd.f32 %v3553_v19, %v7999_v47  ;;  %v3527_v30 = vpop.f32.mrb[20].mxu0  ;;  %v4497_v35 = vpop.eup %4496  ;;  %v3657_v28 = vadd.f32 1.0, %v4495_v43 }
 0x724   : > { %v3613_v26 = vsub.f32 0.0, %v7596_v18  ;;  %v7605_v14 = vadd.f32 %v4038_v20, %v7552_v53  ;;  %v3529_v48 = vpop.f32.mrb[21].mxu0  ;;  %v4499_v16 = vpop.eup %4498  ;;  %v3658_v34 = vadd.f32 1.0, %v4497_v35  ;;  %v7612_v51 = vadd.f32 %v7552_v53, %v3527_v30 }
 0x725   : > { %v3614_v11 = vsub.f32 0.0, %v7600_v12  ;;  %v7609_v27 = vadd.f32 %v4039_v58, %v7555_v57  ;;  %v3531_v37 = vpop.f32.mrb[22].mxu0  ;;  %v4501_v36 = vpop.eup %4500  ;;  %4510 = vrcp.f32 %v3657_v28  ;;  %v3659_v41 = vadd.f32 1.0, %v4499_v16 }
 0x726   : > { %v3641_v46 = vmul.f32 1.442695, %v3613_v26  ;;  %v3615_v22 = vsub.f32 0.0, %v7605_v14  ;;  %v3533_v40 = vpop.f32.mrb[23].mxu0  ;;  %4512 = vrcp.f32 %v3658_v34  ;;  %v3660_v8 = vadd.f32 1.0, %v4501_v36 }
 0x727   : > { %v3643_v21 = vmul.f32 1.442695, %v3614_v11  ;;  %v7616_v2 = vadd.f32 %v7555_v57, %v3529_v48  ;;  %4514 = vrcp.f32 %v3659_v41  ;;  %v3616_v32 = vsub.f32 0.0, %v7609_v27 }
 0x728   : > { %v3645_v61 = vmul.f32 1.442695, %v3615_v22  ;;  %4516 = vrcp.f32 %v3660_v8  ;;  %v7620_v13 = vadd.f32 %v7552_v53, %v3531_v37  ;;  %v7623_v25 = vadd.f32 %v7555_v57, %v3533_v40 }
 0x729   : > { %4518 = vpow2.f32 %v3641_v46  ;;  %v3605_v0 = vsub.f32 0.0, %v7612_v51  ;;  %v3606_v33 = vsub.f32 0.0, %v7616_v2  ;;  %v3647_v57 = vmul.f32 1.442695, %v3616_v32 }
 0x72a   : > { %v4503_v5 = vpop.eup %4502  ;;  %4520 = vpow2.f32 %v3643_v21  ;;  %v3607_v63 = vsub.f32 0.0, %v7620_v13  ;;  %v3608_v50 = vsub.f32 0.0, %v7623_v25 }
 0x72b   : > { %v4505_v29 = vpop.eup %4504  ;;  %v3649_v17 = vadd.f32 1.0, %v4503_v5  ;;  %4522 = vpow2.f32 %v3645_v61  ;;  %v3625_v38 = vmul.f32 1.442695, %v3605_v0  ;;  %v3627_v39 = vmul.f32 1.442695, %v3606_v33 }
 0x72c   : > { %v4507_v10 = vpop.eup %4506  ;;  %v3650_v24 = vadd.f32 1.0, %v4505_v29  ;;  %v3629_v52 = vmul.f32 1.442695, %v3607_v63  ;;  %v3631_v3 = vmul.f32 1.442695, %v3608_v50 }
 0x72d   : > { %v4509_v44 = vpop.eup %4508  ;;  %4524 = vrcp.f32 %v3649_v17  ;;  %v3651_v53 = vadd.f32 1.0, %v4507_v10 }
 0x72e   : > { %4526 = vrcp.f32 %v3650_v24  ;;  %v3652_v60 = vadd.f32 1.0, %v4509_v44 }
 0x72f   : > { %4528 = vrcp.f32 %v3651_v53  ;;  %v4511_v54 = vpop.eup %4510 }
 0x730   : > { %4530 = vrcp.f32 %v3652_v60  ;;  %v4513_v23 = vpop.eup %4512  ;;  %v3689_v62 = vmul.f32 %v4511_v54, %v7560_v31 }
 0x731   : > { %4532 = vpow2.f32 %v3647_v57  ;;  %v4515_v42 = vpop.eup %4514  ;;  %v3690_v1 = vmul.f32 %v4513_v23, %v7564_v56 }
 0x732   : > { %4534 = vpow2.f32 %v3625_v38  ;;  %v4517_v7 = vpop.eup %4516  ;;  %3705 = vst [vmem:[%s7633_s26 + $0x40] sm:$0xff] %v3689_v62  ;;  %v3691_v6 = vmul.f32 %v4515_v42, %v7569_v49 }
 0x733   : > { %4536 = vpow2.f32 %v3627_v39  ;;  %v4519_v9 = vpop.eup %4518  ;;  %3706 = vst [vmem:[%s7633_s26 + $0x48] sm:$0xff] %v3690_v1  ;;  %v3692_v20 = vmul.f32 %v4517_v7, %v7573_v45 }
 0x734   : > { %4538 = vpow2.f32 %v3629_v52  ;;  %v4521_v19 = vpop.eup %4520  ;;  %3707 = vst [vmem:[%s7633_s26 + $0x50] sm:$0xff] %v3691_v6  ;;  %v3661_v31 = vadd.f32 1.0, %v4519_v9 }
 0x735   : > { %4540 = vpow2.f32 %v3631_v3  ;;  %v4523_v43 = vpop.eup %4522  ;;  %3708 = vst [vmem:[%s7633_s26 + $0x58] sm:$0xff] %v3692_v20  ;;  %v3662_v56 = vadd.f32 1.0, %v4521_v19 }
 0x736   : > { %4542 = vrcp.f32 %v3661_v31  ;;  %v3663_v58 = vadd.f32 1.0, %v4523_v43 }
 0x737   : > { %v4525_v47 = vpop.eup %4524  ;;  %4544 = vrcp.f32 %v3662_v56 }
 0x738   : > { %v4527_v49 = vpop.eup %4526  ;;  %v3681_v30 = vmul.f32 %v4525_v47, %v7578_v15  ;;  %4546 = vrcp.f32 %v3663_v58 }
 0x739   : > { %v4529_v45 = vpop.eup %4528  ;;  %v3682_v35 = vmul.f32 %v4527_v49, %v7581_v59 }
 0x73a   : > { %v4531_v28 = vpop.eup %4530  ;;  %3697 = vst [vmem:[%s7633_s26] sm:$0xff] %v3681_v30  ;;  %v3683_v26 = vmul.f32 %v4529_v45, %v7585_v55 }
 0x73b   : > { %v4533_v48 = vpop.eup %4532  ;;  %3698 = vst [vmem:[%s7633_s26 + $0x8] sm:$0xff] %v3682_v35  ;;  %v3684_v16 = vmul.f32 %v4531_v28, %v7589_v4 }
 0x73c   : > { %v4535_v34 = vpop.eup %4534  ;;  %3699 = vst [vmem:[%s7633_s26 + $0x10] sm:$0xff] %v3683_v26  ;;  %v3664_v11 = vadd.f32 1.0, %v4533_v48 }
 0x73d   : > { %v4537_v37 = vpop.eup %4536  ;;  %3700 = vst [vmem:[%s7633_s26 + $0x18] sm:$0xff] %v3684_v16  ;;  %v3653_v36 = vadd.f32 1.0, %v4535_v34 }
 0x73e   : > { %v4539_v15 = vpop.eup %4538  ;;  %4548 = vrcp.f32 %v3664_v11  ;;  %v3654_v59 = vadd.f32 1.0, %v4537_v37 }
 0x73f   : > { %v4541_v41 = vpop.eup %4540  ;;  %4550 = vrcp.f32 %v3653_v36  ;;  %v3655_v46 = vadd.f32 1.0, %v4539_v15 }
 0x740   : > { %4552 = vrcp.f32 %v3654_v59  ;;  %v3656_v55 = vadd.f32 1.0, %v4541_v41  ;;  %v4543_v22 = vpop.eup %4542 }
 0x741   : > { %4554 = vrcp.f32 %v3655_v46  ;;  %v4545_v4 = vpop.eup %4544  ;;  %v3693_v40 = vmul.f32 %v4543_v22, %v7596_v18 }
 0x742   : > { %4556 = vrcp.f32 %v3656_v55  ;;  %v4547_v8 = vpop.eup %4546  ;;  %v3694_v21 = vmul.f32 %v4545_v4, %v7600_v12 }
 0x743   : > { %3709 = vst [vmem:[%s7633_s26 + $0x60] sm:$0xff] %v3693_v40  ;;  %v3695_v61 = vmul.f32 %v4547_v8, %v7605_v14 }
 0x744   : > { %3710 = vst [vmem:[%s7633_s26 + $0x68] sm:$0xff] %v3694_v21 }
 0x745   : > { %3711 = vst [vmem:[%s7633_s26 + $0x70] sm:$0xff] %v3695_v61 }
 0x748   : > { %v4549_v32 = vpop.eup %4548 }
 0x749   : > { %v4551_v5 = vpop.eup %4550  ;;  %v3696_v0 = vmul.f32 %v4549_v32, %v7609_v27 }
 0x74a   : > { %v4553_v29 = vpop.eup %4552  ;;  %v3685_v18 = vmul.f32 %v4551_v5, %v7612_v51 }
 0x74b   : > { %v4555_v17 = vpop.eup %4554  ;;  %3712 = vst [vmem:[%s7633_s26 + $0x78] sm:$0xff] %v3696_v0  ;;  %v3686_v33 = vmul.f32 %v4553_v29, %v7616_v2 }
 0x74c   : > { %v4557_v12 = vpop.eup %4556  ;;  %3701 = vst [vmem:[%s7633_s26 + $0x20] sm:$0xff] %v3685_v18  ;;  %v3687_v10 = vmul.f32 %v4555_v17, %v7620_v13 }
 0x74d   : > { %3702 = vst [vmem:[%s7633_s26 + $0x28] sm:$0xff] %v3686_v33  ;;  %v3688_v14 = vmul.f32 %v4557_v12, %v7623_v25 }
 0x74e   : > { %3703 = vst [vmem:[%s7633_s26 + $0x30] sm:$0xff] %v3687_v10 }
 0x74f   : > { %3704 = vst [vmem:[%s7633_s26 + $0x38] sm:$0xff] %v3688_v14 }
 0x750 PF: > { %s13_s12 = sadd.s32 1, %s4564_s12  }
 0x751   : > { %p10_p4 = scmp.ge.s32.totalorder %s13_s12, 4  }
 0x753   :  { %12 = sbr.rel (!%p10_p4) target bundleno = 1 (0x1), region = 74 }

</bundles_post_ra>
